<compile_context>
chip_gen: v7x
topology: tpu7x:2x2x1
jax: 0.10.0
libtpu: 0.0.40
codegen_flags: <defaults>
</compile_context>

<pallas_src>
import math
import jax
import jax.numpy as jnp
from jax.experimental import pallas as pl
from jax.experimental.pallas import tpu as pltpu

# Small shapes consistent with the module (in_channels != out_channels so the
# surplus shortcut conv path is exercised; stride=1, the only shape-consistent
# configuration of the original module).
B = 2
C_IN = 4
C_OUT = 8
H = 16
W = 16
BN_EPS = 1e-5  # PyTorch nn.BatchNorm2d default


def resblock_kernel(xp_ref,          # (H+2, W+2, C_IN)  zero-padded input (one image)
                    w1_ref,          # (9, C_IN, C_OUT)  conv1 taps
                    w2_ref,          # (9, C_OUT, C_OUT) conv2 taps
                    ws_ref,          # (9, C_IN, C_OUT)  surplus (shortcut) conv taps
                    s1_ref, b1_ref,  # (1, C_OUT) folded BN1 scale / bias
                    s2_ref, b2_ref,  # (1, C_OUT) folded BN2 scale / bias
                    o_ref,           # (H, W, C_OUT)
                    hpad_ref):       # VMEM scratch (H+2, W+2, C_OUT)
    h, w, c_out = o_ref.shape

    xp = xp_ref[...]                                  # (H+2, W+2, C_IN)
    # Hoist per-channel affine params once (no repeated broadcasts/loads).
    s1 = s1_ref[...]
    b1 = b1_ref[...]
    s2 = s2_ref[...]
    b2 = b2_ref[...]

    def conv3x3(padded, w_ref):
        """3x3 'same' conv as 9 accumulated (H*W, Cin) @ (Cin, Cout) matmuls."""
        cin = padded.shape[-1]
        acc = jnp.zeros((h * w, c_out), jnp.float32)
        for dy in range(3):
            for dx in range(3):
                tap = padded[dy:dy + h, dx:dx + w, :].reshape(h * w, cin)
                acc = acc + jnp.dot(tap, w_ref[dy * 3 + dx],
                                    preferred_element_type=jnp.float32)
        return acc                                    # (H*W, C_OUT)

    # conv1 -> BN1 (folded affine) -> ReLU
    h1 = conv3x3(xp, w1_ref)
    h1 = jnp.maximum(h1 * s1 + b1, 0.0)

    # Re-pad the intermediate activation in VMEM scratch for conv2.
    hpad_ref[...] = jnp.zeros_like(hpad_ref)
    hpad_ref[1:h + 1, 1:w + 1, :] = h1.reshape(h, w, c_out)
    hp = hpad_ref[...]

    # conv2 -> BN2
    h2 = conv3x3(hp, w2_ref)
    h2 = h2 * s2 + b2

    # Shortcut: surplus 3x3 conv on the original input (C_IN != C_OUT).
    res = conv3x3(xp, ws_ref)

    out = jnp.maximum(h2 + res, 0.0)
    o_ref[...] = out.reshape(h, w, c_out)


def residual_block_forward(x_nchw, params):
    bsz, c_in, hh, ww = x_nchw.shape

    # NCHW -> NHWC, zero-pad spatially by 1 (conv padding=1).
    x_nhwc = jnp.transpose(x_nchw, (0, 2, 3, 1))
    xp = jnp.pad(x_nhwc, ((0, 0), (1, 1), (1, 1), (0, 0)))

    def taps(w_oihw):
        # (O, I, 3, 3) -> (3, 3, I, O) -> (9, I, O), tap index t = dy*3 + dx.
        o, i = w_oihw.shape[0], w_oihw.shape[1]
        return jnp.transpose(w_oihw, (2, 3, 1, 0)).reshape(9, i, o)

    def fold_bn(gamma, beta, mean, var):
        scale = gamma * jax.lax.rsqrt(var + BN_EPS)
        bias = beta - mean * scale
        return scale.reshape(1, -1), bias.reshape(1, -1)

    w1 = taps(params["w1"])
    w2 = taps(params["w2"])
    ws = taps(params["ws"])
    s1, b1 = fold_bn(params["g1"], params["be1"], params["rm1"], params["rv1"])
    s2, b2 = fold_bn(params["g2"], params["be2"], params["rm2"], params["rv2"])
    weights = [w1, w2, ws, s1, b1, s2, b2]

    def full_spec(p):
        return pl.BlockSpec(p.shape, lambda b, _n=p.ndim: (0,) * _n)

    in_specs = [pl.BlockSpec((None, hh + 2, ww + 2, c_in), lambda b: (b, 0, 0, 0))]
    in_specs += [full_spec(p) for p in weights]

    out_nhwc = pl.pallas_call(
        resblock_kernel,
        out_shape=jax.ShapeDtypeStruct((bsz, hh, ww, C_OUT), jnp.float32),
        grid=(bsz,),
        in_specs=in_specs,
        out_specs=pl.BlockSpec((None, hh, ww, C_OUT), lambda b: (b, 0, 0, 0)),
        scratch_shapes=[pltpu.VMEM((hh + 2, ww + 2, C_OUT), jnp.float32)],
        compiler_params=pltpu.CompilerParams(dimension_semantics=("parallel",)),
    )(xp, *weights)

    return jnp.transpose(out_nhwc, (0, 3, 1, 2))  # back to NCHW


def residual_block_reference(x_nchw, params):
    """Pure-JAX reference (eval-mode PyTorch semantics) using real convs."""
    def conv(x, w_oihw):
        return jax.lax.conv_general_dilated(
            x, w_oihw, window_strides=(1, 1), padding=((1, 1), (1, 1)),
            dimension_numbers=("NCHW", "OIHW", "NCHW"))

    def bn(x, gamma, beta, mean, var):
        scale = gamma * jax.lax.rsqrt(var + BN_EPS)
        bias = beta - mean * scale
        return x * scale[None, :, None, None] + bias[None, :, None, None]

    out = conv(x_nchw, params["w1"])
    out = jnp.maximum(bn(out, params["g1"], params["be1"],
                         params["rm1"], params["rv1"]), 0.0)
    out = conv(out, params["w2"])
    out = bn(out, params["g2"], params["be2"], params["rm2"], params["rv2"])
    res = conv(x_nchw, params["ws"])
    return jnp.maximum(out + res, 0.0)


def init_params(key):
    ks = jax.random.split(key, 9)

    def kaiming_uniform(k, shape):
        fan_in = shape[1] * shape[2] * shape[3]
        bound = 1.0 / math.sqrt(fan_in)
        return jax.random.uniform(k, shape, jnp.float32, -bound, bound)

    return {
        # conv weights in PyTorch OIHW layout (bias=False as in conv3x3).
        "w1": kaiming_uniform(ks[0], (C_OUT, C_IN, 3, 3)),
        "w2": kaiming_uniform(ks[1], (C_OUT, C_OUT, 3, 3)),
        "ws": kaiming_uniform(ks[2], (C_OUT, C_IN, 3, 3)),
        # BatchNorm1 (gamma, beta, running_mean, running_var)
        "g1": 1.0 + 0.1 * jax.random.normal(ks[3], (C_OUT,), jnp.float32),
        "be1": 0.1 * jax.random.normal(ks[4], (C_OUT,), jnp.float32),
        "rm1": 0.1 * jax.random.normal(ks[5], (C_OUT,), jnp.float32),
        "rv1": jnp.abs(jax.random.normal(ks[6], (C_OUT,), jnp.float32)) + 0.5,
        # BatchNorm2
        "g2": 1.0 + 0.1 * jax.random.normal(ks[7], (C_OUT,), jnp.float32),
        "be2": 0.1 * jax.random.normal(ks[8], (C_OUT,), jnp.float32),
        "rm2": jnp.zeros((C_OUT,), jnp.float32),
        "rv2": jnp.ones((C_OUT,), jnp.float32),
    }


if __name__ == "__main__":
    key = jax.random.PRNGKey(0)
    kx, kp = jax.random.split(key)
    x = jax.random.normal(kx, (B, C_IN, H, W), jnp.float32)
    params = init_params(kp)

    out = jax.block_until_ready(residual_block_forward(x, params))
    ref = jax.block_until_ready(residual_block_reference(x, params))

    assert out.shape == (B, C_OUT, H, W)
    max_err = jnp.max(jnp.abs(out - ref))
    assert jnp.allclose(out, ref, atol=2e-4, rtol=2e-4), f"max abs err {max_err}"
    print("KERNEL_OK")
</pallas_src>

<mosaic_0001>
module attributes {stable_mosaic.version = 11 : i64} {
  func.func @resblock_kernel(%arg0: i32, %arg1: memref<1x18x18x4xf32, #tpu.memory_space<vmem>>, %arg2: memref<9x4x8xf32, #tpu.memory_space<vmem>>, %arg3: memref<9x8x8xf32, #tpu.memory_space<vmem>>, %arg4: memref<9x4x8xf32, #tpu.memory_space<vmem>>, %arg5: memref<1x8xf32, #tpu.memory_space<vmem>>, %arg6: memref<1x8xf32, #tpu.memory_space<vmem>>, %arg7: memref<1x8xf32, #tpu.memory_space<vmem>>, %arg8: memref<1x8xf32, #tpu.memory_space<vmem>>, %arg9: memref<1x16x16x8xf32, #tpu.memory_space<vmem>>, %arg10: memref<18x18x8xf32, #tpu.memory_space<vmem>>) attributes {dimension_semantics = [#tpu.dimension_semantics<parallel>], iteration_bounds = array<i64: 2>, scalar_prefetch = 0 : i64, scratch_operands = 1 : i64, tpu.core_type = #tpu.core_type<tc>, window_params = [{transform_indices = @transform_0, window_bounds = array<i64: 1, 18, 18, 4>}, {pipeline_mode = #tpu.pipeline_mode<synchronous>, transform_indices = @transform_1, window_bounds = array<i64: 9, 4, 8>}, {pipeline_mode = #tpu.pipeline_mode<synchronous>, transform_indices = @transform_2, window_bounds = array<i64: 9, 8, 8>}, {pipeline_mode = #tpu.pipeline_mode<synchronous>, transform_indices = @transform_3, window_bounds = array<i64: 9, 4, 8>}, {pipeline_mode = #tpu.pipeline_mode<synchronous>, transform_indices = @transform_4, window_bounds = array<i64: 1, 8>}, {pipeline_mode = #tpu.pipeline_mode<synchronous>, transform_indices = @transform_5, window_bounds = array<i64: 1, 8>}, {pipeline_mode = #tpu.pipeline_mode<synchronous>, transform_indices = @transform_6, window_bounds = array<i64: 1, 8>}, {pipeline_mode = #tpu.pipeline_mode<synchronous>, transform_indices = @transform_7, window_bounds = array<i64: 1, 8>}, {transform_indices = @transform_8, window_bounds = array<i64: 1, 16, 16, 8>}]} {
    %c0 = arith.constant 0 : index
    %c0_0 = arith.constant 0 : index
    %c0_1 = arith.constant 0 : index
    %c0_2 = arith.constant 0 : index
    %0 = vector.load %arg1[%c0, %c0_0, %c0_1, %c0_2] : memref<1x18x18x4xf32, #tpu.memory_space<vmem>>, vector<1x18x18x4xf32>
    %1 = vector.shape_cast %0 : vector<1x18x18x4xf32> to vector<18x18x4xf32>
    %c0_3 = arith.constant 0 : index
    %c0_4 = arith.constant 0 : index
    %2 = vector.load %arg5[%c0_3, %c0_4] : memref<1x8xf32, #tpu.memory_space<vmem>>, vector<1x8xf32>
    %c0_5 = arith.constant 0 : index
    %c0_6 = arith.constant 0 : index
    %3 = vector.load %arg6[%c0_5, %c0_6] : memref<1x8xf32, #tpu.memory_space<vmem>>, vector<1x8xf32>
    %c0_7 = arith.constant 0 : index
    %c0_8 = arith.constant 0 : index
    %4 = vector.load %arg7[%c0_7, %c0_8] : memref<1x8xf32, #tpu.memory_space<vmem>>, vector<1x8xf32>
    %c0_9 = arith.constant 0 : index
    %c0_10 = arith.constant 0 : index
    %5 = vector.load %arg8[%c0_9, %c0_10] : memref<1x8xf32, #tpu.memory_space<vmem>>, vector<1x8xf32>
    %cst = arith.constant 0.000000e+00 : f32
    %6 = vector.broadcast %cst : f32 to vector<256x8xf32>
    %7 = vector.extract_strided_slice %1 {offsets = [0, 0, 0], sizes = [16, 16, 4], strides = [1, 1, 1]} : vector<18x18x4xf32> to vector<16x16x4xf32>
    %8 = vector.shape_cast %7 : vector<16x16x4xf32> to vector<256x4xf32>
    %c0_11 = arith.constant 0 : index
    %c0_12 = arith.constant 0 : index
    %c0_13 = arith.constant 0 : index
    %9 = vector.load %arg2[%c0_11, %c0_12, %c0_13] : memref<9x4x8xf32, #tpu.memory_space<vmem>>, vector<1x4x8xf32>
    %10 = vector.shape_cast %9 : vector<1x4x8xf32> to vector<4x8xf32>
    %cst_14 = arith.constant dense<0.000000e+00> : vector<256x8xf32>
    %11 = tpu.matmul %8, %10, %cst_14 {dimension_numbers = #tpu.dot_dimension_numbers<[1], [0], [0], [1], [0, 0, 1, 1], [], []>} : vector<256x4xf32>, vector<4x8xf32>, vector<256x8xf32> -> vector<256x8xf32>
    %12 = arith.addf %6, %11 : vector<256x8xf32>
    %13 = vector.extract_strided_slice %1 {offsets = [0, 1, 0], sizes = [16, 16, 4], strides = [1, 1, 1]} : vector<18x18x4xf32> to vector<16x16x4xf32>
    %14 = vector.shape_cast %13 : vector<16x16x4xf32> to vector<256x4xf32>
    %c1 = arith.constant 1 : index
    %c0_15 = arith.constant 0 : index
    %c0_16 = arith.constant 0 : index
    %15 = vector.load %arg2[%c1, %c0_15, %c0_16] : memref<9x4x8xf32, #tpu.memory_space<vmem>>, vector<1x4x8xf32>
    %16 = vector.shape_cast %15 : vector<1x4x8xf32> to vector<4x8xf32>
    %cst_17 = arith.constant dense<0.000000e+00> : vector<256x8xf32>
    %17 = tpu.matmul %14, %16, %cst_17 {dimension_numbers = #tpu.dot_dimension_numbers<[1], [0], [0], [1], [0, 0, 1, 1], [], []>} : vector<256x4xf32>, vector<4x8xf32>, vector<256x8xf32> -> vector<256x8xf32>
    %18 = arith.addf %12, %17 : vector<256x8xf32>
    %19 = vector.extract_strided_slice %1 {offsets = [0, 2, 0], sizes = [16, 16, 4], strides = [1, 1, 1]} : vector<18x18x4xf32> to vector<16x16x4xf32>
    %20 = vector.shape_cast %19 : vector<16x16x4xf32> to vector<256x4xf32>
    %c2 = arith.constant 2 : index
    %c0_18 = arith.constant 0 : index
    %c0_19 = arith.constant 0 : index
    %21 = vector.load %arg2[%c2, %c0_18, %c0_19] : memref<9x4x8xf32, #tpu.memory_space<vmem>>, vector<1x4x8xf32>
    %22 = vector.shape_cast %21 : vector<1x4x8xf32> to vector<4x8xf32>
    %cst_20 = arith.constant dense<0.000000e+00> : vector<256x8xf32>
    %23 = tpu.matmul %20, %22, %cst_20 {dimension_numbers = #tpu.dot_dimension_numbers<[1], [0], [0], [1], [0, 0, 1, 1], [], []>} : vector<256x4xf32>, vector<4x8xf32>, vector<256x8xf32> -> vector<256x8xf32>
    %24 = arith.addf %18, %23 : vector<256x8xf32>
    %25 = vector.extract_strided_slice %1 {offsets = [1, 0, 0], sizes = [16, 16, 4], strides = [1, 1, 1]} : vector<18x18x4xf32> to vector<16x16x4xf32>
    %26 = vector.shape_cast %25 : vector<16x16x4xf32> to vector<256x4xf32>
    %c3 = arith.constant 3 : index
    %c0_21 = arith.constant 0 : index
    %c0_22 = arith.constant 0 : index
    %27 = vector.load %arg2[%c3, %c0_21, %c0_22] : memref<9x4x8xf32, #tpu.memory_space<vmem>>, vector<1x4x8xf32>
    %28 = vector.shape_cast %27 : vector<1x4x8xf32> to vector<4x8xf32>
    %cst_23 = arith.constant dense<0.000000e+00> : vector<256x8xf32>
    %29 = tpu.matmul %26, %28, %cst_23 {dimension_numbers = #tpu.dot_dimension_numbers<[1], [0], [0], [1], [0, 0, 1, 1], [], []>} : vector<256x4xf32>, vector<4x8xf32>, vector<256x8xf32> -> vector<256x8xf32>
    %30 = arith.addf %24, %29 : vector<256x8xf32>
    %31 = vector.extract_strided_slice %1 {offsets = [1, 1, 0], sizes = [16, 16, 4], strides = [1, 1, 1]} : vector<18x18x4xf32> to vector<16x16x4xf32>
    %32 = vector.shape_cast %31 : vector<16x16x4xf32> to vector<256x4xf32>
    %c4 = arith.constant 4 : index
    %c0_24 = arith.constant 0 : index
    %c0_25 = arith.constant 0 : index
    %33 = vector.load %arg2[%c4, %c0_24, %c0_25] : memref<9x4x8xf32, #tpu.memory_space<vmem>>, vector<1x4x8xf32>
    %34 = vector.shape_cast %33 : vector<1x4x8xf32> to vector<4x8xf32>
    %cst_26 = arith.constant dense<0.000000e+00> : vector<256x8xf32>
    %35 = tpu.matmul %32, %34, %cst_26 {dimension_numbers = #tpu.dot_dimension_numbers<[1], [0], [0], [1], [0, 0, 1, 1], [], []>} : vector<256x4xf32>, vector<4x8xf32>, vector<256x8xf32> -> vector<256x8xf32>
    %36 = arith.addf %30, %35 : vector<256x8xf32>
    %37 = vector.extract_strided_slice %1 {offsets = [1, 2, 0], sizes = [16, 16, 4], strides = [1, 1, 1]} : vector<18x18x4xf32> to vector<16x16x4xf32>
    %38 = vector.shape_cast %37 : vector<16x16x4xf32> to vector<256x4xf32>
    %c5 = arith.constant 5 : index
    %c0_27 = arith.constant 0 : index
    %c0_28 = arith.constant 0 : index
    %39 = vector.load %arg2[%c5, %c0_27, %c0_28] : memref<9x4x8xf32, #tpu.memory_space<vmem>>, vector<1x4x8xf32>
    %40 = vector.shape_cast %39 : vector<1x4x8xf32> to vector<4x8xf32>
    %cst_29 = arith.constant dense<0.000000e+00> : vector<256x8xf32>
    %41 = tpu.matmul %38, %40, %cst_29 {dimension_numbers = #tpu.dot_dimension_numbers<[1], [0], [0], [1], [0, 0, 1, 1], [], []>} : vector<256x4xf32>, vector<4x8xf32>, vector<256x8xf32> -> vector<256x8xf32>
    %42 = arith.addf %36, %41 : vector<256x8xf32>
    %43 = vector.extract_strided_slice %1 {offsets = [2, 0, 0], sizes = [16, 16, 4], strides = [1, 1, 1]} : vector<18x18x4xf32> to vector<16x16x4xf32>
    %44 = vector.shape_cast %43 : vector<16x16x4xf32> to vector<256x4xf32>
    %c6 = arith.constant 6 : index
    %c0_30 = arith.constant 0 : index
    %c0_31 = arith.constant 0 : index
    %45 = vector.load %arg2[%c6, %c0_30, %c0_31] : memref<9x4x8xf32, #tpu.memory_space<vmem>>, vector<1x4x8xf32>
    %46 = vector.shape_cast %45 : vector<1x4x8xf32> to vector<4x8xf32>
    %cst_32 = arith.constant dense<0.000000e+00> : vector<256x8xf32>
    %47 = tpu.matmul %44, %46, %cst_32 {dimension_numbers = #tpu.dot_dimension_numbers<[1], [0], [0], [1], [0, 0, 1, 1], [], []>} : vector<256x4xf32>, vector<4x8xf32>, vector<256x8xf32> -> vector<256x8xf32>
    %48 = arith.addf %42, %47 : vector<256x8xf32>
    %49 = vector.extract_strided_slice %1 {offsets = [2, 1, 0], sizes = [16, 16, 4], strides = [1, 1, 1]} : vector<18x18x4xf32> to vector<16x16x4xf32>
    %50 = vector.shape_cast %49 : vector<16x16x4xf32> to vector<256x4xf32>
    %c7 = arith.constant 7 : index
    %c0_33 = arith.constant 0 : index
    %c0_34 = arith.constant 0 : index
    %51 = vector.load %arg2[%c7, %c0_33, %c0_34] : memref<9x4x8xf32, #tpu.memory_space<vmem>>, vector<1x4x8xf32>
    %52 = vector.shape_cast %51 : vector<1x4x8xf32> to vector<4x8xf32>
    %cst_35 = arith.constant dense<0.000000e+00> : vector<256x8xf32>
    %53 = tpu.matmul %50, %52, %cst_35 {dimension_numbers = #tpu.dot_dimension_numbers<[1], [0], [0], [1], [0, 0, 1, 1], [], []>} : vector<256x4xf32>, vector<4x8xf32>, vector<256x8xf32> -> vector<256x8xf32>
    %54 = arith.addf %48, %53 : vector<256x8xf32>
    %55 = vector.extract_strided_slice %1 {offsets = [2, 2, 0], sizes = [16, 16, 4], strides = [1, 1, 1]} : vector<18x18x4xf32> to vector<16x16x4xf32>
    %56 = vector.shape_cast %55 : vector<16x16x4xf32> to vector<256x4xf32>
    %c8 = arith.constant 8 : index
    %c0_36 = arith.constant 0 : index
    %c0_37 = arith.constant 0 : index
    %57 = vector.load %arg2[%c8, %c0_36, %c0_37] : memref<9x4x8xf32, #tpu.memory_space<vmem>>, vector<1x4x8xf32>
    %58 = vector.shape_cast %57 : vector<1x4x8xf32> to vector<4x8xf32>
    %cst_38 = arith.constant dense<0.000000e+00> : vector<256x8xf32>
    %59 = tpu.matmul %56, %58, %cst_38 {dimension_numbers = #tpu.dot_dimension_numbers<[1], [0], [0], [1], [0, 0, 1, 1], [], []>} : vector<256x4xf32>, vector<4x8xf32>, vector<256x8xf32> -> vector<256x8xf32>
    %60 = arith.addf %54, %59 : vector<256x8xf32>
    %61 = vector.broadcast %2 : vector<1x8xf32> to vector<256x8xf32>
    %62 = arith.mulf %60, %61 : vector<256x8xf32>
    %63 = vector.broadcast %3 : vector<1x8xf32> to vector<256x8xf32>
    %64 = arith.addf %62, %63 : vector<256x8xf32>
    %cst_39 = arith.constant 0.000000e+00 : f32
    %65 = vector.broadcast %cst_39 : f32 to vector<256x8xf32>
    %66 = arith.maximumf %64, %65 : vector<256x8xf32>
    %cst_40 = arith.constant 0.000000e+00 : f32
    %67 = vector.broadcast %cst_40 : f32 to vector<18x18x8xf32>
    %c0_41 = arith.constant 0 : index
    %c0_42 = arith.constant 0 : index
    %c0_43 = arith.constant 0 : index
    %68 = vector.load %arg10[%c0_41, %c0_42, %c0_43] : memref<18x18x8xf32, #tpu.memory_space<vmem>>, vector<18x18x8xf32>
    tpu.vector_store %arg10[%c0_41, %c0_42, %c0_43], %67 {strides = array<i32>} : memref<18x18x8xf32, #tpu.memory_space<vmem>>, vector<18x18x8xf32>,
    %69 = vector.shape_cast %66 : vector<256x8xf32> to vector<16x16x8xf32>
    %c1_44 = arith.constant 1 : index
    %c1_45 = arith.constant 1 : index
    %c0_46 = arith.constant 0 : index
    %70 = vector.load %arg10[%c1_44, %c1_45, %c0_46] : memref<18x18x8xf32, #tpu.memory_space<vmem>>, vector<16x16x8xf32>
    tpu.vector_store %arg10[%c1_44, %c1_45, %c0_46], %69 {strides = array<i32>} : memref<18x18x8xf32, #tpu.memory_space<vmem>>, vector<16x16x8xf32>,
    %c0_47 = arith.constant 0 : index
    %c0_48 = arith.constant 0 : index
    %c0_49 = arith.constant 0 : index
    %71 = vector.load %arg10[%c0_47, %c0_48, %c0_49] : memref<18x18x8xf32, #tpu.memory_space<vmem>>, vector<18x18x8xf32>
    %cst_50 = arith.constant 0.000000e+00 : f32
    %72 = vector.broadcast %cst_50 : f32 to vector<256x8xf32>
    %73 = vector.extract_strided_slice %71 {offsets = [0, 0, 0], sizes = [16, 16, 8], strides = [1, 1, 1]} : vector<18x18x8xf32> to vector<16x16x8xf32>
    %74 = vector.shape_cast %73 : vector<16x16x8xf32> to vector<256x8xf32>
    %c0_51 = arith.constant 0 : index
    %c0_52 = arith.constant 0 : index
    %c0_53 = arith.constant 0 : index
    %75 = vector.load %arg3[%c0_51, %c0_52, %c0_53] : memref<9x8x8xf32, #tpu.memory_space<vmem>>, vector<1x8x8xf32>
    %76 = vector.shape_cast %75 : vector<1x8x8xf32> to vector<8x8xf32>
    %cst_54 = arith.constant dense<0.000000e+00> : vector<256x8xf32>
    %77 = tpu.matmul %74, %76, %cst_54 {dimension_numbers = #tpu.dot_dimension_numbers<[1], [0], [0], [1], [0, 0, 1, 1], [], []>} : vector<256x8xf32>, vector<8x8xf32>, vector<256x8xf32> -> vector<256x8xf32>
    %78 = arith.addf %72, %77 : vector<256x8xf32>
    %79 = vector.extract_strided_slice %71 {offsets = [0, 1, 0], sizes = [16, 16, 8], strides = [1, 1, 1]} : vector<18x18x8xf32> to vector<16x16x8xf32>
    %80 = vector.shape_cast %79 : vector<16x16x8xf32> to vector<256x8xf32>
    %c1_55 = arith.constant 1 : index
    %c0_56 = arith.constant 0 : index
    %c0_57 = arith.constant 0 : index
    %81 = vector.load %arg3[%c1_55, %c0_56, %c0_57] : memref<9x8x8xf32, #tpu.memory_space<vmem>>, vector<1x8x8xf32>
    %82 = vector.shape_cast %81 : vector<1x8x8xf32> to vector<8x8xf32>
    %cst_58 = arith.constant dense<0.000000e+00> : vector<256x8xf32>
    %83 = tpu.matmul %80, %82, %cst_58 {dimension_numbers = #tpu.dot_dimension_numbers<[1], [0], [0], [1], [0, 0, 1, 1], [], []>} : vector<256x8xf32>, vector<8x8xf32>, vector<256x8xf32> -> vector<256x8xf32>
    %84 = arith.addf %78, %83 : vector<256x8xf32>
    %85 = vector.extract_strided_slice %71 {offsets = [0, 2, 0], sizes = [16, 16, 8], strides = [1, 1, 1]} : vector<18x18x8xf32> to vector<16x16x8xf32>
    %86 = vector.shape_cast %85 : vector<16x16x8xf32> to vector<256x8xf32>
    %c2_59 = arith.constant 2 : index
    %c0_60 = arith.constant 0 : index
    %c0_61 = arith.constant 0 : index
    %87 = vector.load %arg3[%c2_59, %c0_60, %c0_61] : memref<9x8x8xf32, #tpu.memory_space<vmem>>, vector<1x8x8xf32>
    %88 = vector.shape_cast %87 : vector<1x8x8xf32> to vector<8x8xf32>
    %cst_62 = arith.constant dense<0.000000e+00> : vector<256x8xf32>
    %89 = tpu.matmul %86, %88, %cst_62 {dimension_numbers = #tpu.dot_dimension_numbers<[1], [0], [0], [1], [0, 0, 1, 1], [], []>} : vector<256x8xf32>, vector<8x8xf32>, vector<256x8xf32> -> vector<256x8xf32>
    %90 = arith.addf %84, %89 : vector<256x8xf32>
    %91 = vector.extract_strided_slice %71 {offsets = [1, 0, 0], sizes = [16, 16, 8], strides = [1, 1, 1]} : vector<18x18x8xf32> to vector<16x16x8xf32>
    %92 = vector.shape_cast %91 : vector<16x16x8xf32> to vector<256x8xf32>
    %c3_63 = arith.constant 3 : index
    %c0_64 = arith.constant 0 : index
    %c0_65 = arith.constant 0 : index
    %93 = vector.load %arg3[%c3_63, %c0_64, %c0_65] : memref<9x8x8xf32, #tpu.memory_space<vmem>>, vector<1x8x8xf32>
    %94 = vector.shape_cast %93 : vector<1x8x8xf32> to vector<8x8xf32>
    %cst_66 = arith.constant dense<0.000000e+00> : vector<256x8xf32>
    %95 = tpu.matmul %92, %94, %cst_66 {dimension_numbers = #tpu.dot_dimension_numbers<[1], [0], [0], [1], [0, 0, 1, 1], [], []>} : vector<256x8xf32>, vector<8x8xf32>, vector<256x8xf32> -> vector<256x8xf32>
    %96 = arith.addf %90, %95 : vector<256x8xf32>
    %97 = vector.extract_strided_slice %71 {offsets = [1, 1, 0], sizes = [16, 16, 8], strides = [1, 1, 1]} : vector<18x18x8xf32> to vector<16x16x8xf32>
    %98 = vector.shape_cast %97 : vector<16x16x8xf32> to vector<256x8xf32>
    %c4_67 = arith.constant 4 : index
    %c0_68 = arith.constant 0 : index
    %c0_69 = arith.constant 0 : index
    %99 = vector.load %arg3[%c4_67, %c0_68, %c0_69] : memref<9x8x8xf32, #tpu.memory_space<vmem>>, vector<1x8x8xf32>
    %100 = vector.shape_cast %99 : vector<1x8x8xf32> to vector<8x8xf32>
    %cst_70 = arith.constant dense<0.000000e+00> : vector<256x8xf32>
    %101 = tpu.matmul %98, %100, %cst_70 {dimension_numbers = #tpu.dot_dimension_numbers<[1], [0], [0], [1], [0, 0, 1, 1], [], []>} : vector<256x8xf32>, vector<8x8xf32>, vector<256x8xf32> -> vector<256x8xf32>
    %102 = arith.addf %96, %101 : vector<256x8xf32>
    %103 = vector.extract_strided_slice %71 {offsets = [1, 2, 0], sizes = [16, 16, 8], strides = [1, 1, 1]} : vector<18x18x8xf32> to vector<16x16x8xf32>
    %104 = vector.shape_cast %103 : vector<16x16x8xf32> to vector<256x8xf32>
    %c5_71 = arith.constant 5 : index
    %c0_72 = arith.constant 0 : index
    %c0_73 = arith.constant 0 : index
    %105 = vector.load %arg3[%c5_71, %c0_72, %c0_73] : memref<9x8x8xf32, #tpu.memory_space<vmem>>, vector<1x8x8xf32>
    %106 = vector.shape_cast %105 : vector<1x8x8xf32> to vector<8x8xf32>
    %cst_74 = arith.constant dense<0.000000e+00> : vector<256x8xf32>
    %107 = tpu.matmul %104, %106, %cst_74 {dimension_numbers = #tpu.dot_dimension_numbers<[1], [0], [0], [1], [0, 0, 1, 1], [], []>} : vector<256x8xf32>, vector<8x8xf32>, vector<256x8xf32> -> vector<256x8xf32>
    %108 = arith.addf %102, %107 : vector<256x8xf32>
    %109 = vector.extract_strided_slice %71 {offsets = [2, 0, 0], sizes = [16, 16, 8], strides = [1, 1, 1]} : vector<18x18x8xf32> to vector<16x16x8xf32>
    %110 = vector.shape_cast %109 : vector<16x16x8xf32> to vector<256x8xf32>
    %c6_75 = arith.constant 6 : index
    %c0_76 = arith.constant 0 : index
    %c0_77 = arith.constant 0 : index
    %111 = vector.load %arg3[%c6_75, %c0_76, %c0_77] : memref<9x8x8xf32, #tpu.memory_space<vmem>>, vector<1x8x8xf32>
    %112 = vector.shape_cast %111 : vector<1x8x8xf32> to vector<8x8xf32>
    %cst_78 = arith.constant dense<0.000000e+00> : vector<256x8xf32>
    %113 = tpu.matmul %110, %112, %cst_78 {dimension_numbers = #tpu.dot_dimension_numbers<[1], [0], [0], [1], [0, 0, 1, 1], [], []>} : vector<256x8xf32>, vector<8x8xf32>, vector<256x8xf32> -> vector<256x8xf32>
    %114 = arith.addf %108, %113 : vector<256x8xf32>
    %115 = vector.extract_strided_slice %71 {offsets = [2, 1, 0], sizes = [16, 16, 8], strides = [1, 1, 1]} : vector<18x18x8xf32> to vector<16x16x8xf32>
    %116 = vector.shape_cast %115 : vector<16x16x8xf32> to vector<256x8xf32>
    %c7_79 = arith.constant 7 : index
    %c0_80 = arith.constant 0 : index
    %c0_81 = arith.constant 0 : index
    %117 = vector.load %arg3[%c7_79, %c0_80, %c0_81] : memref<9x8x8xf32, #tpu.memory_space<vmem>>, vector<1x8x8xf32>
    %118 = vector.shape_cast %117 : vector<1x8x8xf32> to vector<8x8xf32>
    %cst_82 = arith.constant dense<0.000000e+00> : vector<256x8xf32>
    %119 = tpu.matmul %116, %118, %cst_82 {dimension_numbers = #tpu.dot_dimension_numbers<[1], [0], [0], [1], [0, 0, 1, 1], [], []>} : vector<256x8xf32>, vector<8x8xf32>, vector<256x8xf32> -> vector<256x8xf32>
    %120 = arith.addf %114, %119 : vector<256x8xf32>
    %121 = vector.extract_strided_slice %71 {offsets = [2, 2, 0], sizes = [16, 16, 8], strides = [1, 1, 1]} : vector<18x18x8xf32> to vector<16x16x8xf32>
    %122 = vector.shape_cast %121 : vector<16x16x8xf32> to vector<256x8xf32>
    %c8_83 = arith.constant 8 : index
    %c0_84 = arith.constant 0 : index
    %c0_85 = arith.constant 0 : index
    %123 = vector.load %arg3[%c8_83, %c0_84, %c0_85] : memref<9x8x8xf32, #tpu.memory_space<vmem>>, vector<1x8x8xf32>
    %124 = vector.shape_cast %123 : vector<1x8x8xf32> to vector<8x8xf32>
    %cst_86 = arith.constant dense<0.000000e+00> : vector<256x8xf32>
    %125 = tpu.matmul %122, %124, %cst_86 {dimension_numbers = #tpu.dot_dimension_numbers<[1], [0], [0], [1], [0, 0, 1, 1], [], []>} : vector<256x8xf32>, vector<8x8xf32>, vector<256x8xf32> -> vector<256x8xf32>
    %126 = arith.addf %120, %125 : vector<256x8xf32>
    %127 = vector.broadcast %4 : vector<1x8xf32> to vector<256x8xf32>
    %128 = arith.mulf %126, %127 : vector<256x8xf32>
    %129 = vector.broadcast %5 : vector<1x8xf32> to vector<256x8xf32>
    %130 = arith.addf %128, %129 : vector<256x8xf32>
    %cst_87 = arith.constant 0.000000e+00 : f32
    %131 = vector.broadcast %cst_87 : f32 to vector<256x8xf32>
    %132 = vector.extract_strided_slice %1 {offsets = [0, 0, 0], sizes = [16, 16, 4], strides = [1, 1, 1]} : vector<18x18x4xf32> to vector<16x16x4xf32>
    %133 = vector.shape_cast %132 : vector<16x16x4xf32> to vector<256x4xf32>
    %c0_88 = arith.constant 0 : index
    %c0_89 = arith.constant 0 : index
    %c0_90 = arith.constant 0 : index
    %134 = vector.load %arg4[%c0_88, %c0_89, %c0_90] : memref<9x4x8xf32, #tpu.memory_space<vmem>>, vector<1x4x8xf32>
    %135 = vector.shape_cast %134 : vector<1x4x8xf32> to vector<4x8xf32>
    %cst_91 = arith.constant dense<0.000000e+00> : vector<256x8xf32>
    %136 = tpu.matmul %133, %135, %cst_91 {dimension_numbers = #tpu.dot_dimension_numbers<[1], [0], [0], [1], [0, 0, 1, 1], [], []>} : vector<256x4xf32>, vector<4x8xf32>, vector<256x8xf32> -> vector<256x8xf32>
    %137 = arith.addf %131, %136 : vector<256x8xf32>
    %138 = vector.extract_strided_slice %1 {offsets = [0, 1, 0], sizes = [16, 16, 4], strides = [1, 1, 1]} : vector<18x18x4xf32> to vector<16x16x4xf32>
    %139 = vector.shape_cast %138 : vector<16x16x4xf32> to vector<256x4xf32>
    %c1_92 = arith.constant 1 : index
    %c0_93 = arith.constant 0 : index
    %c0_94 = arith.constant 0 : index
    %140 = vector.load %arg4[%c1_92, %c0_93, %c0_94] : memref<9x4x8xf32, #tpu.memory_space<vmem>>, vector<1x4x8xf32>
    %141 = vector.shape_cast %140 : vector<1x4x8xf32> to vector<4x8xf32>
    %cst_95 = arith.constant dense<0.000000e+00> : vector<256x8xf32>
    %142 = tpu.matmul %139, %141, %cst_95 {dimension_numbers = #tpu.dot_dimension_numbers<[1], [0], [0], [1], [0, 0, 1, 1], [], []>} : vector<256x4xf32>, vector<4x8xf32>, vector<256x8xf32> -> vector<256x8xf32>
    %143 = arith.addf %137, %142 : vector<256x8xf32>
    %144 = vector.extract_strided_slice %1 {offsets = [0, 2, 0], sizes = [16, 16, 4], strides = [1, 1, 1]} : vector<18x18x4xf32> to vector<16x16x4xf32>
    %145 = vector.shape_cast %144 : vector<16x16x4xf32> to vector<256x4xf32>
    %c2_96 = arith.constant 2 : index
    %c0_97 = arith.constant 0 : index
    %c0_98 = arith.constant 0 : index
    %146 = vector.load %arg4[%c2_96, %c0_97, %c0_98] : memref<9x4x8xf32, #tpu.memory_space<vmem>>, vector<1x4x8xf32>
    %147 = vector.shape_cast %146 : vector<1x4x8xf32> to vector<4x8xf32>
    %cst_99 = arith.constant dense<0.000000e+00> : vector<256x8xf32>
    %148 = tpu.matmul %145, %147, %cst_99 {dimension_numbers = #tpu.dot_dimension_numbers<[1], [0], [0], [1], [0, 0, 1, 1], [], []>} : vector<256x4xf32>, vector<4x8xf32>, vector<256x8xf32> -> vector<256x8xf32>
    %149 = arith.addf %143, %148 : vector<256x8xf32>
    %150 = vector.extract_strided_slice %1 {offsets = [1, 0, 0], sizes = [16, 16, 4], strides = [1, 1, 1]} : vector<18x18x4xf32> to vector<16x16x4xf32>
    %151 = vector.shape_cast %150 : vector<16x16x4xf32> to vector<256x4xf32>
    %c3_100 = arith.constant 3 : index
    %c0_101 = arith.constant 0 : index
    %c0_102 = arith.constant 0 : index
    %152 = vector.load %arg4[%c3_100, %c0_101, %c0_102] : memref<9x4x8xf32, #tpu.memory_space<vmem>>, vector<1x4x8xf32>
    %153 = vector.shape_cast %152 : vector<1x4x8xf32> to vector<4x8xf32>
    %cst_103 = arith.constant dense<0.000000e+00> : vector<256x8xf32>
    %154 = tpu.matmul %151, %153, %cst_103 {dimension_numbers = #tpu.dot_dimension_numbers<[1], [0], [0], [1], [0, 0, 1, 1], [], []>} : vector<256x4xf32>, vector<4x8xf32>, vector<256x8xf32> -> vector<256x8xf32>
    %155 = arith.addf %149, %154 : vector<256x8xf32>
    %156 = vector.extract_strided_slice %1 {offsets = [1, 1, 0], sizes = [16, 16, 4], strides = [1, 1, 1]} : vector<18x18x4xf32> to vector<16x16x4xf32>
    %157 = vector.shape_cast %156 : vector<16x16x4xf32> to vector<256x4xf32>
    %c4_104 = arith.constant 4 : index
    %c0_105 = arith.constant 0 : index
    %c0_106 = arith.constant 0 : index
    %158 = vector.load %arg4[%c4_104, %c0_105, %c0_106] : memref<9x4x8xf32, #tpu.memory_space<vmem>>, vector<1x4x8xf32>
    %159 = vector.shape_cast %158 : vector<1x4x8xf32> to vector<4x8xf32>
    %cst_107 = arith.constant dense<0.000000e+00> : vector<256x8xf32>
    %160 = tpu.matmul %157, %159, %cst_107 {dimension_numbers = #tpu.dot_dimension_numbers<[1], [0], [0], [1], [0, 0, 1, 1], [], []>} : vector<256x4xf32>, vector<4x8xf32>, vector<256x8xf32> -> vector<256x8xf32>
    %161 = arith.addf %155, %160 : vector<256x8xf32>
    %162 = vector.extract_strided_slice %1 {offsets = [1, 2, 0], sizes = [16, 16, 4], strides = [1, 1, 1]} : vector<18x18x4xf32> to vector<16x16x4xf32>
    %163 = vector.shape_cast %162 : vector<16x16x4xf32> to vector<256x4xf32>
    %c5_108 = arith.constant 5 : index
    %c0_109 = arith.constant 0 : index
    %c0_110 = arith.constant 0 : index
    %164 = vector.load %arg4[%c5_108, %c0_109, %c0_110] : memref<9x4x8xf32, #tpu.memory_space<vmem>>, vector<1x4x8xf32>
    %165 = vector.shape_cast %164 : vector<1x4x8xf32> to vector<4x8xf32>
    %cst_111 = arith.constant dense<0.000000e+00> : vector<256x8xf32>
    %166 = tpu.matmul %163, %165, %cst_111 {dimension_numbers = #tpu.dot_dimension_numbers<[1], [0], [0], [1], [0, 0, 1, 1], [], []>} : vector<256x4xf32>, vector<4x8xf32>, vector<256x8xf32> -> vector<256x8xf32>
    %167 = arith.addf %161, %166 : vector<256x8xf32>
    %168 = vector.extract_strided_slice %1 {offsets = [2, 0, 0], sizes = [16, 16, 4], strides = [1, 1, 1]} : vector<18x18x4xf32> to vector<16x16x4xf32>
    %169 = vector.shape_cast %168 : vector<16x16x4xf32> to vector<256x4xf32>
    %c6_112 = arith.constant 6 : index
    %c0_113 = arith.constant 0 : index
    %c0_114 = arith.constant 0 : index
    %170 = vector.load %arg4[%c6_112, %c0_113, %c0_114] : memref<9x4x8xf32, #tpu.memory_space<vmem>>, vector<1x4x8xf32>
    %171 = vector.shape_cast %170 : vector<1x4x8xf32> to vector<4x8xf32>
    %cst_115 = arith.constant dense<0.000000e+00> : vector<256x8xf32>
    %172 = tpu.matmul %169, %171, %cst_115 {dimension_numbers = #tpu.dot_dimension_numbers<[1], [0], [0], [1], [0, 0, 1, 1], [], []>} : vector<256x4xf32>, vector<4x8xf32>, vector<256x8xf32> -> vector<256x8xf32>
    %173 = arith.addf %167, %172 : vector<256x8xf32>
    %174 = vector.extract_strided_slice %1 {offsets = [2, 1, 0], sizes = [16, 16, 4], strides = [1, 1, 1]} : vector<18x18x4xf32> to vector<16x16x4xf32>
    %175 = vector.shape_cast %174 : vector<16x16x4xf32> to vector<256x4xf32>
    %c7_116 = arith.constant 7 : index
    %c0_117 = arith.constant 0 : index
    %c0_118 = arith.constant 0 : index
    %176 = vector.load %arg4[%c7_116, %c0_117, %c0_118] : memref<9x4x8xf32, #tpu.memory_space<vmem>>, vector<1x4x8xf32>
    %177 = vector.shape_cast %176 : vector<1x4x8xf32> to vector<4x8xf32>
    %cst_119 = arith.constant dense<0.000000e+00> : vector<256x8xf32>
    %178 = tpu.matmul %175, %177, %cst_119 {dimension_numbers = #tpu.dot_dimension_numbers<[1], [0], [0], [1], [0, 0, 1, 1], [], []>} : vector<256x4xf32>, vector<4x8xf32>, vector<256x8xf32> -> vector<256x8xf32>
    %179 = arith.addf %173, %178 : vector<256x8xf32>
    %180 = vector.extract_strided_slice %1 {offsets = [2, 2, 0], sizes = [16, 16, 4], strides = [1, 1, 1]} : vector<18x18x4xf32> to vector<16x16x4xf32>
    %181 = vector.shape_cast %180 : vector<16x16x4xf32> to vector<256x4xf32>
    %c8_120 = arith.constant 8 : index
    %c0_121 = arith.constant 0 : index
    %c0_122 = arith.constant 0 : index
    %182 = vector.load %arg4[%c8_120, %c0_121, %c0_122] : memref<9x4x8xf32, #tpu.memory_space<vmem>>, vector<1x4x8xf32>
    %183 = vector.shape_cast %182 : vector<1x4x8xf32> to vector<4x8xf32>
    %cst_123 = arith.constant dense<0.000000e+00> : vector<256x8xf32>
    %184 = tpu.matmul %181, %183, %cst_123 {dimension_numbers = #tpu.dot_dimension_numbers<[1], [0], [0], [1], [0, 0, 1, 1], [], []>} : vector<256x4xf32>, vector<4x8xf32>, vector<256x8xf32> -> vector<256x8xf32>
    %185 = arith.addf %179, %184 : vector<256x8xf32>
    %186 = arith.addf %130, %185 : vector<256x8xf32>
    %cst_124 = arith.constant 0.000000e+00 : f32
    %187 = vector.broadcast %cst_124 : f32 to vector<256x8xf32>
    %188 = arith.maximumf %186, %187 : vector<256x8xf32>
    %189 = vector.shape_cast %188 : vector<256x8xf32> to vector<16x16x8xf32>
    %c0_125 = arith.constant 0 : index
    %c0_126 = arith.constant 0 : index
    %c0_127 = arith.constant 0 : index
    %c0_128 = arith.constant 0 : index
    %190 = vector.load %arg9[%c0_125, %c0_126, %c0_127, %c0_128] : memref<1x16x16x8xf32, #tpu.memory_space<vmem>>, vector<1x16x16x8xf32>
    %191 = vector.shape_cast %190 : vector<1x16x16x8xf32> to vector<16x16x8xf32>
    %192 = vector.shape_cast %189 : vector<16x16x8xf32> to vector<1x16x16x8xf32>
    tpu.vector_store %arg9[%c0_125, %c0_126, %c0_127, %c0_128], %192 {strides = array<i32>} : memref<1x16x16x8xf32, #tpu.memory_space<vmem>>, vector<1x16x16x8xf32>,
    return
  }
  func.func @transform_0(%arg0: i32) -> (i32, i32, i32, i32) {
    %c0_i32 = arith.constant 0 : i32
    %c0_i32_0 = arith.constant 0 : i32
    %c0_i32_1 = arith.constant 0 : i32
    %c0_i32_2 = arith.constant 0 : i32
    return %arg0, %c0_i32, %c0_i32_0, %c0_i32_1 : i32, i32, i32, i32
  }
  func.func @transform_1(%arg0: i32) -> (i32, i32, i32) {
    %c0_i32 = arith.constant 0 : i32
    %c0_i32_0 = arith.constant 0 : i32
    %c0_i32_1 = arith.constant 0 : i32
    %c0_i32_2 = arith.constant 0 : i32
    return %c0_i32, %c0_i32_0, %c0_i32_1 : i32, i32, i32
  }
  func.func @transform_2(%arg0: i32) -> (i32, i32, i32) {
    %c0_i32 = arith.constant 0 : i32
    %c0_i32_0 = arith.constant 0 : i32
    %c0_i32_1 = arith.constant 0 : i32
    %c0_i32_2 = arith.constant 0 : i32
    return %c0_i32, %c0_i32_0, %c0_i32_1 : i32, i32, i32
  }
  func.func @transform_3(%arg0: i32) -> (i32, i32, i32) {
    %c0_i32 = arith.constant 0 : i32
    %c0_i32_0 = arith.constant 0 : i32
    %c0_i32_1 = arith.constant 0 : i32
    %c0_i32_2 = arith.constant 0 : i32
    return %c0_i32, %c0_i32_0, %c0_i32_1 : i32, i32, i32
  }
  func.func @transform_4(%arg0: i32) -> (i32, i32) {
    %c0_i32 = arith.constant 0 : i32
    %c0_i32_0 = arith.constant 0 : i32
    %c0_i32_1 = arith.constant 0 : i32
    return %c0_i32, %c0_i32_0 : i32, i32
  }
  func.func @transform_5(%arg0: i32) -> (i32, i32) {
    %c0_i32 = arith.constant 0 : i32
    %c0_i32_0 = arith.constant 0 : i32
    %c0_i32_1 = arith.constant 0 : i32
    return %c0_i32, %c0_i32_0 : i32, i32
  }
  func.func @transform_6(%arg0: i32) -> (i32, i32) {
    %c0_i32 = arith.constant 0 : i32
    %c0_i32_0 = arith.constant 0 : i32
    %c0_i32_1 = arith.constant 0 : i32
    return %c0_i32, %c0_i32_0 : i32, i32
  }
  func.func @transform_7(%arg0: i32) -> (i32, i32) {
    %c0_i32 = arith.constant 0 : i32
    %c0_i32_0 = arith.constant 0 : i32
    %c0_i32_1 = arith.constant 0 : i32
    return %c0_i32, %c0_i32_0 : i32, i32
  }
  func.func @transform_8(%arg0: i32) -> (i32, i32, i32, i32) {
    %c0_i32 = arith.constant 0 : i32
    %c0_i32_0 = arith.constant 0 : i32
    %c0_i32_1 = arith.constant 0 : i32
    %c0_i32_2 = arith.constant 0 : i32
    return %arg0, %c0_i32, %c0_i32_0, %c0_i32_1 : i32, i32, i32, i32
  }
}

</mosaic_0001>

<bundles_post_ra>
// kernel: tpu_custom_call.1
= control target key start
LH: loop header
LB: loop body
LE: loop exit
PB: predicated region body
PF: predicated region fallthrough
CT: control target
= control target key end

     0   :  { %s12683_s27 = smov 0   ;;  %s16023_s0 = inlined_call_operand.vmem [shape: f32[2,18,18,4], index: 0, kind: input, shape index: {}]   ;;  %s16024_s1 = inlined_call_operand.vmem [shape: f32[9,4,8], index: 1, kind: input, shape index: {}]   ;;  %s16025_s2 = inlined_call_operand.vmem [shape: f32[9,8,8], index: 2, kind: input, shape index: {}]   ;;  %s16026_s3 = inlined_call_operand.vmem [shape: f32[9,4,8], index: 3, kind: input, shape index: {}]   ;;  %s16027_s4 = inlined_call_operand.vmem [shape: f32[1,8], index: 4, kind: input, shape index: {}]   ;;  %s16028_s5 = inlined_call_operand.vmem [shape: f32[1,8], index: 5, kind: input, shape index: {}]   ;;  %s16029_s6 = inlined_call_operand.vmem [shape: f32[1,8], index: 6, kind: input, shape index: {}]   ;;  %s16030_s7 = inlined_call_operand.vmem [shape: f32[1,8], index: 7, kind: input, shape index: {}]   ;;  %s16031_s8 = inlined_call_operand.vmem [shape: f32[2,16,16,8], index: 8, kind: output, shape index: {}]  }
   0x1 LB: > { %s8598_s28 = sadd.s32 4294967295, %s12635_s27   ;;  %p8602_p0 = scmp.ge.s32.totalorder %s12635_s27, 1  ;;  %s12635_s27 = sphi %s12683_s27, %s18_s27  }
   0x2   : > { %p262_p1 = scmp.lt.s32.totalorder %s12635_s27, 3 }
   0x4   : > { %p263_p2 = pnand %p8602_p0, %p262_p1 }
   0x6   : > { %266 = sbr.rel (%p263_p2) target bundleno = 1274 (0x4fa), region = 52 }
   0xd   : > { %v8606_v0 = vld [vmem:[%s16024_s1 + $0x4] sm:$0xf]  ;;  %vm561_vm0 = vcmask 1043456   ;;  %v12697_v1 = vld [vmem:[%s16024_s1 + $0x10] sm:$0xf]  ;;  %p296_p3 = scmp.lt.s32.totalorder %s8598_s28, 1 }
   0xe   : > { %10410 = vmatprep.subr.msk.mxu1 %vm561_vm0, %v8606_v0  ;;  %10610 = vmatprep.subr.msk.mxu0 %vm561_vm0, %v12697_v1  ;;  %v364_v2 = vld [vmem:[%s16024_s1] sm:$0xf]  ;;  %v8775_v3 = vld [vmem:[%s16024_s1 + $0x14] sm:$0xf]  ;;  %vm413_vm1 = vcmask 1046528   ;;  %vm496_vm2 = vcmask 31744  }
   0xf   : > { %10411 = vmatpush3.msk.msra.mxu1 %vm561_vm0, %v8606_v0  ;;  %10611 = vmatpush3.msk.msra.mxu0 %vm561_vm0, %v12697_v1  ;;  %s16726_s28 = smov (!%p296_p3, %s8598_s28), 1  ;;  %v12795_v33 = vld [vmem:[%s16024_s1 + $0x18] sm:$0xf]  ;;  %v12806_v35 = vld [vmem:[%s16024_s1 + $0x8] sm:$0xf]  ;;  %vm1082_vm3 = vcmask 1045504  }
  0x10   : > { %10460 = vmatprep.subr.msk.mxu1 %vm561_vm0, %v364_v2  ;;  %10660 = vmatprep.subr.msk.mxu0 %vm561_vm0, %v8775_v3  ;;  %s12530_s15 = smul.u32 432, %s16726_s28  ;;  %vm3219_vm4 = vcmask 64512   ;;  %vm3222_vm5 = vcmask 58368   ;;  %s9518_s14 = sshll.u32 %s16726_s28, 8 }
  0x11   : > { %s15866_s17 = scalar_lea.vmem %s16031_s8, %s9518_s14 }
  0x12   : > { %s12719_s18 = scalar_lea.vmem %s16023_s0, %s12530_s15 }
  0x13   : > { %v12722_v4 = vld [vmem:[%s12719_s18] sm:$0xff]  ;;  %v12725_v5 = vld [vmem:[%s12719_s18 + $0x8] sm:$0xff]  ;;  %v12728_v6 = vld [vmem:[%s12719_s18 + $0x18] sm:$0xff] }
  0x14   : > { %16319 = vst [vmem:[#allocation3_spill] sm:$0xff] %v12728_v6  ;;  %v414_v7 = vrot.slane %v12722_v4, 1  ;;  %v415_v8 = vrot.slane %v12725_v5, 1  ;;  %v12733_v9 = vld [vmem:[%s12719_s18 + $0x20] sm:$0xff]  ;;  %v419_v10 = vrot.slane %v12728_v6, 1  ;;  %v12745_v15 = vld [vmem:[%s12719_s18 + $0x30] sm:$0xff] }
  0x15   : > { %16320 = vst [vmem:[#allocation4_spill] sm:$0xff] %v12733_v9  ;;  %v12737_v11 = vld [vmem:[%s12719_s18 + $0x10] sm:$0x3]  ;;  %v420_v12 = vrot.slane %v12733_v9, 1  ;;  %v12742_v14 = vld [vmem:[%s12719_s18 + $0x28] sm:$0x3] }
  0x16   : > { %v417_v13 = vrot.slane %v12737_v11, 1  ;;  %v12748_v16 = vsel %vm413_vm1, %v414_v7, %v415_v8  ;;  %v422_v17 = vrot.slane %v12742_v14, 1  ;;  %v12752_v18 = vld [vmem:[%s12719_s18 + $0x38] sm:$0xff]  ;;  %v424_v19 = vrot.slane %v12745_v15, 1  ;;  %v12756_v20 = vld [vmem:[%s12719_s18 + $0x40] sm:$0x3] }
  0x17   : > { %16321 = vst [vmem:[#allocation5_spill] sm:$0xff] %v12748_v16  ;;  %10412 = vmatprep.mubr.msk.f32.mxu1 %vm496_vm2, %v12748_v16  ;;  %v12761_v21 = vsel %vm413_vm1, %v419_v10, %v420_v12  ;;  %v425_v23 = vrot.slane %v12752_v18, 1  ;;  %v427_v24 = vrot.slane %v12756_v20, 1  ;;  %v12769_v25 = vld [vmem:[%s12719_s18 + $0x48] sm:$0xff]  ;;  %v12772_v26 = vld [vmem:[%s12719_s18 + $0x50] sm:$0xff]  ;;  %v12787_v31 = vld [vmem:[%s12719_s18 + $0x60] sm:$0xff] }
  0x18   : > { %16322 = vst [vmem:[#allocation6_spill] sm:$0xff] %v12761_v21  ;;  %v12764_v22 = vsel %vm413_vm1, %v415_v8, %v417_v13  ;;  %v12775_v27 = vld [vmem:[%s12719_s18 + $0x58] sm:$0x3]  ;;  %10612 = vmatprep.mubr.msk.f32.mxu0 %vm496_vm2, %v12761_v21  ;;  %v12782_v28 = vsel %vm413_vm1, %v420_v12, %v422_v17  ;;  %v429_v29 = vrot.slane %v12769_v25, 1  ;;  %v430_v30 = vrot.slane %v12772_v26, 1  ;;  %v12790_v32 = vld [vmem:[%s12719_s18 + $0x68] sm:$0xff] }
  0x19   : > { %16323 = vst [vmem:[#allocation7_spill] sm:$0xff] %v12764_v22  ;;  %10413 = vmatmul.mubr.msk.f32.vlgmr.msra.gmra.mrb[0].mxu1 %vm496_vm2, %v12764_v22  ;;  %16324 = vst [vmem:[#allocation8_spill] sm:$0xff] %v12782_v28  ;;  %10613 = vmatmul.mubr.msk.f32.vlgmr.msra.gmra.mrb[0].mxu0 %vm496_vm2, %v12782_v28  ;;  %v12801_v34 = vsel %vm413_vm1, %v424_v19, %v425_v23  ;;  %v12812_v36 = vsel %vm413_vm1, %v425_v23, %v427_v24  ;;  %v432_v37 = vrot.slane %v12775_v27, 1  ;;  %v12823_v41 = vld [vmem:[%s12719_s18 + $0x70] sm:$0x3]  ;;  %v12830_v42 = vld [vmem:[%s12719_s18 + $0x78] sm:$0xff] }
  0x1a   : > { %10461 = vmatpush3.msk.msra.mxu1 %vm561_vm0, %v364_v2  ;;  %16325 = vst [vmem:[#allocation9_spill] sm:$0xff] %v12801_v34  ;;  %10661 = vmatpush3.msk.msra.mxu0 %vm561_vm0, %v8775_v3  ;;  %16326 = vst [vmem:[#allocation10_spill] sm:$0xff] %v12812_v36  ;;  %v12818_v38 = vsel %vm413_vm1, %v429_v29, %v430_v30  ;;  %v434_v39 = vrot.slane %v12787_v31, 1  ;;  %v435_v40 = vrot.slane %v12790_v32, 1  ;;  %v12833_v43 = vld [vmem:[%s12719_s18 + $0x80] sm:$0xff]  ;;  %v437_v45 = vrot.slane %v12823_v41, 1 }
  0x1b   : > { %10415 = vmatprep.mubr.msk.f32.mxu1 %vm496_vm2, %v12761_v21  ;;  %10615 = vmatprep.mubr.msk.f32.mxu0 %vm496_vm2, %v12801_v34  ;;  %16327 = vst [vmem:[#allocation11_spill] sm:$0xff] %v12818_v38  ;;  %v12844_v44 = vsel %vm413_vm1, %v430_v30, %v432_v37  ;;  %v439_v47 = vrot.slane %v12830_v42, 1  ;;  %v440_v48 = vrot.slane %v12833_v43, 1  ;;  %v12853_v49 = vld [vmem:[%s12719_s18 + $0x88] sm:$0x3]  ;;  %v12858_v50 = vld [vmem:[%s12719_s18 + $0x90] sm:$0xff] }
  0x1c   : > { %10710 = vmatprep.subr.msk.mxu0 %vm561_vm0, %v12795_v33  ;;  %10510 = vmatprep.subr.msk.mxu1 %vm561_vm0, %v12806_v35  ;;  %16328 = vst [vmem:[#allocation12_spill] sm:$0xff] %v12844_v44  ;;  %v12848_v46 = vsel %vm413_vm1, %v434_v39, %v435_v40  ;;  %v12861_v51 = vld [vmem:[%s12719_s18 + $0x98] sm:$0xff]  ;;  %v12870_v52 = vsel %vm413_vm1, %v435_v40, %v437_v45  ;;  %v442_v53 = vrot.slane %v12853_v49, 1  ;;  %v444_v55 = vrot.slane %v12858_v50, 1  ;;  %v12879_v57 = vld [vmem:[%s12719_s18 + $0xa0] sm:$0x3] }
  0x1d   : > { %10416 = vmatmul.mubr.msk.f32.gmra.mrb[2].mxu1 %vm496_vm2, %v12782_v28  ;;  %10616 = vmatmul.mubr.msk.f32.gmra.mrb[2].mxu0 %vm496_vm2, %v12812_v36  ;;  %16329 = vst [vmem:[#allocation13_spill] sm:$0xff] %v12848_v46  ;;  %16330 = vst [vmem:[#allocation14_spill] sm:$0xff] %v12870_v52  ;;  %v12874_v54 = vsel %vm413_vm1, %v439_v47, %v440_v48  ;;  %v445_v56 = vrot.slane %v12861_v51, 1  ;;  %v12884_v58 = vld [vmem:[%s12719_s18 + $0xa8] sm:$0xff]  ;;  %v12887_v59 = vld [vmem:[%s12719_s18 + $0xb0] sm:$0xff]  ;;  %v447_v61 = vrot.slane %v12879_v57, 1 }
  0x1e   : > { %10418 = vmatprep.mubr.msk.f32.mxu1 %vm496_vm2, %v12801_v34  ;;  %10618 = vmatprep.mubr.msk.f32.mxu0 %vm496_vm2, %v12818_v38  ;;  %16331 = vst [vmem:[#allocation15_spill] sm:$0xff] %v12874_v54  ;;  %v12896_v60 = vsel %vm413_vm1, %v440_v48, %v442_v53  ;;  %v449_v63 = vrot.slane %v12884_v58, 1  ;;  %v450_v0 = vrot.slane %v12887_v59, 1  ;;  %v12905_v2 = vld [vmem:[%s12719_s18 + $0xb8] sm:$0x3]  ;;  %v12910_v3 = vld [vmem:[%s12719_s18 + $0xc0] sm:$0xff] }
  0x1f   : > { %16332 = vst [vmem:[#allocation16_spill] sm:$0xff] %v12896_v60  ;;  %v12900_v62 = vsel %vm413_vm1, %v444_v55, %v445_v56  ;;  %v12913_v7 = vld [vmem:[%s12719_s18 + $0xc8] sm:$0xff]  ;;  %v12922_v8 = vsel %vm413_vm1, %v445_v56, %v447_v61  ;;  %v452_v10 = vrot.slane %v12905_v2, 1  ;;  %v454_v13 = vrot.slane %v12910_v3, 1  ;;  %v12931_v19 = vld [vmem:[%s12719_s18 + $0xd0] sm:$0x3] }
  0x20   : > { %16333 = vst [vmem:[#allocation17_spill] sm:$0xff] %v12900_v62  ;;  %16334 = vst [vmem:[#allocation18_spill] sm:$0xff] %v12922_v8  ;;  %v12926_v12 = vsel %vm413_vm1, %v449_v63, %v450_v0  ;;  %v455_v17 = vrot.slane %v12913_v7, 1  ;;  %v457_v24 = vrot.slane %v12931_v19, 1  ;;  %v1088_v30 = vrot.slane %v12728_v6, 2  ;;  %v12951_v39 = vld [vmem:[%s12719_s18 + $0xd8] sm:$0xff] }
  0x21   : > { %10419 = vmatmul.mubr.msk.f32.gmra.mrb[4].mxu1 %vm496_vm2, %v12812_v36  ;;  %10619 = vmatmul.mubr.msk.f32.gmra.mrb[4].mxu0 %vm496_vm2, %v12844_v44  ;;  %16335 = vst [vmem:[#allocation19_spill] sm:$0xff] %v12926_v12  ;;  %v12942_v23 = vsel %vm413_vm1, %v450_v0, %v452_v10  ;;  %v1089_v37 = vrot.slane %v12733_v9, 2  ;;  %v12954_v40 = vld [vmem:[%s12719_s18 + $0xe0] sm:$0xff]  ;;  %v1091_v45 = vrot.slane %v12742_v14, 2  ;;  %v459_v48 = vrot.slane %v12951_v39, 1  ;;  %v12979_v63 = vld [vmem:[%s12719_s18 + $0xf0] sm:$0xff] }
  0x22   : > { %10421 = vmatprep.mubr.msk.f32.mxu1 %vm496_vm2, %v12818_v38  ;;  %10621 = vmatprep.mubr.msk.f32.mxu0 %vm496_vm2, %v12848_v46  ;;  %16336 = vst [vmem:[#allocation20_spill] sm:$0xff] %v12942_v23  ;;  %v12946_v29 = vsel %vm413_vm1, %v454_v13, %v455_v17  ;;  %v12966_v47 = vsel %vm413_vm1, %v455_v17, %v457_v24  ;;  %v460_v53 = vrot.slane %v12954_v40, 1  ;;  %v12971_v55 = vld [vmem:[%s12719_s18 + $0xe8] sm:$0x3]  ;;  %v1093_v61 = vrot.slane %v12745_v15, 2  ;;  %v12982_v0 = vld [vmem:[%s12719_s18 + $0xf8] sm:$0xff] }
  0x23   : > { %16337 = vst [vmem:[#allocation21_spill] sm:$0xff] %v12946_v29  ;;  %16338 = vst [vmem:[#allocation22_spill] sm:$0xff] %v12966_v47  ;;  %v12974_v56 = vsel %vm1082_vm3, %v1088_v30, %v1089_v37  ;;  %v1094_v14 = vrot.slane %v12752_v18, 2  ;;  %v462_v10 = vrot.slane %v12971_v55, 1  ;;  %v1096_v13 = vrot.slane %v12756_v20, 2 }
  0x24   : > { %16339 = vst [vmem:[#allocation23_spill] sm:$0xff] %v12974_v56  ;;  %v12995_v17 = vsel %vm1082_vm3, %v1089_v37, %v1091_v45  ;;  %v12998_v24 = vsel %vm413_vm1, %v459_v48, %v460_v53  ;;  %v464_v30 = vrot.slane %v12979_v63, 1  ;;  %v465_v28 = vrot.slane %v12982_v0, 1  ;;  %v13003_v21 = vld [vmem:[%s12719_s18 + $0x100] sm:$0x3]  ;;  %v13014_v37 = vld [vmem:[%s12719_s18 + $0x110] sm:$0xff] }
  0x25   : > { %10422 = vmatmul.mubr.msk.f32.gmra.mrb[6].mxu1 %vm496_vm2, %v12844_v44  ;;  %10622 = vmatmul.mubr.msk.f32.gmra.mrb[6].mxu0 %vm496_vm2, %v12870_v52  ;;  %16340 = vst [vmem:[#allocation24_spill] sm:$0xff] %v12995_v17  ;;  %16341 = vst [vmem:[#allocation25_spill] sm:$0xff] %v12998_v24  ;;  %v13006_v22 = vsel %vm1082_vm3, %v1093_v61, %v1094_v14  ;;  %v1098_v20 = vrot.slane %v12769_v25, 2  ;;  %v1099_v16 = vrot.slane %v12772_v26, 2  ;;  %v13021_v45 = vld [vmem:[%s16024_s1 + $0x1c] sm:$0xf] }
  0x26   : > { %10424 = vmatprep.mubr.msk.f32.mxu1 %vm496_vm2, %v12848_v46  ;;  %10624 = vmatprep.mubr.msk.f32.mxu0 %vm496_vm2, %v12874_v54  ;;  %16342 = vst [vmem:[#allocation26_spill] sm:$0xff] %v13006_v22  ;;  %v13028_v48 = vsel %vm413_vm1, %v460_v53, %v462_v10  ;;  %v13031_v61 = vsel %vm1082_vm3, %v1094_v14, %v1096_v13  ;;  %v470_v53 = vrot.slane %v13014_v37, 1  ;;  %v13045_v10 = vld [vmem:[%s12719_s18 + $0x118] sm:$0x3]  ;;  %v1103_v13 = vrot.slane %v12787_v31, 2 }
  0x27   : > { %16343 = vst [vmem:[#allocation27_spill] sm:$0xff] %v13028_v48  ;;  %16344 = vst [vmem:[#allocation28_spill] sm:$0xff] %v13031_v61  ;;  %v13048_v14 = vsel %vm1082_vm3, %v1098_v20, %v1099_v16  ;;  %v472_v20 = vrot.slane %v13045_v10, 1  ;;  %v13090_v46 = vld [vmem:[%s12719_s18 + $0x138] sm:$0xff]  ;;  %v1111_v44 = vrot.slane %v12853_v49, 2  ;;  %v1116_v34 = vrot.slane %v12879_v57, 2 }
  0x28   : > { %16346 = vst [vmem:[#allocation30_spill] sm:$0xff] %v13048_v14  ;;  %v479_v38 = vrot.slane %v13090_v46, 1  ;;  %v13117_v36 = vld [vmem:[%s12719_s18 + $0x148] sm:$0x3]  ;;  %v1118_v57 = vrot.slane %v12884_v58, 2 }
  0x29   : > { %10425 = vmatmul.mubr.msk.f32.gmra.mrb[8].mxu1 %vm496_vm2, %v12870_v52  ;;  %10625 = vmatmul.mubr.msk.f32.gmra.mrb[8].mxu0 %vm496_vm2, %v12896_v60  ;;  %v13082_v52 = vld [vmem:[%s12719_s18 + $0x130] sm:$0x3] }
  0x2a   : > { %10427 = vmatprep.mubr.msk.f32.mxu1 %vm496_vm2, %v12874_v54  ;;  %10627 = vmatprep.mubr.msk.f32.mxu0 %vm496_vm2, %v12900_v62 }
  0x2d   : > { %10428 = vmatmul.mubr.msk.f32.gmra.mrb[10].mxu1 %vm496_vm2, %v12896_v60  ;;  %10628 = vmatmul.mubr.msk.f32.gmra.mrb[10].mxu0 %vm496_vm2, %v12922_v8 }
  0x2e   : > { %10430 = vmatprep.mubr.msk.f32.mxu1 %vm496_vm2, %v12900_v62  ;;  %10630 = vmatprep.mubr.msk.f32.mxu0 %vm496_vm2, %v12926_v12  ;;  %v1106_v62 = vrot.slane %v12823_v41, 2  ;;  %v1108_v41 = vrot.slane %v12830_v42, 2 }
  0x31   : > { %10431 = vmatmul.mubr.msk.f32.gmra.mrb[12].mxu1 %vm496_vm2, %v12922_v8  ;;  %10631 = vmatmul.mubr.msk.f32.gmra.mrb[12].mxu0 %vm496_vm2, %v12942_v23  ;;  %v13053_v8 = vld [vmem:[%s12719_s18 + $0x120] sm:$0xff] }
  0x32   : > { %10433 = vmatprep.mubr.msk.f32.mxu1 %vm496_vm2, %v12926_v12  ;;  %10633 = vmatprep.mubr.msk.f32.mxu0 %vm496_vm2, %v12946_v29  ;;  %v1101_v12 = vrot.slane %v12775_v27, 2  ;;  %v474_v54 = vrot.slane %v13053_v8, 1 }
  0x34   : > { %v13074_v60 = vsel %vm1082_vm3, %v1099_v16, %v1101_v12  ;;  %v13093_v16 = vld [vmem:[%s12719_s18 + $0x140] sm:$0xff]  ;;  %v13102_v12 = vsel %vm413_vm1, %v470_v53, %v472_v20  ;;  %v13125_v20 = vld [vmem:[%s12719_s18 + $0x150] sm:$0xff] }
  0x35   : > { %10434 = vmatmul.mubr.msk.f32.gmra.mrb[14].mxu1 %vm496_vm2, %v12942_v23  ;;  %10634 = vmatmul.mubr.msk.f32.gmra.mrb[14].mxu0 %vm496_vm2, %v12966_v47  ;;  %v13039_v23 = vsel %vm413_vm1, %v464_v30, %v465_v28  ;;  %v13056_v30 = vld [vmem:[%s12719_s18 + $0x128] sm:$0xff]  ;;  %16348 = vst [vmem:[#allocation32_spill] sm:$0xff] %v13074_v60  ;;  %16351 = vst [vmem:[#allocation35_spill] sm:$0xff] %v13102_v12 }
  0x36   : > { %10436 = vmatprep.mubr.msk.f32.mxu1 %vm496_vm2, %v12946_v29  ;;  %10662 = vmatprep.mubr.msk.f32.mxu0 %vm496_vm2, %v12974_v56  ;;  %v13011_v29 = vld [vmem:[%s12719_s18 + $0x108] sm:$0xff]  ;;  %16345 = vst [vmem:[#allocation29_spill] sm:$0xff] %v13039_v23 }
  0x39   : > { %10437 = vmatmul.mubr.msk.f32.gmra.mrb[16].mxu1 %vm496_vm2, %v12966_v47  ;;  %10663 = vmatmul.mubr.msk.f32.vlgmr.msra.gmra.mrb[0].mxu0 %vm496_vm2, %v12995_v17  ;;  %v467_v47 = vrot.slane %v13003_v21, 1 }
  0x3a   : > { %10439 = vmatprep.mubr.msk.f32.mxu1 %vm496_vm2, %v12998_v24  ;;  %10711 = vmatpush3.msk.msra.mxu0 %vm561_vm0, %v12795_v33  ;;  %v469_v24 = vrot.slane %v13011_v29, 1  ;;  %v1104_v33 = vrot.slane %v12790_v32, 2 }
  0x3b   : > { %10665 = vmatprep.mubr.msk.f32.mxu0 %vm496_vm2, %v13006_v22  ;;  %10760 = vmatprep.subr.msk.mxu0 %vm561_vm0, %v13021_v45  ;;  %v13067_v27 = vsel %vm413_vm1, %v465_v28, %v467_v47  ;;  %v1109_v47 = vrot.slane %v12833_v43, 2 }
  0x3c   : > { %16347 = vst [vmem:[#allocation31_spill] sm:$0xff] %v13067_v27  ;;  %v13085_v28 = vsel %vm1082_vm3, %v1103_v13, %v1104_v33  ;;  %v477_v13 = vrot.slane %v13082_v52, 1 }
  0x3d   : > { %10440 = vmatmul.mubr.msk.f32.gmra.mrb[18].mxu1 %vm496_vm2, %v13028_v48  ;;  %10666 = vmatmul.mubr.msk.f32.gmra.mrb[2].mxu0 %vm496_vm2, %v13031_v61  ;;  %v13077_v48 = vsel %vm413_vm1, %v469_v24, %v470_v53  ;;  %16350 = vst [vmem:[#allocation34_spill] sm:$0xff] %v13085_v28  ;;  %v13105_v24 = vsel %vm1082_vm3, %v1104_v33, %v1106_v62  ;;  %v1113_v62 = vrot.slane %v12858_v50, 2  ;;  %v1114_v33 = vrot.slane %v12861_v51, 2  ;;  %v13187_v61 = vld [vmem:[%s12719_s18 + $0x178] sm:$0x3] }
  0x3e   : > { %10442 = vmatprep.mubr.msk.f32.mxu1 %vm496_vm2, %v13039_v23  ;;  %10668 = vmatprep.mubr.msk.f32.mxu0 %vm496_vm2, %v13048_v14  ;;  %16349 = vst [vmem:[#allocation33_spill] sm:$0xff] %v13077_v48  ;;  %v475_v23 = vrot.slane %v13056_v30, 1  ;;  %16352 = vst [vmem:[#allocation36_spill] sm:$0xff] %v13105_v24  ;;  %v13120_v53 = vsel %vm1082_vm3, %v1108_v41, %v1109_v47  ;;  %v482_v41 = vrot.slane %v13117_v36, 1 }
  0x3f   : > { %16354 = vst [vmem:[#allocation38_spill] sm:$0xff] %v13120_v53 }
  0x40   : > { %v13137_v49 = vsel %vm413_vm1, %v475_v23, %v477_v13  ;;  %v1119_v13 = vrot.slane %v12887_v59, 2 }
  0x41   : > { %10443 = vmatmul.mubr.msk.f32.gmra.mrb[20].mxu1 %vm496_vm2, %v13067_v27  ;;  %10669 = vmatmul.mubr.msk.f32.gmra.mrb[4].mxu0 %vm496_vm2, %v13074_v60  ;;  %v13111_v27 = vsel %vm413_vm1, %v474_v54, %v475_v23  ;;  %v13128_v54 = vld [vmem:[%s12719_s18 + $0x158] sm:$0xff]  ;;  %16355 = vst [vmem:[#allocation39_spill] sm:$0xff] %v13137_v49  ;;  %v13152_v60 = vld [vmem:[%s12719_s18 + $0x160] sm:$0x3]  ;;  %v13155_v23 = vsel %vm1082_vm3, %v1113_v62, %v1114_v33 }
  0x42   : > { %10445 = vmatprep.mubr.msk.f32.mxu1 %vm496_vm2, %v13077_v48  ;;  %10671 = vmatprep.mubr.msk.f32.mxu0 %vm496_vm2, %v13085_v28  ;;  %16353 = vst [vmem:[#allocation37_spill] sm:$0xff] %v13111_v27  ;;  %v480_v48 = vrot.slane %v13093_v16, 1  ;;  %v13144_v28 = vsel %vm1082_vm3, %v1109_v47, %v1111_v44  ;;  %16358 = vst [vmem:[#allocation42_spill] sm:$0xff] %v13155_v23  ;;  %v13163_v44 = vld [vmem:[%s12719_s18 + $0x170] sm:$0xff]  ;;  %v13175_v47 = vsel %vm1082_vm3, %v1114_v33, %v1116_v34 }
  0x43   : > { %16356 = vst [vmem:[#allocation40_spill] sm:$0xff] %v13144_v28  ;;  %16359 = vst [vmem:[#allocation43_spill] sm:$0xff] %v13163_v44  ;;  %v487_v62 = vrot.slane %v13152_v60, 1  ;;  %v1123_v34 = vrot.slane %v12910_v3, 2  ;;  %v1124_v33 = vrot.slane %v12913_v7, 2 }
  0x44   : > { %16361 = vst [vmem:[#allocation45_spill] sm:$0xff] %v13175_v47 }
  0x45   : > { %10446 = vmatmul.mubr.msk.f32.gmra.mrb[22].mxu1 %vm496_vm2, %v13102_v12  ;;  %10672 = vmatmul.mubr.msk.f32.gmra.mrb[6].mxu0 %vm496_vm2, %v13105_v24  ;;  %v13147_v12 = vsel %vm413_vm1, %v479_v38, %v480_v48  ;;  %v484_v24 = vrot.slane %v13125_v20, 1  ;;  %v13172_v38 = vsel %vm413_vm1, %v480_v48, %v482_v41  ;;  %v13190_v48 = vsel %vm1082_vm3, %v1118_v57, %v1119_v13 }
  0x46   : > { %10448 = vmatprep.mubr.msk.f32.mxu1 %vm496_vm2, %v13111_v27  ;;  %10674 = vmatprep.mubr.msk.f32.mxu0 %vm496_vm2, %v13120_v53  ;;  %16357 = vst [vmem:[#allocation41_spill] sm:$0xff] %v13147_v12  ;;  %v485_v27 = vrot.slane %v13128_v54, 1  ;;  %v13160_v53 = vld [vmem:[%s12719_s18 + $0x168] sm:$0xff]  ;;  %16360 = vst [vmem:[#allocation44_spill] sm:$0xff] %v13172_v38 }
  0x48   : > { %v13181_v14 = vsel %vm413_vm1, %v484_v24, %v485_v27  ;;  %v492_v24 = vrot.slane %v13187_v61, 1 }
  0x49   : > { %10449 = vmatmul.mubr.msk.f32.gmra.mrb[24].mxu1 %vm496_vm2, %v13137_v49  ;;  %10675 = vmatmul.mubr.msk.f32.gmra.mrb[8].mxu0 %vm496_vm2, %v13144_v28  ;;  %16362 = vst [vmem:[#allocation46_spill] sm:$0xff] %v13181_v14  ;;  %v1121_v49 = vrot.slane %v12905_v2, 2  ;;  %v489_v28 = vrot.slane %v13160_v53, 1  ;;  %v13201_v2 = vsel %vm413_vm1, %v485_v27, %v487_v62  ;;  %v1129_v27 = vrot.slane %v12954_v40, 2 }
  0x4a   : > { %10451 = vmatprep.mubr.msk.f32.mxu1 %vm496_vm2, %v13147_v12  ;;  %10677 = vmatprep.mubr.msk.f32.mxu0 %vm496_vm2, %v13155_v23  ;;  %v490_v12 = vrot.slane %v13163_v44, 1  ;;  %16363 = vst [vmem:[#allocation47_spill] sm:$0xff] %v13201_v2  ;;  %v1133_v62 = vrot.slane %v12979_v63, 2 }
  0x4b   : > { %v13207_v41 = vsel %vm1082_vm3, %v1119_v13, %v1121_v49  ;;  %v1131_v49 = vrot.slane %v12971_v55, 2 }
  0x4c   : > { %v13210_v57 = vsel %vm413_vm1, %v489_v28, %v490_v12  ;;  %v13225_v28 = vsel %vm413_vm1, %v490_v12, %v492_v24  ;;  %v13260_v24 = vld [vmem:[%s16024_s1 + $0xc] sm:$0xf] }
  0x4d   : > { %10452 = vmatmul.mubr.msk.f32.gmra.mrb[26].mxu1 %vm496_vm2, %v13172_v38  ;;  %10678 = vmatmul.mubr.msk.f32.gmra.mrb[10].mxu0 %vm496_vm2, %v13175_v47  ;;  %16364 = vst [vmem:[#allocation48_spill] sm:$0xff] %v13210_v57  ;;  %v1126_v38 = vrot.slane %v12931_v19, 2  ;;  %v13214_v47 = vsel %vm1082_vm3, %v1123_v34, %v1124_v33  ;;  %16366 = vst [vmem:[#allocation50_spill] sm:$0xff] %v13225_v28  ;;  %v1134_v34 = vrot.slane %v12982_v0, 2 }
  0x4e   : > { %10454 = vmatprep.mubr.msk.f32.mxu1 %vm496_vm2, %v13181_v14  ;;  %10680 = vmatprep.mubr.msk.f32.mxu0 %vm496_vm2, %v13190_v48  ;;  %16365 = vst [vmem:[#allocation49_spill] sm:$0xff] %v13214_v47  ;;  %v1128_v14 = vrot.slane %v12951_v39, 2  ;;  %v13247_v55 = vsel %vm1082_vm3, %v1129_v27, %v1131_v49 }
  0x4f   : > { %v13230_v19 = vsel %vm1082_vm3, %v1124_v33, %v1126_v38  ;;  %16369 = vst [vmem:[#allocation53_spill] sm:$0xff] %v13247_v55  ;;  %v13251_v12 = vsel %vm1082_vm3, %v1133_v62, %v1134_v34  ;;  %v1138_v38 = vrot.slane %v13011_v29, 2  ;;  %v1139_v33 = vrot.slane %v13014_v37, 2 }
  0x50   : > { %16367 = vst [vmem:[#allocation51_spill] sm:$0xff] %v13230_v19  ;;  %v13234_v13 = vsel %vm1082_vm3, %v1128_v14, %v1129_v27  ;;  %v1136_v14 = vrot.slane %v13003_v21, 2  ;;  %16370 = vst [vmem:[#allocation54_spill] sm:$0xff] %v13251_v12  ;;  %v1141_v27 = vrot.slane %v13045_v10, 2  ;;  %v1143_v62 = vrot.slane %v13053_v8, 2 }
  0x51   : > { %10455 = vmatmul.mubr.msk.f32.gmra.mrb[28].mxu1 %vm496_vm2, %v13201_v2  ;;  %10681 = vmatmul.mubr.msk.f32.gmra.mrb[12].mxu0 %vm496_vm2, %v13207_v41  ;;  %16368 = vst [vmem:[#allocation52_spill] sm:$0xff] %v13234_v13  ;;  %v13275_v49 = vsel %vm1082_vm3, %v1138_v38, %v1139_v33  ;;  %v1148_v38 = vrot.slane %v13090_v46, 2  ;;  %v1159_v2 = vrot.slane %v13163_v44, 2 }
  0x52   : > { %10457 = vmatprep.mubr.msk.f32.mxu1 %vm496_vm2, %v13210_v57  ;;  %10683 = vmatprep.mubr.msk.f32.mxu0 %vm496_vm2, %v13214_v47  ;;  %v13271_v21 = vsel %vm1082_vm3, %v1134_v34, %v1136_v14  ;;  %16372 = vst [vmem:[#allocation56_spill] sm:$0xff] %v13275_v49  ;;  %v13290_v10 = vsel %vm1082_vm3, %v1139_v33, %v1141_v27  ;;  %v1146_v34 = vrot.slane %v13082_v52, 2  ;;  %v1151_v33 = vrot.slane %v13117_v36, 2 }
  0x53   : > { %16371 = vst [vmem:[#allocation55_spill] sm:$0xff] %v13271_v21  ;;  %16373 = vst [vmem:[#allocation57_spill] sm:$0xff] %v13290_v10  ;;  %v1154_v57 = vrot.slane %v13128_v54, 2 }
  0x55   : > { %10458 = vmatmul.mubr.msk.f32.gmra.mrb[30].mxu1 %vm496_vm2, %v13225_v28  ;;  %10684 = vmatmul.mubr.msk.f32.gmra.mrb[14].mxu0 %vm496_vm2, %v13230_v19  ;;  %v1149_v28 = vrot.slane %v13093_v16, 2 }
  0x56   : > { %10462 = vmatprep.mubr.msk.f32.mxu1 %vm496_vm2, %v12722_v4  ;;  %10686 = vmatprep.mubr.msk.f32.mxu0 %vm496_vm2, %v13234_v13 }
  0x57   : > { %v13311_v27 = vsel %vm1082_vm3, %v1148_v38, %v1149_v28  ;;  %v13324_v36 = vsel %vm1082_vm3, %v1149_v28, %v1151_v33  ;;  %v1158_v38 = vrot.slane %v13160_v53, 2  ;;  %v1161_v28 = vrot.slane %v13187_v61, 2 }
  0x58   : > { %16376 = vst [vmem:[#allocation60_spill] sm:$0xff] %v13311_v27  ;;  %16377 = vst [vmem:[#allocation61_spill] sm:$0xff] %v13324_v36 }
  0x59   : > { %10463 = vmatmul.mubr.msk.f32.vlgmr.msra.gmra.mrb[0].mxu1 %vm496_vm2, %v12725_v5  ;;  %10687 = vmatmul.mubr.msk.f32.gmra.mrb[16].mxu0 %vm496_vm2, %v13247_v55  ;;  %v13351_v33 = vsel %vm1082_vm3, %v1158_v38, %v1159_v2  ;;  %v13367_v61 = vsel %vm1082_vm3, %v1159_v2, %v1161_v28  ;;  %v1084_v38 = vrot.slane %v12725_v5, 2  ;;  %v1086_v28 = vrot.slane %v12737_v11, 2  ;;  %v16386_v5 = vld [vmem:[#allocation28_spill] sm:$0xff]  ;;  %v16387_v11 = vld [vmem:[#allocation30_spill] sm:$0xff] }
  0x5a   : > { %10511 = vmatpush3.msk.msra.mxu1 %vm561_vm0, %v12806_v35  ;;  %10465 = vmatprep.mubr.msk.f32.mxu1 %vm496_vm2, %v12728_v6  ;;  %v1144_v35 = vrot.slane %v13056_v30, 2  ;;  %v13338_v6 = vld [vmem:[%s12719_s18 + $0x188] sm:$0xff]  ;;  %16380 = vst [vmem:[#allocation64_spill] sm:$0xff] %v13351_v33  ;;  %16381 = vst [vmem:[#allocation65_spill] sm:$0xff] %v13367_v61 }
  0x5b   : > { %10689 = vmatprep.mubr.msk.f32.mxu0 %vm496_vm2, %v13251_v12  ;;  %10560 = vmatprep.subr.msk.mxu1 %vm561_vm0, %v13260_v24 }
  0x5c   : > { %v13294_v14 = vsel %vm1082_vm3, %v1143_v62, %v1144_v35  ;;  %v13307_v52 = vsel %vm1082_vm3, %v1144_v35, %v1146_v34  ;;  %v1153_v62 = vrot.slane %v13125_v20, 2  ;;  %v1156_v35 = vrot.slane %v13152_v60, 2 }
  0x5d   : > { %10466 = vmatmul.mubr.msk.f32.gmra.mrb[2].mxu1 %vm496_vm2, %v12733_v9  ;;  %10690 = vmatmul.mubr.msk.f32.gmra.mrb[18].mxu0 %vm496_vm2, %v13271_v21  ;;  %16374 = vst [vmem:[#allocation58_spill] sm:$0xff] %v13294_v14  ;;  %16375 = vst [vmem:[#allocation59_spill] sm:$0xff] %v13307_v52  ;;  %v13335_v9 = vld [vmem:[%s12719_s18 + $0x180] sm:$0xff] }
  0x5e   : > { %10468 = vmatprep.mubr.msk.f32.mxu1 %vm496_vm2, %v12745_v15  ;;  %10692 = vmatprep.mubr.msk.f32.mxu0 %vm496_vm2, %v13275_v49  ;;  %v13328_v34 = vsel %vm1082_vm3, %v1153_v62, %v1154_v57  ;;  %v13347_v60 = vsel %vm1082_vm3, %v1154_v57, %v1156_v35  ;;  %v2029_v62 = vrot.slane %v13335_v9, 2 }
  0x5f   : > { %16378 = vst [vmem:[#allocation62_spill] sm:$0xff] %v13328_v34  ;;  %16379 = vst [vmem:[#allocation63_spill] sm:$0xff] %v13347_v60 }
  0x61   : > { %10469 = vmatmul.mubr.msk.f32.gmra.mrb[4].mxu1 %vm496_vm2, %v12752_v18  ;;  %10693 = vmatmul.mubr.msk.f32.gmra.mrb[20].mxu0 %vm496_vm2, %v13290_v10 }
  0x62   : > { %10471 = vmatprep.mubr.msk.f32.mxu1 %vm496_vm2, %v12769_v25  ;;  %10695 = vmatprep.mubr.msk.f32.mxu0 %vm496_vm2, %v13294_v14 }
  0x65   : > { %10472 = vmatmul.mubr.msk.f32.gmra.mrb[6].mxu1 %vm496_vm2, %v12772_v26  ;;  %10696 = vmatmul.mubr.msk.f32.gmra.mrb[22].mxu0 %vm496_vm2, %v13307_v52  ;;  %v13356_v52 = vld [vmem:[%s12719_s18 + $0x190] sm:$0x3] }
  0x66   : > { %10474 = vmatprep.mubr.msk.f32.mxu1 %vm496_vm2, %v12787_v31  ;;  %10698 = vmatprep.mubr.msk.f32.mxu0 %vm496_vm2, %v13311_v27  ;;  %v2030_v27 = vrot.slane %v13338_v6, 2  ;;  %v2032_v57 = vrot.slane %v13356_v52, 2 }
  0x68   : > { %v13371_v35 = vsel %vm1082_vm3, %v2029_v62, %v2030_v27  ;;  %v13382_v2 = vsel %vm1082_vm3, %v2030_v27, %v2032_v57  ;;  %v13397_v27 = vld [vmem:[%s16024_s1 + $0x20] sm:$0xf]  ;;  %v16389_v57 = vld [vmem:[#allocation34_spill] sm:$0xff] }
  0x69   : > { %10475 = vmatmul.mubr.msk.f32.gmra.mrb[8].mxu1 %vm496_vm2, %v12790_v32  ;;  %10699 = vmatmul.mubr.msk.f32.gmra.mrb[24].mxu0 %vm496_vm2, %v13324_v36  ;;  %16382 = vst [vmem:[#allocation66_spill] sm:$0xff] %v13371_v35  ;;  %16383 = vst [vmem:[#allocation67_spill] sm:$0xff] %v13382_v2 }
  0x6a   : > { %10477 = vmatprep.mubr.msk.f32.mxu1 %vm496_vm2, %v12830_v42  ;;  %10701 = vmatprep.mubr.msk.f32.mxu0 %vm496_vm2, %v13328_v34 }
  0x6d   : > { %10478 = vmatmul.mubr.msk.f32.gmra.mrb[10].mxu1 %vm496_vm2, %v12833_v43  ;;  %10702 = vmatmul.mubr.msk.f32.gmra.mrb[26].mxu0 %vm496_vm2, %v13347_v60 }
  0x6e   : > { %10480 = vmatprep.mubr.msk.f32.mxu1 %vm496_vm2, %v12858_v50  ;;  %10704 = vmatprep.mubr.msk.f32.mxu0 %vm496_vm2, %v13351_v33 }
  0x71   : > { %10481 = vmatmul.mubr.msk.f32.gmra.mrb[12].mxu1 %vm496_vm2, %v12861_v51  ;;  %10705 = vmatmul.mubr.msk.f32.gmra.mrb[28].mxu0 %vm496_vm2, %v13367_v61 }
  0x72   : > { %10483 = vmatprep.mubr.msk.f32.mxu1 %vm496_vm2, %v12884_v58  ;;  %10707 = vmatprep.mubr.msk.f32.mxu0 %vm496_vm2, %v13371_v35  ;;  %v16395_v35 = vld [vmem:[#allocation10_spill] sm:$0xff] }
  0x75   : > { %10484 = vmatmul.mubr.msk.f32.gmra.mrb[14].mxu1 %vm496_vm2, %v12887_v59  ;;  %10708 = vmatmul.mubr.msk.f32.gmra.mrb[30].mxu0 %vm496_vm2, %v13382_v2  ;;  %v13553_v2 = vld [vmem:[%s16026_s3 + $0x4] sm:$0xf] }
  0x76   : > { %10486 = vmatprep.mubr.msk.f32.mxu1 %vm496_vm2, %v12910_v3  ;;  %10712 = vmatprep.mubr.msk.f32.mxu0 %vm496_vm2, %v12745_v15 }
  0x79   : > { %10487 = vmatmul.mubr.msk.f32.gmra.mrb[16].mxu1 %vm496_vm2, %v12913_v7  ;;  %10713 = vmatmul.mubr.msk.f32.vlgmr.msra.gmra.mrb[0].mxu0 %vm496_vm2, %v12752_v18 }
  0x7a   : > { %10489 = vmatprep.mubr.msk.f32.mxu1 %vm496_vm2, %v12951_v39  ;;  %10761 = vmatpush3.msk.msra.mxu0 %vm561_vm0, %v13021_v45  ;;  %v1083_v45 = vrot.slane %v12722_v4, 2  ;;  %v13470_v4 = vsel %vm1082_vm3, %v1084_v38, %v1086_v28  ;;  %v16392_v28 = vld [vmem:[#allocation40_spill] sm:$0xff] }
  0x7b   : > { %10715 = vmatprep.mubr.msk.f32.mxu0 %vm496_vm2, %v12769_v25  ;;  %10810 = vmatprep.subr.msk.mxu0 %vm561_vm0, %v13397_v27  ;;  %16385 = vst [vmem:[#allocation69_spill] sm:$0xff] %v13470_v4 }
  0x7c   : > { %v13461_v62 = vsel %vm1082_vm3, %v1083_v45, %v1084_v38  ;;  %v16390_v45 = vld [vmem:[#allocation36_spill] sm:$0xff]  ;;  %v16391_v38 = vld [vmem:[#allocation38_spill] sm:$0xff] }
  0x7d   : > { %10490 = vmatmul.mubr.msk.f32.gmra.mrb[18].mxu1 %vm496_vm2, %v12954_v40  ;;  %10716 = vmatmul.mubr.msk.f32.gmra.mrb[2].mxu0 %vm496_vm2, %v12772_v26  ;;  %16384 = vst [vmem:[#allocation68_spill] sm:$0xff] %v13461_v62 }
  0x7e   : > { %10492 = vmatprep.mubr.msk.f32.mxu1 %vm496_vm2, %v12979_v63  ;;  %10718 = vmatprep.mubr.msk.f32.mxu0 %vm496_vm2, %v12787_v31 }
  0x81   : > { %10493 = vmatmul.mubr.msk.f32.gmra.mrb[20].mxu1 %vm496_vm2, %v12982_v0  ;;  %10719 = vmatmul.mubr.msk.f32.gmra.mrb[4].mxu0 %vm496_vm2, %v12790_v32 }
  0x82   : > { %10495 = vmatprep.mubr.msk.f32.mxu1 %vm496_vm2, %v13011_v29  ;;  %10721 = vmatprep.mubr.msk.f32.mxu0 %vm496_vm2, %v12830_v42 }
  0x85   : > { %10496 = vmatmul.mubr.msk.f32.gmra.mrb[22].mxu1 %vm496_vm2, %v13014_v37  ;;  %10722 = vmatmul.mubr.msk.f32.gmra.mrb[6].mxu0 %vm496_vm2, %v12833_v43 }
  0x86   : > { %10498 = vmatprep.mubr.msk.f32.mxu1 %vm496_vm2, %v13053_v8  ;;  %10724 = vmatprep.mubr.msk.f32.mxu0 %vm496_vm2, %v12858_v50 }
  0x89   : > { %10499 = vmatmul.mubr.msk.f32.gmra.mrb[24].mxu1 %vm496_vm2, %v13056_v30  ;;  %10725 = vmatmul.mubr.msk.f32.gmra.mrb[8].mxu0 %vm496_vm2, %v12861_v51 }
  0x8a   : > { %10501 = vmatprep.mubr.msk.f32.mxu1 %vm496_vm2, %v13090_v46  ;;  %10727 = vmatprep.mubr.msk.f32.mxu0 %vm496_vm2, %v12884_v58 }
  0x8d   : > { %10502 = vmatmul.mubr.msk.f32.gmra.mrb[26].mxu1 %vm496_vm2, %v13093_v16  ;;  %10728 = vmatmul.mubr.msk.f32.gmra.mrb[10].mxu0 %vm496_vm2, %v12887_v59 }
  0x8e   : > { %10504 = vmatprep.mubr.msk.f32.mxu1 %vm496_vm2, %v13125_v20  ;;  %10730 = vmatprep.mubr.msk.f32.mxu0 %vm496_vm2, %v12910_v3 }
  0x91   : > { %10505 = vmatmul.mubr.msk.f32.gmra.mrb[28].mxu1 %vm496_vm2, %v13128_v54  ;;  %10731 = vmatmul.mubr.msk.f32.gmra.mrb[12].mxu0 %vm496_vm2, %v12913_v7 }
  0x92   : > { %10507 = vmatprep.mubr.msk.f32.mxu1 %vm496_vm2, %v13160_v53  ;;  %10733 = vmatprep.mubr.msk.f32.mxu0 %vm496_vm2, %v12951_v39 }
  0x95   : > { %10508 = vmatmul.mubr.msk.f32.gmra.mrb[30].mxu1 %vm496_vm2, %v13163_v44  ;;  %10734 = vmatmul.mubr.msk.f32.gmra.mrb[14].mxu0 %vm496_vm2, %v12954_v40 }
  0x96   : > { %10512 = vmatprep.mubr.msk.f32.mxu1 %vm496_vm2, %v13461_v62  ;;  %10736 = vmatprep.mubr.msk.f32.mxu0 %vm496_vm2, %v12979_v63  ;;  %v16394_v62 = vld [vmem:[#allocation9_spill] sm:$0xff] }
  0x99   : > { %10513 = vmatmul.mubr.msk.f32.vlgmr.msra.gmra.mrb[0].mxu1 %vm496_vm2, %v13470_v4  ;;  %10737 = vmatmul.mubr.msk.f32.gmra.mrb[16].mxu0 %vm496_vm2, %v12982_v0  ;;  %v13538_v4 = vld [vmem:[%s12719_s18 + $0x1a0] sm:$0xff] }
  0x9a   : > { %10561 = vmatpush3.msk.msra.mxu1 %vm561_vm0, %v13260_v24  ;;  %10515 = vmatprep.mubr.msk.f32.mxu1 %vm496_vm2, %v12974_v56  ;;  %v16388_v24 = vld [vmem:[#allocation32_spill] sm:$0xff]  ;;  %v16393_v56 = vld [vmem:[#allocation45_spill] sm:$0xff] }
  0x9b   : > { %10739 = vmatprep.mubr.msk.f32.mxu0 %vm496_vm2, %v13011_v29  ;;  %11760 = vmatprep.subr.msk.mxu1 %vm561_vm0, %v12697_v1 }
  0x9d   : > { %10516 = vmatmul.mubr.msk.f32.gmra.mrb[2].mxu1 %vm496_vm2, %v12995_v17  ;;  %10740 = vmatmul.mubr.msk.f32.gmra.mrb[18].mxu0 %vm496_vm2, %v13014_v37  ;;  %v13527_v17 = vld [vmem:[%s12719_s18 + $0x198] sm:$0xff] }
  0x9e   : > { %10518 = vmatprep.mubr.msk.f32.mxu1 %vm496_vm2, %v13006_v22  ;;  %10742 = vmatprep.mubr.msk.f32.mxu0 %vm496_vm2, %v13053_v8 }
  0xa1   : > { %10519 = vmatmul.mubr.msk.f32.gmra.mrb[4].mxu1 %vm496_vm2, %v16386_v5  ;;  %10743 = vmatmul.mubr.msk.f32.gmra.mrb[20].mxu0 %vm496_vm2, %v13056_v30 }
  0xa2   : > { %10521 = vmatprep.mubr.msk.f32.mxu1 %vm496_vm2, %v16387_v11  ;;  %10745 = vmatprep.mubr.msk.f32.mxu0 %vm496_vm2, %v13090_v46 }
  0xa5   : > { %10522 = vmatmul.mubr.msk.f32.gmra.mrb[6].mxu1 %vm496_vm2, %v16388_v24  ;;  %10746 = vmatmul.mubr.msk.f32.gmra.mrb[22].mxu0 %vm496_vm2, %v13093_v16 }
  0xa6   : > { %10524 = vmatprep.mubr.msk.f32.mxu1 %vm496_vm2, %v16389_v57  ;;  %10748 = vmatprep.mubr.msk.f32.mxu0 %vm496_vm2, %v13125_v20 }
  0xa9   : > { %10525 = vmatmul.mubr.msk.f32.gmra.mrb[8].mxu1 %vm496_vm2, %v16390_v45  ;;  %10749 = vmatmul.mubr.msk.f32.gmra.mrb[24].mxu0 %vm496_vm2, %v13128_v54 }
  0xaa   : > { %10527 = vmatprep.mubr.msk.f32.mxu1 %vm496_vm2, %v16391_v38  ;;  %10751 = vmatprep.mubr.msk.f32.mxu0 %vm496_vm2, %v13160_v53 }
  0xad   : > { %10528 = vmatmul.mubr.msk.f32.gmra.mrb[10].mxu1 %vm496_vm2, %v16392_v28  ;;  %10752 = vmatmul.mubr.msk.f32.gmra.mrb[26].mxu0 %vm496_vm2, %v13163_v44  ;;  %v16396_v44 = vld [vmem:[#allocation11_spill] sm:$0xff] }
  0xae   : > { %10530 = vmatprep.mubr.msk.f32.mxu1 %vm496_vm2, %v13155_v23  ;;  %10754 = vmatprep.mubr.msk.f32.mxu0 %vm496_vm2, %v13335_v9 }
  0xb1   : > { %10531 = vmatmul.mubr.msk.f32.gmra.mrb[12].mxu1 %vm496_vm2, %v16393_v56  ;;  %10755 = vmatmul.mubr.msk.f32.gmra.mrb[28].mxu0 %vm496_vm2, %v13338_v6 }
  0xb2   : > { %10533 = vmatprep.mubr.msk.f32.mxu1 %vm496_vm2, %v13190_v48  ;;  %10757 = vmatprep.mubr.msk.f32.mxu0 %vm496_vm2, %v13527_v17 }
  0xb5   : > { %10534 = vmatmul.mubr.msk.f32.gmra.mrb[14].mxu1 %vm496_vm2, %v13207_v41  ;;  %10758 = vmatmul.mubr.msk.f32.gmra.mrb[30].mxu0 %vm496_vm2, %v13538_v4 }
  0xb6   : > { %10536 = vmatprep.mubr.msk.f32.mxu1 %vm496_vm2, %v13214_v47  ;;  %10762 = vmatprep.mubr.msk.f32.mxu0 %vm496_vm2, %v16394_v62  ;;  %v16397_v62 = vld [vmem:[#allocation12_spill] sm:$0xff] }
  0xb9   : > { %10537 = vmatmul.mubr.msk.f32.gmra.mrb[16].mxu1 %vm496_vm2, %v13230_v19  ;;  %10763 = vmatmul.mubr.msk.f32.vlgmr.msra.gmra.mrb[0].mxu0 %vm496_vm2, %v16395_v35  ;;  %v16398_v35 = vld [vmem:[#allocation13_spill] sm:$0xff] }
  0xba   : > { %10539 = vmatprep.mubr.msk.f32.mxu1 %vm496_vm2, %v13234_v13  ;;  %10811 = vmatpush3.msk.msra.mxu0 %vm561_vm0, %v13397_v27  ;;  %v16399_v27 = vld [vmem:[#allocation14_spill] sm:$0xff] }
  0xbb   : > { %10765 = vmatprep.mubr.msk.f32.mxu0 %vm496_vm2, %v16396_v44  ;;  %11310 = vmatprep.subr.msk.mxu0 %vm561_vm0, %v13553_v2  ;;  %v16400_v44 = vld [vmem:[#allocation15_spill] sm:$0xff] }
  0xbd   : > { %10540 = vmatmul.mubr.msk.f32.gmra.mrb[18].mxu1 %vm496_vm2, %v13247_v55  ;;  %10766 = vmatmul.mubr.msk.f32.gmra.mrb[2].mxu0 %vm496_vm2, %v16397_v62  ;;  %v16401_v62 = vld [vmem:[#allocation16_spill] sm:$0xff] }
  0xbe   : > { %10542 = vmatprep.mubr.msk.f32.mxu1 %vm496_vm2, %v13251_v12  ;;  %10768 = vmatprep.mubr.msk.f32.mxu0 %vm496_vm2, %v16398_v35  ;;  %v16402_v35 = vld [vmem:[#allocation17_spill] sm:$0xff] }
  0xc1   : > { %10543 = vmatmul.mubr.msk.f32.gmra.mrb[20].mxu1 %vm496_vm2, %v13271_v21  ;;  %10769 = vmatmul.mubr.msk.f32.gmra.mrb[4].mxu0 %vm496_vm2, %v16399_v27  ;;  %v16403_v21 = vld [vmem:[#allocation59_spill] sm:$0xff]  ;;  %v16404_v27 = vld [vmem:[#allocation18_spill] sm:$0xff] }
  0xc2   : > { %10545 = vmatprep.mubr.msk.f32.mxu1 %vm496_vm2, %v13275_v49  ;;  %10771 = vmatprep.mubr.msk.f32.mxu0 %vm496_vm2, %v16400_v44  ;;  %v16405_v49 = vld [vmem:[#allocation60_spill] sm:$0xff]  ;;  %v16406_v44 = vld [vmem:[#allocation19_spill] sm:$0xff] }
  0xc5   : > { %10546 = vmatmul.mubr.msk.f32.gmra.mrb[22].mxu1 %vm496_vm2, %v13290_v10  ;;  %10772 = vmatmul.mubr.msk.f32.gmra.mrb[6].mxu0 %vm496_vm2, %v16401_v62  ;;  %v16407_v62 = vld [vmem:[#allocation20_spill] sm:$0xff] }
  0xc6   : > { %10548 = vmatprep.mubr.msk.f32.mxu1 %vm496_vm2, %v13294_v14  ;;  %10774 = vmatprep.mubr.msk.f32.mxu0 %vm496_vm2, %v16402_v35  ;;  %v16408_v35 = vld [vmem:[#allocation21_spill] sm:$0xff] }
  0xc9   : > { %10549 = vmatmul.mubr.msk.f32.gmra.mrb[24].mxu1 %vm496_vm2, %v16403_v21  ;;  %10775 = vmatmul.mubr.msk.f32.gmra.mrb[8].mxu0 %vm496_vm2, %v16404_v27  ;;  %v16409_v27 = vld [vmem:[#allocation22_spill] sm:$0xff] }
  0xca   : > { %10551 = vmatprep.mubr.msk.f32.mxu1 %vm496_vm2, %v16405_v49  ;;  %10777 = vmatprep.mubr.msk.f32.mxu0 %vm496_vm2, %v16406_v44  ;;  %v16410_v44 = vld [vmem:[#allocation25_spill] sm:$0xff] }
  0xcd   : > { %10552 = vmatmul.mubr.msk.f32.gmra.mrb[26].mxu1 %vm496_vm2, %v13324_v36  ;;  %10778 = vmatmul.mubr.msk.f32.gmra.mrb[10].mxu0 %vm496_vm2, %v16407_v62  ;;  %v16411_v62 = vld [vmem:[#allocation27_spill] sm:$0xff]  ;;  %v13672_v36 = vld [vmem:[%s12719_s18 + $0x1a8] sm:$0x3] }
  0xce   : > { %10554 = vmatprep.mubr.msk.f32.mxu1 %vm496_vm2, %v13328_v34  ;;  %10780 = vmatprep.mubr.msk.f32.mxu0 %vm496_vm2, %v16408_v35  ;;  %v16412_v34 = vld [vmem:[#allocation3_spill] sm:$0xff]  ;;  %v16413_v35 = vld [vmem:[#allocation29_spill] sm:$0xff] }
  0xd1   : > { %10555 = vmatmul.mubr.msk.f32.gmra.mrb[28].mxu1 %vm496_vm2, %v13347_v60  ;;  %10781 = vmatmul.mubr.msk.f32.gmra.mrb[12].mxu0 %vm496_vm2, %v16409_v27  ;;  %v16414_v60 = vld [vmem:[#allocation4_spill] sm:$0xff]  ;;  %v16415_v27 = vld [vmem:[#allocation31_spill] sm:$0xff] }
  0xd2   : > { %10557 = vmatprep.mubr.msk.f32.mxu1 %vm496_vm2, %v13351_v33  ;;  %10783 = vmatprep.mubr.msk.f32.mxu0 %vm496_vm2, %v16410_v44  ;;  %v16423_v33 = vld [vmem:[#allocation47_spill] sm:$0xff] }
  0xd5   : > { %10558 = vmatmul.mubr.msk.f32.gmra.mrb[30].mxu1 %vm496_vm2, %v13367_v61  ;;  %10784 = vmatmul.mubr.msk.f32.gmra.mrb[14].mxu0 %vm496_vm2, %v16411_v62  ;;  %v16416_v61 = vld [vmem:[#allocation33_spill] sm:$0xff] }
  0xd6   : > { %10562 = vmatprep.mubr.msk.f32.mxu1 %vm496_vm2, %v16412_v34  ;;  %10786 = vmatprep.mubr.msk.f32.mxu0 %vm496_vm2, %v16413_v35  ;;  %v16417_v34 = vld [vmem:[#allocation35_spill] sm:$0xff] }
  0xd9   : > { %10563 = vmatmul.mubr.msk.f32.vlgmr.msra.gmra.mrb[0].mxu1 %vm496_vm2, %v16414_v60  ;;  %10787 = vmatmul.mubr.msk.f32.gmra.mrb[16].mxu0 %vm496_vm2, %v16415_v27  ;;  %v16418_v60 = vld [vmem:[#allocation37_spill] sm:$0xff] }
  0xda   : > { %11761 = vmatpush3.msk.msra.mxu1 %vm561_vm0, %v12697_v1  ;;  %10565 = vmatprep.mubr.msk.f32.mxu1 %vm496_vm2, %v12745_v15  ;;  %v16419_v1 = vld [vmem:[#allocation39_spill] sm:$0xff]  ;;  %v16420_v15 = vld [vmem:[#allocation41_spill] sm:$0xff] }
  0xdb   : > { %10789 = vmatprep.mubr.msk.f32.mxu0 %vm496_vm2, %v16416_v61 }
  0xdd   : > { %10566 = vmatmul.mubr.msk.f32.gmra.mrb[2].mxu1 %vm496_vm2, %v12752_v18  ;;  %10790 = vmatmul.mubr.msk.f32.gmra.mrb[18].mxu0 %vm496_vm2, %v16417_v34  ;;  %v16421_v18 = vld [vmem:[#allocation44_spill] sm:$0xff] }
  0xde   : > { %10568 = vmatprep.mubr.msk.f32.mxu1 %vm496_vm2, %v12769_v25  ;;  %10792 = vmatprep.mubr.msk.f32.mxu0 %vm496_vm2, %v16418_v60  ;;  %v16422_v25 = vld [vmem:[#allocation46_spill] sm:$0xff] }
  0xe1   : > { %10569 = vmatmul.mubr.msk.f32.gmra.mrb[4].mxu1 %vm496_vm2, %v12772_v26  ;;  %10793 = vmatmul.mubr.msk.f32.gmra.mrb[20].mxu0 %vm496_vm2, %v16419_v1  ;;  %v1758_v26 = vrot.slane %v13335_v9, 1 }
  0xe2   : > { %10571 = vmatprep.mubr.msk.f32.mxu1 %vm496_vm2, %v12787_v31  ;;  %10795 = vmatprep.mubr.msk.f32.mxu0 %vm496_vm2, %v16420_v15  ;;  %v1759_v31 = vrot.slane %v13338_v6, 1 }
  0xe4   : > { %v13669_v15 = vsel %vm413_vm1, %v1758_v26, %v1759_v31 }
  0xe5   : > { %10572 = vmatmul.mubr.msk.f32.gmra.mrb[6].mxu1 %vm496_vm2, %v12790_v32  ;;  %10796 = vmatmul.mubr.msk.f32.gmra.mrb[22].mxu0 %vm496_vm2, %v16421_v18  ;;  %v16424_v32 = vld [vmem:[#allocation48_spill] sm:$0xff]  ;;  %v2570_v18 = vrot.slane %v13538_v4, 1  ;;  %16425 = vst [vmem:[#allocation45_spill] sm:$0xff] %v13669_v15 }
  0xe6   : > { %10574 = vmatprep.mubr.msk.f32.mxu1 %vm496_vm2, %v12830_v42  ;;  %10798 = vmatprep.mubr.msk.f32.mxu0 %vm496_vm2, %v16422_v25  ;;  %v1761_v42 = vrot.slane %v13356_v52, 1  ;;  %v2569_v25 = vrot.slane %v13527_v17, 1  ;;  %v2572_v52 = vrot.slane %v13672_v36, 1 }
  0xe8   : > { %v13687_v26 = vsel %vm413_vm1, %v2569_v25, %v2570_v18  ;;  %v16446_v25 = vld [vmem:[#allocation7_spill] sm:$0xff] }
  0xe9   : > { %10575 = vmatmul.mubr.msk.f32.gmra.mrb[8].mxu1 %vm496_vm2, %v12833_v43  ;;  %10799 = vmatmul.mubr.msk.f32.gmra.mrb[24].mxu0 %vm496_vm2, %v16423_v33  ;;  %v16426_v43 = vld [vmem:[#allocation50_spill] sm:$0xff]  ;;  %16428 = vst [vmem:[#allocation4_spill] sm:$0xff] %v13687_v26 }
  0xea   : > { %10577 = vmatprep.mubr.msk.f32.mxu1 %vm496_vm2, %v12858_v50  ;;  %10801 = vmatprep.mubr.msk.f32.mxu0 %vm496_vm2, %v16424_v32  ;;  %v13683_v50 = vsel %vm413_vm1, %v1759_v31, %v1761_v42  ;;  %v16447_v31 = vld [vmem:[#allocation6_spill] sm:$0xff] }
  0xeb   : > { %16427 = vst [vmem:[#allocation3_spill] sm:$0xff] %v13683_v50  ;;  %v8913_v42 = vld [vmem:[%s16025_s2 + $0x8] sm:$0xff] }
  0xec   : > { %10860 = vmatprep.subr.mxu1 %v8913_v42 }
  0xed   : > { %10578 = vmatmul.mubr.msk.f32.gmra.mrb[10].mxu1 %vm496_vm2, %v12861_v51  ;;  %10802 = vmatmul.mubr.msk.f32.gmra.mrb[26].mxu0 %vm496_vm2, %v16426_v43  ;;  %v13698_v51 = vsel %vm413_vm1, %v2570_v18, %v2572_v52  ;;  %v13855_v18 = vld [vmem:[%s16026_s3 + $0x8] sm:$0xf]  ;;  %v16448_v52 = vld [vmem:[#allocation8_spill] sm:$0xff] }
  0xee   : > { %10580 = vmatprep.mubr.msk.f32.mxu1 %vm496_vm2, %v12884_v58  ;;  %10804 = vmatprep.mubr.msk.f32.mxu0 %vm496_vm2, %v13669_v15  ;;  %16429 = vst [vmem:[#allocation70_spill] sm:$0xff] %v13698_v51  ;;  %v13713_v58 = vld [vmem:[%s16026_s3] sm:$0xf] }
  0xf1   : > { %10581 = vmatmul.mubr.msk.f32.gmra.mrb[12].mxu1 %vm496_vm2, %v12887_v59  ;;  %10805 = vmatmul.mubr.msk.f32.gmra.mrb[28].mxu0 %vm496_vm2, %v13683_v50  ;;  %v16431_v59 = vld [vmem:[#allocation55_spill] sm:$0xff] }
  0xf2   : > { %10583 = vmatprep.mubr.msk.f32.mxu1 %vm496_vm2, %v12910_v3  ;;  %10807 = vmatprep.mubr.msk.f32.mxu0 %vm496_vm2, %v13687_v26  ;;  %v16434_v3 = vld [vmem:[#allocation41_spill] sm:$0xff]  ;;  %v16459_v26 = vld [vmem:[#allocation19_spill] sm:$0xff] }
  0xf5   : > { %10584 = vmatmul.mubr.msk.f32.gmra.mrb[14].mxu1 %vm496_vm2, %v12913_v7  ;;  %10808 = vmatmul.mubr.msk.f32.gmra.mrb[30].mxu0 %vm496_vm2, %v13698_v51  ;;  %v16435_v7 = vld [vmem:[#allocation62_spill] sm:$0xff] }
  0xf6   : > { %10586 = vmatprep.mubr.msk.f32.mxu1 %vm496_vm2, %v12951_v39  ;;  %10812 = vmatprep.mubr.msk.f32.mxu0 %vm496_vm2, %v13006_v22  ;;  %v16438_v39 = vld [vmem:[#allocation46_spill] sm:$0xff] }
  0xf7   : > { %v16458_v51 = vld [vmem:[#allocation18_spill] sm:$0xff] }
  0xf9   : > { %10587 = vmatmul.mubr.msk.f32.gmra.mrb[16].mxu1 %vm496_vm2, %v12954_v40  ;;  %10813 = vmatmul.mubr.msk.f32.vlgmr.msra.gmra.mrb[0].mxu0 %vm496_vm2, %v16386_v5  ;;  %v16439_v40 = vld [vmem:[#allocation64_spill] sm:$0xff] }
  0xfa   : > { %10589 = vmatprep.mubr.msk.f32.mxu1 %vm496_vm2, %v12979_v63  ;;  %10815 = vmatprep.mubr.msk.f32.mxu0 %vm496_vm2, %v16387_v11  ;;  %v2840_v63 = vrot.slane %v13527_v17, 2  ;;  %v16443_v17 = vld [vmem:[#allocation67_spill] sm:$0xff] }
  0xfb   : > { %11311 = vmatpush3.msk.msra.mxu0 %vm561_vm0, %v13553_v2 }
  0xfc   : > { %11360 = vmatprep.subr.msk.mxu0 %vm561_vm0, %v13713_v58 }
  0xfd   : > { %10590 = vmatmul.mubr.msk.f32.gmra.mrb[18].mxu1 %vm496_vm2, %v12982_v0  ;;  %10816 = vmatmul.mubr.msk.f32.gmra.mrb[2].mxu0 %vm496_vm2, %v16388_v24  ;;  %v2841_v0 = vrot.slane %v13538_v4, 2 }
  0xfe   : > { %10592 = vmatprep.mubr.msk.f32.mxu1 %vm496_vm2, %v13011_v29  ;;  %10818 = vmatprep.mubr.msk.f32.mxu0 %vm496_vm2, %v16389_v57  ;;  %v16437_v29 = vld [vmem:[#allocation63_spill] sm:$0xff] }
  0xff   : > { %v13833_v2 = vsel %vm1082_vm3, %v2840_v63, %v2841_v0  ;;  %v16449_v63 = vld [vmem:[#allocation9_spill] sm:$0xff] }
 0x101   : > { %10593 = vmatmul.mubr.msk.f32.gmra.mrb[20].mxu1 %vm496_vm2, %v13014_v37  ;;  %10819 = vmatmul.mubr.msk.f32.gmra.mrb[4].mxu0 %vm496_vm2, %v16390_v45  ;;  %v16440_v37 = vld [vmem:[#allocation65_spill] sm:$0xff] }
 0x102   : > { %10595 = vmatprep.mubr.msk.f32.mxu1 %vm496_vm2, %v13053_v8  ;;  %10821 = vmatprep.mubr.msk.f32.mxu0 %vm496_vm2, %v16391_v38  ;;  %v16436_v8 = vld [vmem:[#allocation44_spill] sm:$0xff] }
 0x105   : > { %10596 = vmatmul.mubr.msk.f32.gmra.mrb[22].mxu1 %vm496_vm2, %v13056_v30  ;;  %10822 = vmatmul.mubr.msk.f32.gmra.mrb[6].mxu0 %vm496_vm2, %v16392_v28  ;;  %v16441_v30 = vld [vmem:[#allocation66_spill] sm:$0xff] }
 0x106   : > { %10598 = vmatprep.mubr.msk.f32.mxu1 %vm496_vm2, %v13090_v46  ;;  %10824 = vmatprep.mubr.msk.f32.mxu0 %vm496_vm2, %v13155_v23  ;;  %v16430_v46 = vld [vmem:[#allocation43_spill] sm:$0xff] }
 0x107   : > { %16442 = vst [vmem:[#allocation43_spill] sm:$0xff] %v13833_v2 }
 0x109   : > { %10599 = vmatmul.mubr.msk.f32.gmra.mrb[24].mxu1 %vm496_vm2, %v13093_v16  ;;  %10825 = vmatmul.mubr.msk.f32.gmra.mrb[8].mxu0 %vm496_vm2, %v16393_v56  ;;  %v2843_v16 = vrot.slane %v13672_v36, 2  ;;  %v16445_v36 = vld [vmem:[#allocation5_spill] sm:$0xff] }
 0x10a   : > { %10601 = vmatprep.mubr.msk.f32.mxu1 %vm496_vm2, %v13125_v20  ;;  %10827 = vmatprep.mubr.msk.f32.mxu0 %vm496_vm2, %v13190_v48 }
 0x10b   : > { %v13844_v4 = vsel %vm1082_vm3, %v2841_v0, %v2843_v16  ;;  %v16450_v0 = vld [vmem:[#allocation10_spill] sm:$0xff]  ;;  %v16451_v16 = vld [vmem:[#allocation11_spill] sm:$0xff] }
 0x10c   : > { %16444 = vst [vmem:[#allocation71_spill] sm:$0xff] %v13844_v4 }
 0x10d   : > { %10602 = vmatmul.mubr.msk.f32.gmra.mrb[26].mxu1 %vm496_vm2, %v13128_v54  ;;  %10828 = vmatmul.mubr.msk.f32.gmra.mrb[10].mxu0 %vm496_vm2, %v13207_v41 }
 0x10e   : > { %10604 = vmatprep.mubr.msk.f32.mxu1 %vm496_vm2, %v13160_v53  ;;  %10830 = vmatprep.mubr.msk.f32.mxu0 %vm496_vm2, %v13214_v47 }
 0x111   : > { %10605 = vmatmul.mubr.msk.f32.gmra.mrb[28].mxu1 %vm496_vm2, %v16430_v46  ;;  %10831 = vmatmul.mubr.msk.f32.gmra.mrb[12].mxu0 %vm496_vm2, %v13230_v19 }
 0x112   : > { %10607 = vmatprep.mubr.msk.f32.mxu1 %vm496_vm2, %v13335_v9  ;;  %10833 = vmatprep.mubr.msk.f32.mxu0 %vm496_vm2, %v13234_v13  ;;  %v16432_v9 = vld [vmem:[#allocation56_spill] sm:$0xff] }
 0x115   : > { %10608 = vmatmul.mubr.msk.f32.gmra.mrb[30].mxu1 %vm496_vm2, %v13338_v6  ;;  %10834 = vmatmul.mubr.msk.f32.gmra.mrb[14].mxu0 %vm496_vm2, %v13247_v55  ;;  %v16433_v6 = vld [vmem:[#allocation61_spill] sm:$0xff] }
 0x116   : > { %10636 = vmatprep.mubr.msk.f32.mxu1 %vm496_vm2, %v16410_v44  ;;  %10836 = vmatprep.mubr.msk.f32.mxu0 %vm496_vm2, %v13251_v12 }
 0x119   : > { %10637 = vmatmul.mubr.msk.f32.vlgmr.msra.gmra.mrb[16].mxu1 %vm496_vm2, %v16411_v62  ;;  %10837 = vmatmul.mubr.msk.f32.gmra.mrb[16].mxu0 %vm496_vm2, %v16431_v59 }
 0x11a   : > { %10639 = vmatprep.mubr.msk.f32.mxu1 %vm496_vm2, %v16413_v35  ;;  %10839 = vmatprep.mubr.msk.f32.mxu0 %vm496_vm2, %v16432_v9 }
 0x11b   : > { %10861 = vmatpush3.msra.mxu1 %v8913_v42  ;;  %v16457_v42 = vld [vmem:[#allocation17_spill] sm:$0xff] }
 0x11d   : > { %10640 = vmatmul.mubr.msk.f32.gmra.mrb[18].mxu1 %vm496_vm2, %v16415_v27  ;;  %10840 = vmatmul.mubr.msk.f32.gmra.mrb[18].mxu0 %vm496_vm2, %v13290_v10 }
 0x11e   : > { %10642 = vmatprep.mubr.msk.f32.mxu1 %vm496_vm2, %v16416_v61  ;;  %10842 = vmatprep.mubr.msk.f32.mxu0 %vm496_vm2, %v13294_v14 }
 0x121   : > { %10643 = vmatmul.mubr.msk.f32.gmra.mrb[20].mxu1 %vm496_vm2, %v16417_v34  ;;  %10843 = vmatmul.mubr.msk.f32.gmra.mrb[20].mxu0 %vm496_vm2, %v16403_v21 }
 0x122   : > { %10645 = vmatprep.mubr.msk.f32.mxu1 %vm496_vm2, %v16418_v60  ;;  %10845 = vmatprep.mubr.msk.f32.mxu0 %vm496_vm2, %v16405_v49 }
 0x125   : > { %10646 = vmatmul.mubr.msk.f32.gmra.mrb[22].mxu1 %vm496_vm2, %v16419_v1  ;;  %10846 = vmatmul.mubr.msk.f32.gmra.mrb[22].mxu0 %vm496_vm2, %v16433_v6 }
 0x126   : > { %10648 = vmatprep.mubr.msk.f32.mxu1 %vm496_vm2, %v16434_v3  ;;  %10848 = vmatprep.mubr.msk.f32.mxu0 %vm496_vm2, %v16435_v7 }
 0x129   : > { %10649 = vmatmul.mubr.msk.f32.gmra.mrb[24].mxu1 %vm496_vm2, %v16436_v8  ;;  %10849 = vmatmul.mubr.msk.f32.gmra.mrb[24].mxu0 %vm496_vm2, %v16437_v29 }
 0x12a   : > { %10651 = vmatprep.mubr.msk.f32.mxu1 %vm496_vm2, %v16438_v39  ;;  %10851 = vmatprep.mubr.msk.f32.mxu0 %vm496_vm2, %v16439_v40 }
 0x12d   : > { %10652 = vmatmul.mubr.msk.f32.gmra.mrb[26].mxu1 %vm496_vm2, %v16423_v33  ;;  %10852 = vmatmul.mubr.msk.f32.gmra.mrb[26].mxu0 %vm496_vm2, %v16440_v37 }
 0x12e   : > { %10654 = vmatprep.mubr.msk.f32.mxu1 %vm496_vm2, %v16424_v32  ;;  %10854 = vmatprep.mubr.msk.f32.mxu0 %vm496_vm2, %v16441_v30  ;;  %v16460_v30 = vld [vmem:[#allocation20_spill] sm:$0xff] }
 0x131   : > { %10655 = vmatmul.mubr.msk.f32.gmra.mrb[28].mxu1 %vm496_vm2, %v16426_v43  ;;  %10855 = vmatmul.mubr.msk.f32.gmra.mrb[28].mxu0 %vm496_vm2, %v16443_v17  ;;  %v12637_v17 = vmov 0.0  }
 0x132   : > { %10657 = vmatprep.mubr.msk.f32.mxu1 %vm496_vm2, %v13669_v15  ;;  %10857 = vmatprep.mubr.msk.f32.mxu0 %vm496_vm2, %v13833_v2  ;;  %v16456_v2 = vld [vmem:[#allocation16_spill] sm:$0xff]  ;;  %3225 = vst.msk [vmem:[#allocation2 + $0x20] sm:$0xff] %vm3219_vm4, %v12637_v17  ;;  %3220 = vst.msk [vmem:[#allocation2] sm:$0xff] %vm3219_vm4, %v12637_v17  ;;  %v16462_v15 = vld [vmem:[#allocation22_spill] sm:$0xff] }
 0x133   : > { %3221 = vst.msk [vmem:[#allocation2 + $0x8] sm:$0xff] %vm3219_vm4, %v12637_v17  ;;  %3224 = vst.msk [vmem:[#allocation2 + $0x18] sm:$0xff] %vm3219_vm4, %v12637_v17 }
 0x134   : > { %3227 = vst.msk [vmem:[#allocation2 + $0x30] sm:$0xff] %vm3219_vm4, %v12637_v17  ;;  %3228 = vst.msk [vmem:[#allocation2 + $0x38] sm:$0xff] %vm3219_vm4, %v12637_v17 }
 0x135   : > { %10658 = vmatmul.mubr.msk.f32.gmra.mrb[30].mxu1 %vm496_vm2, %v13683_v50  ;;  %10858 = vmatmul.mubr.msk.f32.gmra.mrb[30].mxu0 %vm496_vm2, %v13844_v4  ;;  %v16455_v4 = vld [vmem:[#allocation15_spill] sm:$0xff]  ;;  %3230 = vst.msk [vmem:[#allocation2 + $0x48] sm:$0xff] %vm3219_vm4, %v12637_v17  ;;  %3231 = vst.msk [vmem:[#allocation2 + $0x50] sm:$0xff] %vm3219_vm4, %v12637_v17  ;;  %v16461_v50 = vld [vmem:[#allocation21_spill] sm:$0xff] }
 0x136   : > { %11312 = vmatprep.mubr.msk.f32.mxu0 %vm496_vm2, %v16445_v36  ;;  %v16453_v36 = vld [vmem:[#allocation13_spill] sm:$0xff]  ;;  %3233 = vst.msk [vmem:[#allocation2 + $0x60] sm:$0xff] %vm3219_vm4, %v12637_v17  ;;  %3234 = vst.msk [vmem:[#allocation2 + $0x68] sm:$0xff] %vm3219_vm4, %v12637_v17 }
 0x137   : > { %3236 = vst.msk [vmem:[#allocation2 + $0x78] sm:$0xff] %vm3219_vm4, %v12637_v17  ;;  %3237 = vst.msk [vmem:[#allocation2 + $0x80] sm:$0xff] %vm3219_vm4, %v12637_v17 }
 0x138   : > { %3239 = vst.msk [vmem:[#allocation2 + $0x90] sm:$0xff] %vm3219_vm4, %v12637_v17  ;;  %3240 = vst.msk [vmem:[#allocation2 + $0x98] sm:$0xff] %vm3219_vm4, %v12637_v17 }
 0x139   : > { %11313 = vmatmul.mubr.msk.f32.vlgmr.msra.gmra.mrb[32].mxu0 %vm496_vm2, %v16446_v25  ;;  %v16454_v25 = vld [vmem:[#allocation14_spill] sm:$0xff]  ;;  %3242 = vst.msk [vmem:[#allocation2 + $0xa8] sm:$0xff] %vm3219_vm4, %v12637_v17  ;;  %3243 = vst.msk [vmem:[#allocation2 + $0xb0] sm:$0xff] %vm3219_vm4, %v12637_v17 }
 0x13a   : > { %11315 = vmatprep.mubr.msk.f32.mxu0 %vm496_vm2, %v16447_v31  ;;  %11361 = vmatpush3.msk.msra.mxu0 %vm561_vm0, %v13713_v58  ;;  %v16452_v58 = vld [vmem:[#allocation12_spill] sm:$0xff]  ;;  %3245 = vst.msk [vmem:[#allocation2 + $0xc0] sm:$0xff] %vm3219_vm4, %v12637_v17  ;;  %3246 = vst.msk [vmem:[#allocation2 + $0xc8] sm:$0xff] %vm3219_vm4, %v12637_v17  ;;  %v14138_v31 = vld [vmem:[%s12719_s18 + $0x140] sm:$0xff] }
 0x13b   : > { %11410 = vmatprep.subr.msk.mxu0 %vm561_vm0, %v13855_v18  ;;  %3248 = vst.msk [vmem:[#allocation2 + $0xd8] sm:$0xff] %vm3219_vm4, %v12637_v17  ;;  %3249 = vst.msk [vmem:[#allocation2 + $0xe0] sm:$0xff] %vm3219_vm4, %v12637_v17 }
 0x13c   : > { %3251 = vst.msk [vmem:[#allocation2 + $0xf0] sm:$0xff] %vm3219_vm4, %v12637_v17  ;;  %3252 = vst.msk [vmem:[#allocation2 + $0xf8] sm:$0xff] %vm3219_vm4, %v12637_v17 }
 0x13d   : > { %11316 = vmatmul.mubr.msk.f32.gmra.mrb[34].mxu0 %vm496_vm2, %v16448_v52  ;;  %3254 = vst.msk [vmem:[#allocation2 + $0x108] sm:$0xff] %vm3219_vm4, %v12637_v17  ;;  %3255 = vst.msk [vmem:[#allocation2 + $0x110] sm:$0xff] %vm3219_vm4, %v12637_v17 }
 0x13e   : > { %11318 = vmatprep.mubr.msk.f32.mxu0 %vm496_vm2, %v16449_v63  ;;  %3257 = vst.msk [vmem:[#allocation2 + $0x120] sm:$0xff] %vm3219_vm4, %v12637_v17  ;;  %3258 = vst.msk [vmem:[#allocation2 + $0x128] sm:$0xff] %vm3219_vm4, %v12637_v17 }
 0x13f   : > { %3260 = vst.msk [vmem:[#allocation2 + $0x138] sm:$0xff] %vm3219_vm4, %v12637_v17  ;;  %3261 = vst.msk [vmem:[#allocation2 + $0x140] sm:$0xff] %vm3219_vm4, %v12637_v17 }
 0x140   : > { %3263 = vst.msk [vmem:[#allocation2 + $0x150] sm:$0xff] %vm3219_vm4, %v12637_v17  ;;  %3264 = vst.msk [vmem:[#allocation2 + $0x158] sm:$0xff] %vm3219_vm4, %v12637_v17 }
 0x141   : > { %11319 = vmatmul.mubr.msk.f32.gmra.mrb[36].mxu0 %vm496_vm2, %v16450_v0  ;;  %3266 = vst.msk [vmem:[#allocation2 + $0x168] sm:$0xff] %vm3219_vm4, %v12637_v17  ;;  %3267 = vst.msk [vmem:[#allocation2 + $0x170] sm:$0xff] %vm3219_vm4, %v12637_v17  ;;  %v14133_v0 = vld [vmem:[%s12719_s18 + $0x138] sm:$0xff] }
 0x142   : > { %11321 = vmatprep.mubr.msk.f32.mxu0 %vm496_vm2, %v16451_v16  ;;  %3269 = vst.msk [vmem:[#allocation2 + $0x180] sm:$0xff] %vm3219_vm4, %v12637_v17  ;;  %3270 = vst.msk [vmem:[#allocation2 + $0x188] sm:$0xff] %vm3219_vm4, %v12637_v17  ;;  %v14128_v16 = vld [vmem:[%s12719_s18 + $0x128] sm:$0xff] }
 0x143   : > { %3272 = vst.msk [vmem:[#allocation2 + $0x198] sm:$0xff] %vm3219_vm4, %v12637_v17  ;;  %3273 = vst.msk [vmem:[#allocation2 + $0x1a0] sm:$0xff] %vm3219_vm4, %v12637_v17 }
 0x144   : > { %3226 = vst.msk [vmem:[#allocation2 + $0x28] sm:$0x3] %vm3222_vm5, %v12637_v17  ;;  %3223 = vst.msk [vmem:[#allocation2 + $0x10] sm:$0x3] %vm3222_vm5, %v12637_v17 }
 0x145   : > { %11322 = vmatmul.mubr.msk.f32.gmra.mrb[38].mxu0 %vm496_vm2, %v16452_v58  ;;  %3229 = vst.msk [vmem:[#allocation2 + $0x40] sm:$0x3] %vm3222_vm5, %v12637_v17  ;;  %3232 = vst.msk [vmem:[#allocation2 + $0x58] sm:$0x3] %vm3222_vm5, %v12637_v17  ;;  %v14123_v58 = vld [vmem:[%s12719_s18 + $0x120] sm:$0xff] }
 0x146   : > { %11324 = vmatprep.mubr.msk.f32.mxu0 %vm496_vm2, %v16453_v36  ;;  %3235 = vst.msk [vmem:[#allocation2 + $0x70] sm:$0x3] %vm3222_vm5, %v12637_v17  ;;  %3238 = vst.msk [vmem:[#allocation2 + $0x88] sm:$0x3] %vm3222_vm5, %v12637_v17  ;;  %v14118_v36 = vld [vmem:[%s12719_s18 + $0x110] sm:$0xff] }
 0x147   : > { %3241 = vst.msk [vmem:[#allocation2 + $0xa0] sm:$0x3] %vm3222_vm5, %v12637_v17  ;;  %3244 = vst.msk [vmem:[#allocation2 + $0xb8] sm:$0x3] %vm3222_vm5, %v12637_v17 }
 0x148   : > { %3247 = vst.msk [vmem:[#allocation2 + $0xd0] sm:$0x3] %vm3222_vm5, %v12637_v17  ;;  %3250 = vst.msk [vmem:[#allocation2 + $0xe8] sm:$0x3] %vm3222_vm5, %v12637_v17 }
 0x149   : > { %11325 = vmatmul.mubr.msk.f32.gmra.mrb[40].mxu0 %vm496_vm2, %v16454_v25  ;;  %3253 = vst.msk [vmem:[#allocation2 + $0x100] sm:$0x3] %vm3222_vm5, %v12637_v17  ;;  %3256 = vst.msk [vmem:[#allocation2 + $0x118] sm:$0x3] %vm3222_vm5, %v12637_v17  ;;  %v14113_v25 = vld [vmem:[%s12719_s18 + $0x108] sm:$0xff] }
 0x14a   : > { %11327 = vmatprep.mubr.msk.f32.mxu0 %vm496_vm2, %v16455_v4  ;;  %3259 = vst.msk [vmem:[#allocation2 + $0x130] sm:$0x3] %vm3222_vm5, %v12637_v17  ;;  %3262 = vst.msk [vmem:[#allocation2 + $0x148] sm:$0x3] %vm3222_vm5, %v12637_v17 }
 0x14b   : > { %3265 = vst.msk [vmem:[#allocation2 + $0x160] sm:$0x3] %vm3222_vm5, %v12637_v17  ;;  %3268 = vst.msk [vmem:[#allocation2 + $0x178] sm:$0x3] %vm3222_vm5, %v12637_v17 }
 0x14c   : > { %3271 = vst.msk [vmem:[#allocation2 + $0x190] sm:$0x3] %vm3222_vm5, %v12637_v17  ;;  %3274 = vst.msk [vmem:[#allocation2 + $0x1a8] sm:$0x3] %vm3222_vm5, %v12637_v17 }
 0x14d   : > { %11328 = vmatmul.mubr.msk.f32.gmra.mrb[42].mxu0 %vm496_vm2, %v16456_v2  ;;  %v3310_v2 = vld [vmem:[#allocation2 + $0x10] sm:$0x3]  ;;  %16471 = vst [vmem:[#allocation78_spill] sm:$0xff] %v14113_v25  ;;  %16472 = vst [vmem:[#allocation79_spill] sm:$0xff] %v14118_v36 }
 0x14e   : > { %11330 = vmatprep.mubr.msk.f32.mxu0 %vm496_vm2, %v16457_v42  ;;  %v3414_v4 = vrot.slane %v3310_v2, 1  ;;  %v13998_v2 = vld [vmem:[%s16026_s3 + $0xc] sm:$0xf]  ;;  %16473 = vst [vmem:[#allocation80_spill] sm:$0xff] %v14123_v58  ;;  %16474 = vst [vmem:[#allocation81_spill] sm:$0xff] %v14128_v16 }
 0x14f   : > { %16475 = vst [vmem:[#allocation82_spill] sm:$0xff] %v14133_v0  ;;  %16476 = vst [vmem:[#allocation83_spill] sm:$0xff] %v14138_v31 }
 0x151   : > { %11331 = vmatmul.mubr.msk.f32.gmra.mrb[44].mxu0 %vm496_vm2, %v16458_v51  ;;  %v13954_v51 = vld [vmem:[#allocation2 + $0x8] sm:$0xff] }
 0x152   : > { %11333 = vmatprep.mubr.msk.f32.mxu0 %vm496_vm2, %v16459_v26  ;;  %v13952_v26 = vld [vmem:[#allocation2] sm:$0xff]  ;;  %16464 = vst [vmem:[#allocation7_spill] sm:$0xff] %v13954_v51  ;;  %v3412_v17 = vrot.slane %v13954_v51, 1  ;;  %v16480_v51 = vld [vmem:[#allocation24_spill] sm:$0xff] }
 0x153   : > { %16463 = vst [vmem:[#allocation5_spill] sm:$0xff] %v13952_v26  ;;  %v3411_v42 = vrot.slane %v13952_v26, 1 }
 0x155   : > { %11334 = vmatmul.mubr.msk.f32.gmra.mrb[46].mxu0 %vm496_vm2, %v16460_v30  ;;  %v3413_v30 = vsel %vm413_vm1, %v3411_v42, %v3412_v17  ;;  %v14003_v42 = vld [vmem:[%s12719_s18 + $0x18] sm:$0xff] }
 0x156   : > { %11336 = vmatprep.mubr.msk.f32.mxu0 %vm496_vm2, %v16461_v50  ;;  %10862 = vmatprep.mubr.msk.f32.mxu1 %vm3219_vm4, %v3413_v30  ;;  %v3362_v30 = vld [vmem:[%s16025_s2] sm:$0xff]  ;;  %v14108_v50 = vld [vmem:[%s12719_s18 + $0xf8] sm:$0xff] }
 0x157   : > { %10910 = vmatprep.subr.mxu1 %v3362_v30  ;;  %16470 = vst [vmem:[#allocation77_spill] sm:$0xff] %v14108_v50 }
 0x159   : > { %11337 = vmatmul.mubr.msk.f32.gmra.mrb[48].mxu0 %vm496_vm2, %v16462_v15  ;;  %v3415_v15 = vsel %vm413_vm1, %v3412_v17, %v3414_v4  ;;  %v12541_v4 = vld [vmem:[%s12719_s18 + $0x8] sm:$0xff]  ;;  %v14012_v17 = vld [vmem:[%s12719_s18 + $0x20] sm:$0xff] }
 0x15a   : > { %11339 = vmatprep.mubr.msk.f32.mxu0 %vm496_vm2, %v16410_v44  ;;  %10863 = vmatmul.mubr.msk.f32.vlgmr.msra.gmra.mrb[32].mxu1 %vm3219_vm4, %v3415_v15  ;;  %v12540_v15 = vld [vmem:[%s12719_s18] sm:$0xff]  ;;  %v14103_v44 = vld [vmem:[%s12719_s18 + $0xf0] sm:$0xff] }
 0x15b   : > { %10911 = vmatpush3.msra.mxu1 %v3362_v30  ;;  %v14017_v30 = vld [vmem:[%s12719_s18 + $0x30] sm:$0xff]  ;;  %16469 = vst [vmem:[#allocation76_spill] sm:$0xff] %v14103_v44 }
 0x15d   : > { %11340 = vmatmul.mubr.msk.f32.gmra.mrb[50].mxu0 %vm496_vm2, %v16411_v62  ;;  %v14098_v62 = vld [vmem:[%s12719_s18 + $0xe0] sm:$0xff] }
 0x15e   : > { %11342 = vmatprep.mubr.msk.f32.mxu0 %vm496_vm2, %v16413_v35  ;;  %v14094_v35 = vld [vmem:[%s16025_s2 + $0x10] sm:$0xff]  ;;  %16468 = vst [vmem:[#allocation75_spill] sm:$0xff] %v14098_v62 }
 0x15f   : > { %16467 = vst [vmem:[#allocation74_spill] sm:$0xff] %v14094_v35  ;;  %10960 = vmatprep.subr.mxu1 %v14094_v35  ;;  %v16477_v35 = vld [vmem:[#allocation68_spill] sm:$0xff] }
 0x161   : > { %11343 = vmatmul.mubr.msk.f32.gmra.mrb[52].mxu0 %vm496_vm2, %v16415_v27  ;;  %v14087_v27 = vld [vmem:[%s12719_s18 + $0xd8] sm:$0xff] }
 0x162   : > { %11345 = vmatprep.mubr.msk.f32.mxu0 %vm496_vm2, %v16416_v61  ;;  %v14082_v61 = vld [vmem:[%s12719_s18 + $0xc8] sm:$0xff]  ;;  %16466 = vst [vmem:[#allocation73_spill] sm:$0xff] %v14087_v27 }
 0x163   : > { %16465 = vst [vmem:[#allocation72_spill] sm:$0xff] %v14082_v61 }
 0x165   : > { %11346 = vmatmul.mubr.msk.f32.gmra.mrb[54].mxu0 %vm496_vm2, %v16417_v34  ;;  %v14077_v34 = vld [vmem:[%s12719_s18 + $0xc0] sm:$0xff] }
 0x166   : > { %11348 = vmatprep.mubr.msk.f32.mxu0 %vm496_vm2, %v16418_v60  ;;  %v14072_v60 = vld [vmem:[%s12719_s18 + $0xb0] sm:$0xff] }
 0x169   : > { %11349 = vmatmul.mubr.msk.f32.gmra.mrb[56].mxu0 %vm496_vm2, %v16419_v1  ;;  %v14067_v1 = vld [vmem:[%s12719_s18 + $0xa8] sm:$0xff] }
 0x16a   : > { %11351 = vmatprep.mubr.msk.f32.mxu0 %vm496_vm2, %v16434_v3  ;;  %v14062_v3 = vld [vmem:[%s12719_s18 + $0x98] sm:$0xff] }
 0x16d   : > { %11352 = vmatmul.mubr.msk.f32.gmra.mrb[58].mxu0 %vm496_vm2, %v16436_v8  ;;  %v14057_v8 = vld [vmem:[%s12719_s18 + $0x90] sm:$0xff] }
 0x16e   : > { %11354 = vmatprep.mubr.msk.f32.mxu0 %vm496_vm2, %v16438_v39  ;;  %v14052_v39 = vld [vmem:[%s12719_s18 + $0x80] sm:$0xff] }
 0x171   : > { %11355 = vmatmul.mubr.msk.f32.gmra.mrb[60].mxu0 %vm496_vm2, %v16423_v33  ;;  %v14047_v33 = vld [vmem:[%s12719_s18 + $0x78] sm:$0xff] }
 0x172   : > { %11357 = vmatprep.mubr.msk.f32.mxu0 %vm496_vm2, %v16424_v32  ;;  %v14042_v32 = vld [vmem:[%s12719_s18 + $0x68] sm:$0xff] }
 0x175   : > { %11358 = vmatmul.mubr.msk.f32.gmra.mrb[62].mxu0 %vm496_vm2, %v16426_v43  ;;  %v14037_v43 = vld [vmem:[%s12719_s18 + $0x60] sm:$0xff] }
 0x176   : > { %11362 = vmatprep.mubr.msk.f32.mxu0 %vm496_vm2, %v12540_v15  ;;  %v14022_v15 = vld [vmem:[%s12719_s18 + $0x38] sm:$0xff] }
 0x179   : > { %11363 = vmatmul.mubr.msk.f32.vlgmr.msra.gmra.mrb[32].mxu0 %vm496_vm2, %v12541_v4  ;;  %v14032_v4 = vld [vmem:[%s12719_s18 + $0x50] sm:$0xff] }
 0x17a   : > { %11365 = vmatprep.mubr.msk.f32.mxu0 %vm496_vm2, %v14003_v42  ;;  %11411 = vmatpush3.msk.msra.mxu0 %vm561_vm0, %v13855_v18  ;;  %v14027_v18 = vld [vmem:[%s12719_s18 + $0x48] sm:$0xff] }
 0x17b   : > { %11460 = vmatprep.subr.msk.mxu0 %vm561_vm0, %v13998_v2 }
 0x17d   : > { %11366 = vmatmul.mubr.msk.f32.gmra.mrb[34].mxu0 %vm496_vm2, %v14012_v17 }
 0x17e   : > { %11368 = vmatprep.mubr.msk.f32.mxu0 %vm496_vm2, %v14017_v30 }
 0x181   : > { %11369 = vmatmul.mubr.msk.f32.gmra.mrb[36].mxu0 %vm496_vm2, %v14022_v15 }
 0x182   : > { %11371 = vmatprep.mubr.msk.f32.mxu0 %vm496_vm2, %v14027_v18 }
 0x185   : > { %11372 = vmatmul.mubr.msk.f32.gmra.mrb[38].mxu0 %vm496_vm2, %v14032_v4 }
 0x186   : > { %11374 = vmatprep.mubr.msk.f32.mxu0 %vm496_vm2, %v14037_v43 }
 0x189   : > { %11375 = vmatmul.mubr.msk.f32.gmra.mrb[40].mxu0 %vm496_vm2, %v14042_v32 }
 0x18a   : > { %11377 = vmatprep.mubr.msk.f32.mxu0 %vm496_vm2, %v14047_v33 }
 0x18d   : > { %11378 = vmatmul.mubr.msk.f32.gmra.mrb[42].mxu0 %vm496_vm2, %v14052_v39 }
 0x18e   : > { %11380 = vmatprep.mubr.msk.f32.mxu0 %vm496_vm2, %v14057_v8 }
 0x191   : > { %11381 = vmatmul.mubr.msk.f32.gmra.mrb[44].mxu0 %vm496_vm2, %v14062_v3 }
 0x192   : > { %11383 = vmatprep.mubr.msk.f32.mxu0 %vm496_vm2, %v14067_v1 }
 0x195   : > { %11384 = vmatmul.mubr.msk.f32.gmra.mrb[46].mxu0 %vm496_vm2, %v14072_v60 }
 0x196   : > { %11386 = vmatprep.mubr.msk.f32.mxu0 %vm496_vm2, %v14077_v34 }
 0x199   : > { %11387 = vmatmul.mubr.msk.f32.gmra.mrb[48].mxu0 %vm496_vm2, %v14082_v61 }
 0x19a   : > { %11389 = vmatprep.mubr.msk.f32.mxu0 %vm496_vm2, %v14087_v27 }
 0x19d   : > { %11390 = vmatmul.mubr.msk.f32.gmra.mrb[50].mxu0 %vm496_vm2, %v14098_v62 }
 0x19e   : > { %11392 = vmatprep.mubr.msk.f32.mxu0 %vm496_vm2, %v14103_v44 }
 0x1a1   : > { %11393 = vmatmul.mubr.msk.f32.gmra.mrb[52].mxu0 %vm496_vm2, %v14108_v50 }
 0x1a2   : > { %11395 = vmatprep.mubr.msk.f32.mxu0 %vm496_vm2, %v14113_v25 }
 0x1a5   : > { %11396 = vmatmul.mubr.msk.f32.gmra.mrb[54].mxu0 %vm496_vm2, %v14118_v36 }
 0x1a6   : > { %11398 = vmatprep.mubr.msk.f32.mxu0 %vm496_vm2, %v14123_v58 }
 0x1a9   : > { %11399 = vmatmul.mubr.msk.f32.gmra.mrb[56].mxu0 %vm496_vm2, %v14128_v16 }
 0x1aa   : > { %11401 = vmatprep.mubr.msk.f32.mxu0 %vm496_vm2, %v14133_v0 }
 0x1ac   : > { %v10564_v63 = vpop.f32.mrb[0].mxu1 }
 0x1ad   : > { %v1566_v52 = vpop.f32.mrb[1].mxu1  ;;  %11402 = vmatmul.mubr.msk.f32.gmra.mrb[58].mxu0 %vm496_vm2, %v14138_v31 }
 0x1ae   : > { %11404 = vmatprep.mubr.msk.f32.mxu0 %vm496_vm2, %v13125_v20  ;;  %v14157_v20 = vld [vmem:[%s16026_s3 + $0x10] sm:$0xf] }
 0x1b0   : > { %v10567_v58 = vpop.f32.mrb[2].mxu1 }
 0x1b1   : > { %v1576_v36 = vpop.f32.mrb[3].mxu1  ;;  %11405 = vmatmul.mubr.msk.f32.gmra.mrb[60].mxu0 %vm496_vm2, %v13128_v54  ;;  %v16478_v54 = vld [vmem:[#allocation69_spill] sm:$0xff] }
 0x1b2   : > { %11407 = vmatprep.mubr.msk.f32.mxu0 %vm496_vm2, %v13160_v53  ;;  %v16479_v53 = vld [vmem:[#allocation23_spill] sm:$0xff] }
 0x1b4   : > { %v10570_v16 = vpop.f32.mrb[4].mxu1 }
 0x1b5   : > { %v1586_v0 = vpop.f32.mrb[5].mxu1  ;;  %11408 = vmatmul.mubr.msk.f32.gmra.mrb[62].mxu0 %vm496_vm2, %v16430_v46 }
 0x1b6   : > { %11412 = vmatprep.mubr.msk.f32.mxu0 %vm496_vm2, %v16477_v35 }
 0x1b8   : > { %v10573_v31 = vpop.f32.mrb[6].mxu1 }
 0x1b9   : > { %v14152_v25 = vpop.f32.mrb[7].mxu1  ;;  %11413 = vmatmul.mubr.msk.f32.vlgmr.msra.gmra.mrb[32].mxu0 %vm496_vm2, %v16478_v54 }
 0x1ba   : > { %11415 = vmatprep.mubr.msk.f32.mxu0 %vm496_vm2, %v16479_v53  ;;  %11461 = vmatpush3.msk.msra.mxu0 %vm561_vm0, %v13998_v2 }
 0x1bb   : > { %11510 = vmatprep.subr.msk.mxu0 %vm561_vm0, %v14157_v20 }
 0x1bc   : > { %v14165_v46 = vpop.f32.mrb[8].mxu1 }
 0x1bd   : > { %v14169_v35 = vpop.f32.mrb[9].mxu1  ;;  %11416 = vmatmul.mubr.msk.f32.gmra.mrb[34].mxu0 %vm496_vm2, %v16480_v51 }
 0x1be   : > { %11418 = vmatprep.mubr.msk.f32.mxu0 %vm496_vm2, %v13006_v22 }
 0x1c0   : > { %v14175_v54 = vpop.f32.mrb[10].mxu1 }
 0x1c1   : > { %v14177_v50 = vpop.f32.mrb[11].mxu1  ;;  %11419 = vmatmul.mubr.msk.f32.gmra.mrb[36].mxu0 %vm496_vm2, %v16386_v5 }
 0x1c2   : > { %11421 = vmatprep.mubr.msk.f32.mxu0 %vm496_vm2, %v16387_v11  ;;  %v14202_v11 = vld [vmem:[%s16027_s4] ss:$0 sm:$0xff] }
 0x1c4   : > { %v14183_v2 = vpop.f32.mrb[12].mxu1 }
 0x1c5   : > { %v14185_v53 = vpop.f32.mrb[13].mxu1  ;;  %11422 = vmatmul.mubr.msk.f32.gmra.mrb[38].mxu0 %vm496_vm2, %v16388_v24 }
 0x1c6   : > { %11424 = vmatprep.mubr.msk.f32.mxu0 %vm496_vm2, %v16389_v57  ;;  %v14209_v57 = vld [vmem:[%s16028_s5] ss:$0 sm:$0xff] }
 0x1c8   : > { %v14191_v22 = vpop.f32.mrb[14].mxu1 }
 0x1c9   : > { %v14193_v51 = vpop.f32.mrb[15].mxu1  ;;  %11425 = vmatmul.mubr.msk.f32.gmra.mrb[40].mxu0 %vm496_vm2, %v16390_v45 }
 0x1ca   : > { %11427 = vmatprep.mubr.msk.f32.mxu0 %vm496_vm2, %v16391_v38 }
 0x1cc   : > { %v10814_v5 = vpop.f32.mrb[0].mxu0 }
 0x1cd   : > { %v11762_v24 = vadd.f32 %v10814_v5, %v10564_v63  ;;  %v2920_v26 = vpop.f32.mrb[1].mxu0  ;;  %11428 = vmatmul.mubr.msk.f32.gmra.mrb[42].mxu0 %vm496_vm2, %v16392_v28 }
 0x1ce   : > { %v11763_v45 = vadd.f32 %v2920_v26, %v1566_v52  ;;  %11430 = vmatprep.mubr.msk.f32.mxu0 %vm496_vm2, %v13155_v23 }
 0x1cf   : > { %v3118_v38 = vmul.f32 %v11762_v24, %v14202_v11 }
 0x1d0   : > { %v3117_v44 = vmul.f32 %v11763_v45, %v14202_v11  ;;  %v10817_v62 = vpop.f32.mrb[2].mxu0 }
 0x1d1   : > { %v3156_v5 = vadd.f32 %v14209_v57, %v3118_v38  ;;  %v11764_v63 = vadd.f32 %v10817_v62, %v10567_v58  ;;  %v2930_v27 = vpop.f32.mrb[3].mxu0  ;;  %11431 = vmatmul.mubr.msk.f32.gmra.mrb[44].mxu0 %vm496_vm2, %v16393_v56 }
 0x1d2   : > { %v3155_v28 = vadd.f32 %v14209_v57, %v3117_v44  ;;  %v11765_v61 = vadd.f32 %v2930_v27, %v1576_v36  ;;  %11433 = vmatprep.mubr.msk.f32.mxu0 %vm496_vm2, %v13190_v48 }
 0x1d3   : > { %v3188_v26 = vmax.f32 %v3156_v5, 0.0  ;;  %v3120_v52 = vmul.f32 %v11764_v63, %v14202_v11 }
 0x1d4   : > { %v3187_v24 = vmax.f32 %v3155_v28, 0.0  ;;  %v3119_v45 = vmul.f32 %v11765_v61, %v14202_v11  ;;  %v10820_v23 = vpop.f32.mrb[4].mxu0 }
 0x1d5   : > { %3277 = vst.msk [vmem:[#allocation2 + $0x21] sm:$0xff] %vm3219_vm4, %v3188_v26  ;;  %v3158_v62 = vadd.f32 %v14209_v57, %v3120_v52  ;;  %v11766_v38 = vadd.f32 %v10820_v23, %v10570_v16  ;;  %v2940_v58 = vpop.f32.mrb[5].mxu0  ;;  %11434 = vmatmul.mubr.msk.f32.gmra.mrb[46].mxu0 %vm496_vm2, %v13207_v41 }
 0x1d6   : > { %3276 = vst.msk [vmem:[#allocation2 + $0x19] sm:$0xff] %vm3219_vm4, %v3187_v24  ;;  %v3157_v44 = vadd.f32 %v14209_v57, %v3119_v45  ;;  %v11767_v27 = vadd.f32 %v2940_v58, %v1586_v0  ;;  %11436 = vmatprep.mubr.msk.f32.mxu0 %vm496_vm2, %v13214_v47 }
 0x1d7   : > { %v3190_v28 = vmax.f32 %v3158_v62, 0.0  ;;  %v3122_v61 = vmul.f32 %v11766_v38, %v14202_v11 }
 0x1d8   : > { %v3189_v36 = vmax.f32 %v3157_v44, 0.0  ;;  %v3121_v5 = vmul.f32 %v11767_v27, %v14202_v11  ;;  %v10823_v63 = vpop.f32.mrb[6].mxu0 }
 0x1d9   : > { %3279 = vst.msk [vmem:[#allocation2 + $0x39] sm:$0xff] %vm3219_vm4, %v3190_v28  ;;  %v3160_v23 = vadd.f32 %v14209_v57, %v3122_v61  ;;  %v11768_v16 = vadd.f32 %v10823_v63, %v10573_v31  ;;  %v2950_v26 = vpop.f32.mrb[7].mxu0  ;;  %11437 = vmatmul.mubr.msk.f32.gmra.mrb[48].mxu0 %vm496_vm2, %v13230_v19 }
 0x1da   : > { %3278 = vst.msk [vmem:[#allocation2 + $0x31] sm:$0xff] %vm3219_vm4, %v3189_v36  ;;  %v3159_v0 = vadd.f32 %v14209_v57, %v3121_v5  ;;  %v11769_v52 = vadd.f32 %v2950_v26, %v14152_v25  ;;  %11439 = vmatprep.mubr.msk.f32.mxu0 %vm496_vm2, %v13234_v13 }
 0x1db   : > { %v3192_v24 = vmax.f32 %v3160_v23, 0.0  ;;  %v3124_v45 = vmul.f32 %v11768_v16, %v14202_v11 }
 0x1dc   : > { %v3191_v62 = vmax.f32 %v3159_v0, 0.0  ;;  %v3123_v38 = vmul.f32 %v11769_v52, %v14202_v11  ;;  %v10826_v31 = vpop.f32.mrb[8].mxu0  ;;  %v14244_v58 = vld [vmem:[#allocation2 + $0x28] sm:$0x3] }
 0x1dd   : > { %3281 = vst.msk [vmem:[#allocation2 + $0x51] sm:$0xff] %vm3219_vm4, %v3192_v24  ;;  %v3162_v44 = vadd.f32 %v14209_v57, %v3124_v45  ;;  %v11770_v27 = vadd.f32 %v10826_v31, %v14165_v46  ;;  %v2960_v28 = vpop.f32.mrb[9].mxu0  ;;  %11440 = vmatmul.mubr.msk.f32.gmra.mrb[50].mxu0 %vm496_vm2, %v13247_v55  ;;  %v14251_v25 = vld [vmem:[#allocation2 + $0x18] sm:$0xff]  ;;  %v14253_v61 = vld [vmem:[#allocation2 + $0x20] sm:$0xff]  ;;  %v3419_v36 = vrot.slane %v14244_v58, 1 }
 0x1de   : > { %3280 = vst.msk [vmem:[#allocation2 + $0x49] sm:$0xff] %vm3219_vm4, %v3191_v62  ;;  %v3161_v5 = vadd.f32 %v14209_v57, %v3123_v38  ;;  %v11771_v63 = vadd.f32 %v2960_v28, %v14169_v35  ;;  %11442 = vmatprep.mubr.msk.f32.mxu0 %vm496_vm2, %v13251_v12  ;;  %v3416_v46 = vrot.slane %v14251_v25, 1  ;;  %v3417_v23 = vrot.slane %v14253_v61, 1 }
 0x1df   : > { %v3194_v16 = vmax.f32 %v3162_v44, 0.0  ;;  %v3126_v26 = vmul.f32 %v11770_v27, %v14202_v11 }
 0x1e0   : > { %v3193_v0 = vmax.f32 %v3161_v5, 0.0  ;;  %v3125_v52 = vmul.f32 %v11771_v63, %v14202_v11  ;;  %v10829_v24 = vpop.f32.mrb[10].mxu0  ;;  %v14266_v45 = vsel %vm413_vm1, %v3416_v46, %v3417_v23  ;;  %v14269_v62 = vsel %vm413_vm1, %v3417_v23, %v3419_v36  ;;  %v14271_v35 = vld [vmem:[#allocation2 + $0x40] sm:$0x3] }
 0x1e1   : > { %16481 = vst [vmem:[#allocation68_spill] sm:$0xff] %v14266_v45  ;;  %16482 = vst [vmem:[#allocation69_spill] sm:$0xff] %v14269_v62  ;;  %v3164_v38 = vadd.f32 %v14209_v57, %v3126_v26  ;;  %v11772_v31 = vadd.f32 %v10829_v24, %v14175_v54  ;;  %v2970_v44 = vpop.f32.mrb[11].mxu0  ;;  %10865 = vmatprep.mubr.msk.f32.mxu1 %vm3219_vm4, %v14266_v45  ;;  %11443 = vmatmul.mubr.msk.f32.gmra.mrb[52].mxu0 %vm496_vm2, %v16431_v59  ;;  %v14280_v27 = vld [vmem:[#allocation2 + $0x30] sm:$0xff]  ;;  %v14282_v28 = vld [vmem:[#allocation2 + $0x38] sm:$0xff]  ;;  %v3424_v36 = vrot.slane %v14271_v35, 1 }
 0x1e2   : > { %3283 = vst.msk [vmem:[#allocation2 + $0x69] sm:$0xff] %vm3219_vm4, %v3194_v16  ;;  %3282 = vst.msk [vmem:[#allocation2 + $0x61] sm:$0xff] %vm3219_vm4, %v3193_v0  ;;  %v3163_v5 = vadd.f32 %v14209_v57, %v3125_v52  ;;  %v11773_v63 = vadd.f32 %v2970_v44, %v14177_v50  ;;  %10866 = vmatmul.mubr.msk.f32.gmra.mrb[34].mxu1 %vm3219_vm4, %v14269_v62  ;;  %11445 = vmatprep.mubr.msk.f32.mxu0 %vm496_vm2, %v16432_v9  ;;  %v3421_v54 = vrot.slane %v14280_v27, 1 }
 0x1e3   : > { %v3422_v46 = vrot.slane %v14282_v28, 1  ;;  %v3196_v23 = vmax.f32 %v3164_v38, 0.0  ;;  %v3128_v16 = vmul.f32 %v11772_v31, %v14202_v11 }
 0x1e4   : > { %v3195_v26 = vmax.f32 %v3163_v5, 0.0  ;;  %v3127_v0 = vmul.f32 %v11773_v63, %v14202_v11  ;;  %v10832_v24 = vpop.f32.mrb[12].mxu0  ;;  %v14302_v44 = vld [vmem:[#allocation2 + $0x58] sm:$0x3] }
 0x1e5   : > { %v14297_v52 = vsel %vm413_vm1, %v3421_v54, %v3422_v46  ;;  %v14300_v50 = vsel %vm413_vm1, %v3422_v46, %v3424_v36  ;;  %3285 = vst.msk [vmem:[#allocation2 + $0x81] sm:$0xff] %vm3219_vm4, %v3196_v23  ;;  %v3166_v62 = vadd.f32 %v14209_v57, %v3128_v16  ;;  %v11774_v38 = vadd.f32 %v10832_v24, %v14183_v2  ;;  %v2980_v45 = vpop.f32.mrb[13].mxu0  ;;  %v14311_v31 = vld [vmem:[#allocation2 + $0x48] sm:$0xff]  ;;  %v14313_v5 = vld [vmem:[#allocation2 + $0x50] sm:$0xff] }
 0x1e6   : > { %16483 = vst [vmem:[#allocation84_spill] sm:$0xff] %v14297_v52  ;;  %16484 = vst [vmem:[#allocation85_spill] sm:$0xff] %v14300_v50  ;;  %10868 = vmatprep.mubr.msk.f32.mxu1 %vm3219_vm4, %v14297_v52  ;;  %11446 = vmatmul.mubr.msk.f32.gmra.mrb[54].mxu0 %vm496_vm2, %v13290_v10  ;;  %v3429_v36 = vrot.slane %v14302_v44, 1  ;;  %v3165_v63 = vadd.f32 %v14209_v57, %v3127_v0  ;;  %v11775_v54 = vadd.f32 %v2980_v45, %v14185_v53 }
 0x1e7   : > { %3284 = vst.msk [vmem:[#allocation2 + $0x79] sm:$0xff] %vm3219_vm4, %v3195_v26  ;;  %10869 = vmatmul.mubr.msk.f32.gmra.mrb[36].mxu1 %vm3219_vm4, %v14300_v50  ;;  %11448 = vmatprep.mubr.msk.f32.mxu0 %vm496_vm2, %v13294_v14  ;;  %v3426_v2 = vrot.slane %v14311_v31, 1  ;;  %v3427_v46 = vrot.slane %v14313_v5, 1  ;;  %v3198_v23 = vmax.f32 %v3166_v62, 0.0  ;;  %v3130_v16 = vmul.f32 %v11774_v38, %v14202_v11 }
 0x1e8   : > { %v3197_v24 = vmax.f32 %v3165_v63, 0.0  ;;  %v3129_v26 = vmul.f32 %v11775_v54, %v14202_v11  ;;  %v10835_v52 = vpop.f32.mrb[14].mxu0 }
 0x1e9   : > { %v14328_v0 = vsel %vm413_vm1, %v3426_v2, %v3427_v46  ;;  %v14331_v53 = vsel %vm413_vm1, %v3427_v46, %v3429_v36  ;;  %v14333_v45 = vld [vmem:[#allocation2 + $0x70] sm:$0x3]  ;;  %3287 = vst.msk [vmem:[#allocation2 + $0x99] sm:$0xff] %vm3219_vm4, %v3198_v23  ;;  %v3168_v50 = vadd.f32 %v14209_v57, %v3130_v16  ;;  %v11776_v62 = vadd.f32 %v10835_v52, %v14191_v22  ;;  %v2990_v14 = vpop.f32.mrb[15].mxu0  ;;  %v14342_v38 = vld [vmem:[#allocation2 + $0x60] sm:$0xff]  ;;  %v14344_v63 = vld [vmem:[#allocation2 + $0x68] sm:$0xff] }
 0x1ea   : > { %16485 = vst [vmem:[#allocation86_spill] sm:$0xff] %v14328_v0  ;;  %16486 = vst [vmem:[#allocation87_spill] sm:$0xff] %v14331_v53  ;;  %10871 = vmatprep.mubr.msk.f32.mxu1 %vm3219_vm4, %v14328_v0  ;;  %11449 = vmatmul.mubr.msk.f32.gmra.mrb[56].mxu0 %vm496_vm2, %v16403_v21  ;;  %v3434_v36 = vrot.slane %v14333_v45, 1  ;;  %v3167_v54 = vadd.f32 %v14209_v57, %v3129_v26  ;;  %v11777_v2 = vadd.f32 %v2990_v14, %v14193_v51 }
 0x1eb   : > { %3286 = vst.msk [vmem:[#allocation2 + $0x91] sm:$0xff] %vm3219_vm4, %v3197_v24  ;;  %10872 = vmatmul.mubr.msk.f32.gmra.mrb[38].mxu1 %vm3219_vm4, %v14331_v53  ;;  %11451 = vmatprep.mubr.msk.f32.mxu0 %vm496_vm2, %v16405_v49  ;;  %v3431_v22 = vrot.slane %v14342_v38, 1  ;;  %v3432_v52 = vrot.slane %v14344_v63, 1  ;;  %v3200_v46 = vmax.f32 %v3168_v50, 0.0  ;;  %v3132_v23 = vmul.f32 %v11776_v62, %v14202_v11 }
 0x1ec   : > { %v10638_v16 = vpop.f32.mrb[16].mxu1  ;;  %v3199_v0 = vmax.f32 %v3167_v54, 0.0  ;;  %v3131_v24 = vmul.f32 %v11777_v2, %v14202_v11  ;;  %v10838_v26 = vpop.f32.mrb[16].mxu0  ;;  %v14364_v53 = vld [vmem:[#allocation2 + $0x88] sm:$0x3] }
 0x1ed   : > { %v1918_v21 = vpop.f32.mrb[17].mxu1  ;;  %v14359_v14 = vsel %vm413_vm1, %v3431_v22, %v3432_v52  ;;  %v14362_v51 = vsel %vm413_vm1, %v3432_v52, %v3434_v36  ;;  %3289 = vst.msk [vmem:[#allocation2 + $0xb1] sm:$0xff] %vm3219_vm4, %v3200_v46  ;;  %v3170_v50 = vadd.f32 %v14209_v57, %v3132_v23  ;;  %v11778_v49 = vadd.f32 %v10838_v26, %v10638_v16  ;;  %v3000_v62 = vpop.f32.mrb[17].mxu0 }
 0x1ee   : > { %16487 = vst [vmem:[#allocation88_spill] sm:$0xff] %v14359_v14  ;;  %16488 = vst [vmem:[#allocation89_spill] sm:$0xff] %v14362_v51  ;;  %10874 = vmatprep.mubr.msk.f32.mxu1 %vm3219_vm4, %v14359_v14  ;;  %11452 = vmatmul.mubr.msk.f32.gmra.mrb[58].mxu0 %vm496_vm2, %v16433_v6  ;;  %v14372_v54 = vld [vmem:[#allocation2 + $0x78] sm:$0xff]  ;;  %v14374_v2 = vld [vmem:[#allocation2 + $0x80] sm:$0xff]  ;;  %v3439_v36 = vrot.slane %v14364_v53, 1  ;;  %v3169_v22 = vadd.f32 %v14209_v57, %v3131_v24  ;;  %v11779_v52 = vadd.f32 %v3000_v62, %v1918_v21 }
 0x1ef   : > { %3288 = vst.msk [vmem:[#allocation2 + $0xa9] sm:$0xff] %vm3219_vm4, %v3199_v0  ;;  %10875 = vmatmul.mubr.msk.f32.gmra.mrb[40].mxu1 %vm3219_vm4, %v14362_v51  ;;  %11454 = vmatprep.mubr.msk.f32.mxu0 %vm496_vm2, %v16435_v7  ;;  %v3436_v46 = vrot.slane %v14372_v54, 1  ;;  %v3437_v23 = vrot.slane %v14374_v2, 1  ;;  %v3202_v16 = vmax.f32 %v3170_v50, 0.0  ;;  %v3134_v26 = vmul.f32 %v11778_v49, %v14202_v11 }
 0x1f0   : > { %v10641_v14 = vpop.f32.mrb[18].mxu1  ;;  %v3201_v6 = vmax.f32 %v3169_v22, 0.0  ;;  %v3133_v0 = vmul.f32 %v11779_v52, %v14202_v11  ;;  %v10841_v10 = vpop.f32.mrb[18].mxu0  ;;  %v14393_v51 = vld [vmem:[#allocation2 + $0xa0] sm:$0x3] }
 0x1f1   : > { %v1928_v24 = vpop.f32.mrb[19].mxu1  ;;  %v14388_v21 = vsel %vm413_vm1, %v3436_v46, %v3437_v23  ;;  %v14391_v62 = vsel %vm413_vm1, %v3437_v23, %v3439_v36  ;;  %3291 = vst.msk [vmem:[#allocation2 + $0xc9] sm:$0xff] %vm3219_vm4, %v3202_v16  ;;  %v3172_v50 = vadd.f32 %v14209_v57, %v3134_v26  ;;  %v11780_v7 = vadd.f32 %v10841_v10, %v10641_v14  ;;  %v3010_v49 = vpop.f32.mrb[19].mxu0 }
 0x1f2   : > { %16489 = vst [vmem:[#allocation90_spill] sm:$0xff] %v14388_v21  ;;  %16490 = vst [vmem:[#allocation91_spill] sm:$0xff] %v14391_v62  ;;  %10877 = vmatprep.mubr.msk.f32.mxu1 %vm3219_vm4, %v14388_v21  ;;  %11455 = vmatmul.mubr.msk.f32.gmra.mrb[60].mxu0 %vm496_vm2, %v16437_v29  ;;  %v14401_v22 = vld [vmem:[#allocation2 + $0x90] sm:$0xff]  ;;  %v14403_v52 = vld [vmem:[#allocation2 + $0x98] sm:$0xff]  ;;  %v3444_v36 = vrot.slane %v14393_v51, 1  ;;  %v3171_v46 = vadd.f32 %v14209_v57, %v3133_v0  ;;  %v11781_v23 = vadd.f32 %v3010_v49, %v1928_v24 }
 0x1f3   : > { %3290 = vst.msk [vmem:[#allocation2 + $0xc1] sm:$0xff] %vm3219_vm4, %v3201_v6  ;;  %10878 = vmatmul.mubr.msk.f32.gmra.mrb[42].mxu1 %vm3219_vm4, %v14391_v62  ;;  %11457 = vmatprep.mubr.msk.f32.mxu0 %vm496_vm2, %v16439_v40  ;;  %v3441_v10 = vrot.slane %v14401_v22, 1  ;;  %v3442_v14 = vrot.slane %v14403_v52, 1  ;;  %v3204_v16 = vmax.f32 %v3172_v50, 0.0  ;;  %v3136_v26 = vmul.f32 %v11780_v7, %v14202_v11 }
 0x1f4   : > { %v10644_v21 = vpop.f32.mrb[20].mxu1  ;;  %v3203_v29 = vmax.f32 %v3171_v46, 0.0  ;;  %v3135_v6 = vmul.f32 %v11781_v23, %v14202_v11  ;;  %v10844_v9 = vpop.f32.mrb[20].mxu0  ;;  %v14422_v62 = vld [vmem:[#allocation2 + $0xb8] sm:$0x3] }
 0x1f5   : > { %v1938_v0 = vpop.f32.mrb[21].mxu1  ;;  %v14417_v24 = vsel %vm413_vm1, %v3441_v10, %v3442_v14  ;;  %v14420_v49 = vsel %vm413_vm1, %v3442_v14, %v3444_v36  ;;  %3293 = vst.msk [vmem:[#allocation2 + $0xe1] sm:$0xff] %vm3219_vm4, %v3204_v16  ;;  %v3174_v50 = vadd.f32 %v14209_v57, %v3136_v26  ;;  %v11782_v40 = vadd.f32 %v10844_v9, %v10644_v21  ;;  %v3020_v7 = vpop.f32.mrb[21].mxu0 }
 0x1f6   : > { %16491 = vst [vmem:[#allocation92_spill] sm:$0xff] %v14417_v24  ;;  %16492 = vst [vmem:[#allocation93_spill] sm:$0xff] %v14420_v49  ;;  %10880 = vmatprep.mubr.msk.f32.mxu1 %vm3219_vm4, %v14417_v24  ;;  %11458 = vmatmul.mubr.msk.f32.gmra.mrb[62].mxu0 %vm496_vm2, %v16440_v37  ;;  %v14430_v46 = vld [vmem:[#allocation2 + $0xa8] sm:$0xff]  ;;  %v14432_v23 = vld [vmem:[#allocation2 + $0xb0] sm:$0xff]  ;;  %v3449_v36 = vrot.slane %v14422_v62, 1  ;;  %v3173_v10 = vadd.f32 %v14209_v57, %v3135_v6  ;;  %v11783_v14 = vadd.f32 %v3020_v7, %v1938_v0 }
 0x1f7   : > { %3292 = vst.msk [vmem:[#allocation2 + $0xd9] sm:$0xff] %vm3219_vm4, %v3203_v29  ;;  %10881 = vmatmul.mubr.msk.f32.gmra.mrb[44].mxu1 %vm3219_vm4, %v14420_v49  ;;  %11462 = vmatprep.mubr.msk.f32.mxu0 %vm496_vm2, %v14003_v42  ;;  %v3446_v9 = vrot.slane %v14430_v46, 1  ;;  %v3447_v21 = vrot.slane %v14432_v23, 1  ;;  %v3206_v16 = vmax.f32 %v3174_v50, 0.0  ;;  %v3138_v26 = vmul.f32 %v11782_v40, %v14202_v11 }
 0x1f8   : > { %v10647_v24 = vpop.f32.mrb[22].mxu1  ;;  %v3205_v37 = vmax.f32 %v3173_v10, 0.0  ;;  %v3137_v29 = vmul.f32 %v11783_v14, %v14202_v11  ;;  %v10847_v59 = vpop.f32.mrb[22].mxu0  ;;  %v14451_v42 = vld [vmem:[#allocation2 + $0xd0] sm:$0x3] }
 0x1f9   : > { %v1948_v6 = vpop.f32.mrb[23].mxu1  ;;  %v14446_v0 = vsel %vm413_vm1, %v3446_v9, %v3447_v21  ;;  %v14449_v7 = vsel %vm413_vm1, %v3447_v21, %v3449_v36  ;;  %3295 = vst.msk [vmem:[#allocation2 + $0xf9] sm:$0xff] %vm3219_vm4, %v3206_v16  ;;  %v3176_v50 = vadd.f32 %v14209_v57, %v3138_v26  ;;  %v11784_v49 = vadd.f32 %v10847_v59, %v10647_v24  ;;  %v3030_v40 = vpop.f32.mrb[23].mxu0  ;;  %v14467_v9 = vld [vmem:[%s16026_s3 + $0x14] sm:$0xf] }
 0x1fa   : > { %16493 = vst [vmem:[#allocation94_spill] sm:$0xff] %v14446_v0  ;;  %16494 = vst [vmem:[#allocation95_spill] sm:$0xff] %v14449_v7  ;;  %10883 = vmatprep.mubr.msk.f32.mxu1 %vm3219_vm4, %v14446_v0  ;;  %11463 = vmatmul.mubr.msk.f32.vlgmr.msra.gmra.mrb[32].mxu0 %vm496_vm2, %v14012_v17  ;;  %v14459_v10 = vld [vmem:[#allocation2 + $0xc0] sm:$0xff]  ;;  %v14461_v14 = vld [vmem:[#allocation2 + $0xc8] sm:$0xff]  ;;  %v3454_v36 = vrot.slane %v14451_v42, 1  ;;  %v3175_v59 = vadd.f32 %v14209_v57, %v3137_v29  ;;  %v11785_v24 = vadd.f32 %v3030_v40, %v1948_v6 }
 0x1fb   : > { %3294 = vst.msk [vmem:[#allocation2 + $0xf1] sm:$0xff] %vm3219_vm4, %v3205_v37  ;;  %10884 = vmatmul.mubr.msk.f32.gmra.mrb[46].mxu1 %vm3219_vm4, %v14449_v7  ;;  %11465 = vmatprep.mubr.msk.f32.mxu0 %vm496_vm2, %v14017_v30  ;;  %v3451_v17 = vrot.slane %v14459_v10, 1  ;;  %v3452_v21 = vrot.slane %v14461_v14, 1  ;;  %v3208_v16 = vmax.f32 %v3176_v50, 0.0  ;;  %v3140_v26 = vmul.f32 %v11784_v49, %v14202_v11 }
 0x1fc   : > { %v10650_v0 = vpop.f32.mrb[24].mxu1  ;;  %11511 = vmatpush3.msk.msra.mxu0 %vm561_vm0, %v14157_v20  ;;  %v3207_v37 = vmax.f32 %v3175_v59, 0.0  ;;  %v3139_v29 = vmul.f32 %v11785_v24, %v14202_v11  ;;  %v10850_v6 = vpop.f32.mrb[24].mxu0  ;;  %v14487_v12 = vld [vmem:[#allocation2 + $0xe8] sm:$0x3] }
 0x1fd   : > { %v1958_v40 = vpop.f32.mrb[25].mxu1  ;;  %v14482_v7 = vsel %vm413_vm1, %v3451_v17, %v3452_v21  ;;  %v14485_v30 = vsel %vm413_vm1, %v3452_v21, %v3454_v36  ;;  %11560 = vmatprep.subr.msk.mxu0 %vm561_vm0, %v14467_v9  ;;  %3297 = vst.msk [vmem:[#allocation2 + $0x111] sm:$0xff] %vm3219_vm4, %v3208_v16  ;;  %v3178_v20 = vadd.f32 %v14209_v57, %v3140_v26  ;;  %v3040_v50 = vpop.f32.mrb[25].mxu0  ;;  %v3459_v24 = vrot.slane %v14487_v12, 1 }
 0x1fe   : > { %16495 = vst [vmem:[#allocation96_spill] sm:$0xff] %v14482_v7  ;;  %16496 = vst [vmem:[#allocation97_spill] sm:$0xff] %v14485_v30  ;;  %v11786_v49 = vadd.f32 %v10850_v6, %v10650_v0  ;;  %10886 = vmatprep.mubr.msk.f32.mxu1 %vm3219_vm4, %v14482_v7  ;;  %11466 = vmatmul.mubr.msk.f32.gmra.mrb[34].mxu0 %vm496_vm2, %v14022_v15  ;;  %v14497_v59 = vld [vmem:[#allocation2 + $0xd8] sm:$0xff]  ;;  %v14499_v36 = vld [vmem:[#allocation2 + $0xe0] sm:$0xff]  ;;  %v3177_v17 = vadd.f32 %v14209_v57, %v3139_v29 }
 0x1ff   : > { %3296 = vst.msk [vmem:[#allocation2 + $0x109] sm:$0xff] %vm3219_vm4, %v3207_v37  ;;  %v11787_v21 = vadd.f32 %v3040_v50, %v1958_v40  ;;  %10887 = vmatmul.mubr.msk.f32.gmra.mrb[48].mxu1 %vm3219_vm4, %v14485_v30  ;;  %11468 = vmatprep.mubr.msk.f32.mxu0 %vm496_vm2, %v14027_v18  ;;  %v3456_v0 = vrot.slane %v14497_v59, 1  ;;  %v3457_v15 = vrot.slane %v14499_v36, 1  ;;  %v3210_v16 = vmax.f32 %v3178_v20, 0.0 }
 0x200   : > { %v3142_v26 = vmul.f32 %v11786_v49, %v14202_v11  ;;  %v10653_v6 = vpop.f32.mrb[26].mxu1  ;;  %v3209_v7 = vmax.f32 %v3177_v17, 0.0  ;;  %v10853_v55 = vpop.f32.mrb[26].mxu0  ;;  %v14518_v18 = vld [vmem:[#allocation2 + $0x100] sm:$0x3] }
 0x201   : > { %v3141_v37 = vmul.f32 %v11787_v21, %v14202_v11  ;;  %v1968_v29 = vpop.f32.mrb[27].mxu1  ;;  %v14513_v40 = vsel %vm413_vm1, %v3456_v0, %v3457_v15  ;;  %v14516_v50 = vsel %vm413_vm1, %v3457_v15, %v3459_v24  ;;  %3299 = vst.msk [vmem:[#allocation2 + $0x129] sm:$0xff] %vm3219_vm4, %v3210_v16  ;;  %v11788_v30 = vadd.f32 %v10853_v55, %v10653_v6  ;;  %v3050_v49 = vpop.f32.mrb[27].mxu0 }
 0x202   : > { %16497 = vst [vmem:[#allocation98_spill] sm:$0xff] %v14513_v40  ;;  %16498 = vst [vmem:[#allocation99_spill] sm:$0xff] %v14516_v50  ;;  %v3180_v20 = vadd.f32 %v14209_v57, %v3142_v26  ;;  %10889 = vmatprep.mubr.msk.f32.mxu1 %vm3219_vm4, %v14513_v40  ;;  %11469 = vmatmul.mubr.msk.f32.gmra.mrb[36].mxu0 %vm496_vm2, %v14032_v4  ;;  %v14526_v17 = vld [vmem:[#allocation2 + $0xf0] sm:$0xff]  ;;  %v14528_v21 = vld [vmem:[#allocation2 + $0xf8] sm:$0xff]  ;;  %v3464_v24 = vrot.slane %v14518_v18, 1  ;;  %v11789_v15 = vadd.f32 %v3050_v49, %v1968_v29 }
 0x203   : > { %3298 = vst.msk [vmem:[#allocation2 + $0x121] sm:$0xff] %vm3219_vm4, %v3209_v7  ;;  %v3179_v0 = vadd.f32 %v14209_v57, %v3141_v37  ;;  %10890 = vmatmul.mubr.msk.f32.gmra.mrb[50].mxu1 %vm3219_vm4, %v14516_v50  ;;  %11471 = vmatprep.mubr.msk.f32.mxu0 %vm496_vm2, %v14037_v43  ;;  %v3461_v55 = vrot.slane %v14526_v17, 1  ;;  %v3462_v4 = vrot.slane %v14528_v21, 1  ;;  %v3144_v26 = vmul.f32 %v11788_v30, %v14202_v11 }
 0x204   : > { %v3212_v16 = vmax.f32 %v3180_v20, 0.0  ;;  %v10656_v6 = vpop.f32.mrb[28].mxu1  ;;  %v3143_v7 = vmul.f32 %v11789_v15, %v14202_v11  ;;  %v10856_v13 = vpop.f32.mrb[28].mxu0  ;;  %v14547_v43 = vld [vmem:[#allocation2 + $0x118] sm:$0x3] }
 0x205   : > { %v3211_v40 = vmax.f32 %v3179_v0, 0.0  ;;  %v1978_v37 = vpop.f32.mrb[29].mxu1  ;;  %v14542_v29 = vsel %vm413_vm1, %v3461_v55, %v3462_v4  ;;  %v14545_v49 = vsel %vm413_vm1, %v3462_v4, %v3464_v24  ;;  %v3182_v20 = vadd.f32 %v14209_v57, %v3144_v26  ;;  %v3060_v30 = vpop.f32.mrb[29].mxu0 }
 0x206   : > { %16499 = vst [vmem:[#allocation100_spill] sm:$0xff] %v14542_v29  ;;  %16500 = vst [vmem:[#allocation101_spill] sm:$0xff] %v14545_v49  ;;  %v11790_v50 = vadd.f32 %v10856_v13, %v10656_v6  ;;  %10892 = vmatprep.mubr.msk.f32.mxu1 %vm3219_vm4, %v14542_v29  ;;  %11472 = vmatmul.mubr.msk.f32.gmra.mrb[38].mxu0 %vm496_vm2, %v14042_v32  ;;  %v14555_v0 = vld [vmem:[#allocation2 + $0x108] sm:$0xff]  ;;  %v14557_v15 = vld [vmem:[#allocation2 + $0x110] sm:$0xff]  ;;  %v3469_v24 = vrot.slane %v14547_v43, 1  ;;  %v3181_v55 = vadd.f32 %v14209_v57, %v3143_v7 }
 0x207   : > { %3301 = vst.msk [vmem:[#allocation2 + $0x141] sm:$0xff] %vm3219_vm4, %v3212_v16  ;;  %3300 = vst.msk [vmem:[#allocation2 + $0x139] sm:$0xff] %vm3219_vm4, %v3211_v40  ;;  %v11791_v4 = vadd.f32 %v3060_v30, %v1978_v37  ;;  %10893 = vmatmul.mubr.msk.f32.gmra.mrb[52].mxu1 %vm3219_vm4, %v14545_v49  ;;  %11474 = vmatprep.mubr.msk.f32.mxu0 %vm496_vm2, %v14047_v33  ;;  %v3466_v13 = vrot.slane %v14555_v0, 1  ;;  %v3467_v32 = vrot.slane %v14557_v15, 1  ;;  %v3214_v16 = vmax.f32 %v3182_v20, 0.0 }
 0x208   : > { %v3146_v26 = vmul.f32 %v11790_v50, %v14202_v11  ;;  %v10659_v6 = vpop.f32.mrb[30].mxu1  ;;  %v3213_v29 = vmax.f32 %v3181_v55, 0.0  ;;  %v10859_v19 = vpop.f32.mrb[30].mxu0  ;;  %v14576_v33 = vld [vmem:[#allocation2 + $0x130] sm:$0x3] }
 0x209   : > { %v3145_v40 = vmul.f32 %v11791_v4, %v14202_v11  ;;  %v1988_v7 = vpop.f32.mrb[31].mxu1  ;;  %v14571_v37 = vsel %vm413_vm1, %v3466_v13, %v3467_v32  ;;  %v14574_v30 = vsel %vm413_vm1, %v3467_v32, %v3469_v24  ;;  %3303 = vst.msk [vmem:[#allocation2 + $0x159] sm:$0xff] %vm3219_vm4, %v3214_v16  ;;  %v11792_v49 = vadd.f32 %v10859_v19, %v10659_v6  ;;  %v3070_v50 = vpop.f32.mrb[31].mxu0 }
 0x20a   : > { %16501 = vst [vmem:[#allocation102_spill] sm:$0xff] %v14571_v37  ;;  %16502 = vst [vmem:[#allocation103_spill] sm:$0xff] %v14574_v30  ;;  %v3184_v20 = vadd.f32 %v14209_v57, %v3146_v26  ;;  %10895 = vmatprep.mubr.msk.f32.mxu1 %vm3219_vm4, %v14571_v37  ;;  %11475 = vmatmul.mubr.msk.f32.gmra.mrb[40].mxu0 %vm496_vm2, %v14052_v39  ;;  %v14584_v55 = vld [vmem:[#allocation2 + $0x120] sm:$0xff]  ;;  %v14586_v4 = vld [vmem:[#allocation2 + $0x128] sm:$0xff]  ;;  %v3474_v24 = vrot.slane %v14576_v33, 1  ;;  %v11793_v32 = vadd.f32 %v3070_v50, %v1988_v7 }
 0x20b   : > { %3302 = vst.msk [vmem:[#allocation2 + $0x151] sm:$0xff] %vm3219_vm4, %v3213_v29  ;;  %v3183_v13 = vadd.f32 %v14209_v57, %v3145_v40  ;;  %10896 = vmatmul.mubr.msk.f32.gmra.mrb[54].mxu1 %vm3219_vm4, %v14574_v30  ;;  %11477 = vmatprep.mubr.msk.f32.mxu0 %vm496_vm2, %v14057_v8  ;;  %v3471_v19 = vrot.slane %v14584_v55, 1  ;;  %v3472_v39 = vrot.slane %v14586_v4, 1  ;;  %v3148_v26 = vmul.f32 %v11792_v49, %v14202_v11  ;;  %v16536_v30 = vld [vmem:[#allocation15_spill] sm:$0xff] }
 0x20c   : > { %v3216_v16 = vmax.f32 %v3184_v20, 0.0  ;;  %v3147_v37 = vmul.f32 %v11793_v32, %v14202_v11 }
 0x20d   : > { %v3215_v6 = vmax.f32 %v3183_v13, 0.0  ;;  %v14600_v29 = vsel %vm413_vm1, %v3471_v19, %v3472_v39  ;;  %v14603_v40 = vsel %vm413_vm1, %v3472_v39, %v3474_v24  ;;  %v3186_v8 = vadd.f32 %v14209_v57, %v3148_v26 }
 0x20e   : > { %16503 = vst [vmem:[#allocation104_spill] sm:$0xff] %v14600_v29  ;;  %16504 = vst [vmem:[#allocation105_spill] sm:$0xff] %v14603_v40  ;;  %v14605_v7 = vld [vmem:[#allocation2 + $0x148] sm:$0x3]  ;;  %10898 = vmatprep.mubr.msk.f32.mxu1 %vm3219_vm4, %v14600_v29  ;;  %11478 = vmatmul.mubr.msk.f32.gmra.mrb[42].mxu0 %vm496_vm2, %v14062_v3  ;;  %v14613_v49 = vld [vmem:[#allocation2 + $0x138] sm:$0xff]  ;;  %v3185_v50 = vadd.f32 %v14209_v57, %v3147_v37 }
 0x20f   : > { %3305 = vst.msk [vmem:[#allocation2 + $0x171] sm:$0xff] %vm3219_vm4, %v3216_v16  ;;  %v14615_v11 = vld [vmem:[#allocation2 + $0x140] sm:$0xff]  ;;  %v3479_v20 = vrot.slane %v14605_v7, 1  ;;  %3304 = vst.msk [vmem:[#allocation2 + $0x169] sm:$0xff] %vm3219_vm4, %v3215_v6  ;;  %10899 = vmatmul.mubr.msk.f32.gmra.mrb[56].mxu1 %vm3219_vm4, %v14603_v40  ;;  %11480 = vmatprep.mubr.msk.f32.mxu0 %vm496_vm2, %v14067_v1  ;;  %v3476_v24 = vrot.slane %v14613_v49, 1  ;;  %v3218_v13 = vmax.f32 %v3186_v8, 0.0 }
 0x210   : > { %v3477_v3 = vrot.slane %v14615_v11, 1  ;;  %v3217_v32 = vmax.f32 %v3185_v50, 0.0  ;;  %v14632_v16 = vld [vmem:[#allocation2 + $0x160] sm:$0x3]  ;;  %v16509_v50 = vld [vmem:[#allocation72_spill] sm:$0xff]  ;;  %v16535_v29 = vld [vmem:[#allocation14_spill] sm:$0xff] }
 0x211   : > { %3307 = vst.msk [vmem:[#allocation2 + $0x189] sm:$0xff] %vm3219_vm4, %v3218_v13  ;;  %v3484_v37 = vrot.slane %v14632_v16, 1  ;;  %v16510_v13 = vld [vmem:[#allocation73_spill] sm:$0xff]  ;;  %v16533_v40 = vld [vmem:[#allocation12_spill] sm:$0xff] }
 0x212   : > { %v14627_v19 = vsel %vm413_vm1, %v3476_v24, %v3477_v3  ;;  %v14630_v39 = vsel %vm413_vm1, %v3477_v3, %v3479_v20  ;;  %11481 = vmatmul.mubr.msk.f32.gmra.mrb[44].mxu0 %vm496_vm2, %v14072_v60  ;;  %v14639_v57 = vld [vmem:[#allocation2 + $0x150] sm:$0xff]  ;;  %v14641_v1 = vld [vmem:[#allocation2 + $0x158] sm:$0xff]  ;;  %3306 = vst.msk [vmem:[#allocation2 + $0x181] sm:$0xff] %vm3219_vm4, %v3217_v32 }
 0x213   : > { %16505 = vst [vmem:[#allocation106_spill] sm:$0xff] %v14627_v19  ;;  %16506 = vst [vmem:[#allocation107_spill] sm:$0xff] %v14630_v39  ;;  %10901 = vmatprep.mubr.msk.f32.mxu1 %vm3219_vm4, %v14627_v19  ;;  %11483 = vmatprep.mubr.msk.f32.mxu0 %vm496_vm2, %v14077_v34  ;;  %v3481_v26 = vrot.slane %v14639_v57, 1  ;;  %v3482_v6 = vrot.slane %v14641_v1, 1  ;;  %v16530_v19 = vld [vmem:[#allocation9_spill] sm:$0xff] }
 0x214   : > { %10902 = vmatmul.mubr.msk.f32.gmra.mrb[58].mxu1 %vm3219_vm4, %v14630_v39  ;;  %v14776_v39 = vld [vmem:[%s16026_s3 + $0x18] sm:$0xf] }
 0x215   : > { %v14652_v60 = vsel %vm413_vm1, %v3481_v26, %v3482_v6  ;;  %v14655_v8 = vsel %vm413_vm1, %v3482_v6, %v3484_v37 }
 0x216   : > { %16507 = vst [vmem:[#allocation108_spill] sm:$0xff] %v14652_v60  ;;  %16508 = vst [vmem:[#allocation109_spill] sm:$0xff] %v14655_v8  ;;  %v14657_v20 = vld [vmem:[#allocation2 + $0x178] sm:$0x3]  ;;  %10904 = vmatprep.mubr.msk.f32.mxu1 %vm3219_vm4, %v14652_v60  ;;  %11484 = vmatmul.mubr.msk.f32.gmra.mrb[46].mxu0 %vm496_vm2, %v16509_v50  ;;  %v14663_v24 = vld [vmem:[#allocation2 + $0x168] sm:$0xff] }
 0x217   : > { %v14665_v34 = vld [vmem:[#allocation2 + $0x170] sm:$0xff]  ;;  %v3489_v3 = vrot.slane %v14657_v20, 1  ;;  %11486 = vmatprep.mubr.msk.f32.mxu0 %vm496_vm2, %v16510_v13  ;;  %v3486_v32 = vrot.slane %v14663_v24, 1  ;;  %v16514_v13 = vld [vmem:[#allocation76_spill] sm:$0xff] }
 0x218   : > { %10905 = vmatmul.mubr.msk.f32.gmra.mrb[60].mxu1 %vm3219_vm4, %v14655_v8  ;;  %v3487_v37 = vrot.slane %v14665_v34, 1  ;;  %v16513_v50 = vld [vmem:[#allocation75_spill] sm:$0xff]  ;;  %v16515_v8 = vld [vmem:[#allocation5_spill] sm:$0xff]  ;;  %v16529_v60 = vld [vmem:[#allocation8_spill] sm:$0xff] }
 0x21a   : > { %v14675_v26 = vsel %vm413_vm1, %v3486_v32, %v3487_v37  ;;  %v14678_v6 = vsel %vm413_vm1, %v3487_v37, %v3489_v3  ;;  %11487 = vmatmul.mubr.msk.f32.gmra.mrb[48].mxu0 %vm496_vm2, %v16513_v50  ;;  %v16516_v32 = vld [vmem:[#allocation77_spill] sm:$0xff]  ;;  %v14695_v3 = vld [vmem:[%s16025_s2 + $0x18] sm:$0xff]  ;;  %v16517_v37 = vld [vmem:[#allocation7_spill] sm:$0xff] }
 0x21b   : > { %16511 = vst [vmem:[#allocation72_spill] sm:$0xff] %v14675_v26  ;;  %16512 = vst [vmem:[#allocation73_spill] sm:$0xff] %v14678_v6  ;;  %10907 = vmatprep.mubr.msk.f32.mxu1 %vm3219_vm4, %v14675_v26  ;;  %11489 = vmatprep.mubr.msk.f32.mxu0 %vm496_vm2, %v16514_v13  ;;  %v16518_v50 = vld [vmem:[#allocation78_spill] sm:$0xff]  ;;  %v16521_v13 = vld [vmem:[#allocation80_spill] sm:$0xff] }
 0x21c   : > { %10908 = vmatmul.mubr.msk.f32.gmra.mrb[62].mxu1 %vm3219_vm4, %v14678_v6  ;;  %v16519_v6 = vld [vmem:[#allocation74_spill] sm:$0xff] }
 0x21d   : > { %10912 = vmatprep.mubr.msk.f32.mxu1 %vm3219_vm4, %v16515_v8  ;;  %v16520_v8 = vld [vmem:[#allocation79_spill] sm:$0xff]  ;;  %v16528_v26 = vld [vmem:[#allocation6_spill] sm:$0xff] }
 0x21e   : > { %11490 = vmatmul.mubr.msk.f32.gmra.mrb[50].mxu0 %vm496_vm2, %v16516_v32  ;;  %v16523_v32 = vld [vmem:[#allocation82_spill] sm:$0xff] }
 0x21f   : > { %11492 = vmatprep.mubr.msk.f32.mxu0 %vm496_vm2, %v16518_v50  ;;  %v14726_v50 = vld [vmem:[%s12719_s18 + $0x150] sm:$0xff] }
 0x220   : > { %10913 = vmatmul.mubr.msk.f32.vlgmr.msra.gmra.mrb[32].mxu1 %vm3219_vm4, %v16517_v37  ;;  %v16524_v37 = vld [vmem:[#allocation83_spill] sm:$0xff] }
 0x221   : > { %10961 = vmatpush3.msra.mxu1 %v16519_v6  ;;  %10915 = vmatprep.mubr.msk.f32.mxu1 %vm3219_vm4, %v14251_v25  ;;  %v16522_v6 = vld [vmem:[#allocation81_spill] sm:$0xff] }
 0x222   : > { %11010 = vmatprep.subr.mxu1 %v14695_v3  ;;  %11493 = vmatmul.mubr.msk.f32.gmra.mrb[52].mxu0 %vm496_vm2, %v16520_v8  ;;  %v14733_v8 = vld [vmem:[%s12719_s18 + $0x158] sm:$0xff] }
 0x223   : > { %11495 = vmatprep.mubr.msk.f32.mxu0 %vm496_vm2, %v16521_v13  ;;  %v14740_v13 = vld [vmem:[%s12719_s18 + $0x168] sm:$0xff] }
 0x224   : > { %10916 = vmatmul.mubr.msk.f32.gmra.mrb[34].mxu1 %vm3219_vm4, %v14253_v61 }
 0x225   : > { %10918 = vmatprep.mubr.msk.f32.mxu1 %vm3219_vm4, %v14280_v27 }
 0x226   : > { %11496 = vmatmul.mubr.msk.f32.gmra.mrb[54].mxu0 %vm496_vm2, %v16522_v6  ;;  %v14747_v6 = vld [vmem:[%s12719_s18 + $0x170] sm:$0xff] }
 0x227   : > { %11498 = vmatprep.mubr.msk.f32.mxu0 %vm496_vm2, %v16523_v32  ;;  %16525 = vst [vmem:[#allocation75_spill] sm:$0xff] %v14747_v6  ;;  %v14754_v32 = vld [vmem:[%s12719_s18 + $0x180] sm:$0xff] }
 0x228   : > { %10919 = vmatmul.mubr.msk.f32.gmra.mrb[36].mxu1 %vm3219_vm4, %v14282_v28  ;;  %16526 = vst [vmem:[#allocation76_spill] sm:$0xff] %v14754_v32 }
 0x229   : > { %10921 = vmatprep.mubr.msk.f32.mxu1 %vm3219_vm4, %v14311_v31 }
 0x22a   : > { %11499 = vmatmul.mubr.msk.f32.gmra.mrb[56].mxu0 %vm496_vm2, %v16524_v37  ;;  %v14761_v37 = vld [vmem:[%s12719_s18 + $0x188] sm:$0xff] }
 0x22b   : > { %11501 = vmatprep.mubr.msk.f32.mxu0 %vm496_vm2, %v14726_v50  ;;  %16527 = vst [vmem:[#allocation5_spill] sm:$0xff] %v14761_v37 }
 0x22c   : > { %10922 = vmatmul.mubr.msk.f32.gmra.mrb[38].mxu1 %vm3219_vm4, %v14313_v5 }
 0x22d   : > { %10924 = vmatprep.mubr.msk.f32.mxu1 %vm3219_vm4, %v14342_v38 }
 0x22e   : > { %11502 = vmatmul.mubr.msk.f32.gmra.mrb[58].mxu0 %vm496_vm2, %v14733_v8 }
 0x22f   : > { %11504 = vmatprep.mubr.msk.f32.mxu0 %vm496_vm2, %v14740_v13 }
 0x230   : > { %10925 = vmatmul.mubr.msk.f32.gmra.mrb[40].mxu1 %vm3219_vm4, %v14344_v63 }
 0x231   : > { %10927 = vmatprep.mubr.msk.f32.mxu1 %vm3219_vm4, %v14372_v54 }
 0x232   : > { %11505 = vmatmul.mubr.msk.f32.gmra.mrb[60].mxu0 %vm496_vm2, %v14747_v6  ;;  %v16545_v6 = vld [vmem:[#allocation27_spill] sm:$0xff] }
 0x233   : > { %11507 = vmatprep.mubr.msk.f32.mxu0 %vm496_vm2, %v14754_v32 }
 0x234   : > { %10928 = vmatmul.mubr.msk.f32.gmra.mrb[42].mxu1 %vm3219_vm4, %v14374_v2 }
 0x235   : > { %10930 = vmatprep.mubr.msk.f32.mxu1 %vm3219_vm4, %v14401_v22 }
 0x236   : > { %11508 = vmatmul.mubr.msk.f32.gmra.mrb[62].mxu0 %vm496_vm2, %v14761_v37 }
 0x237   : > { %11512 = vmatprep.mubr.msk.f32.mxu0 %vm496_vm2, %v16528_v26  ;;  %v16532_v26 = vld [vmem:[#allocation11_spill] sm:$0xff] }
 0x238   : > { %10931 = vmatmul.mubr.msk.f32.gmra.mrb[44].mxu1 %vm3219_vm4, %v14403_v52 }
 0x239   : > { %10933 = vmatprep.mubr.msk.f32.mxu1 %vm3219_vm4, %v14430_v46 }
 0x23a   : > { %11513 = vmatmul.mubr.msk.f32.vlgmr.msra.gmra.mrb[32].mxu0 %vm496_vm2, %v16529_v60  ;;  %v16531_v60 = vld [vmem:[#allocation10_spill] sm:$0xff] }
 0x23b   : > { %11515 = vmatprep.mubr.msk.f32.mxu0 %vm496_vm2, %v16530_v19  ;;  %11561 = vmatpush3.msk.msra.mxu0 %vm561_vm0, %v14467_v9  ;;  %v16534_v9 = vld [vmem:[#allocation13_spill] sm:$0xff] }
 0x23c   : > { %10934 = vmatmul.mubr.msk.f32.gmra.mrb[46].mxu1 %vm3219_vm4, %v14432_v23  ;;  %11610 = vmatprep.subr.msk.mxu0 %vm561_vm0, %v14776_v39 }
 0x23d   : > { %10936 = vmatprep.mubr.msk.f32.mxu1 %vm3219_vm4, %v14459_v10 }
 0x23e   : > { %11516 = vmatmul.mubr.msk.f32.gmra.mrb[34].mxu0 %vm496_vm2, %v16531_v60  ;;  %v12575_v60 = vld [vmem:[#allocation2 + $0x8] sm:$0xff] }
 0x23f   : > { %11518 = vmatprep.mubr.msk.f32.mxu0 %vm496_vm2, %v16532_v26  ;;  %v4072_v19 = vrot.slane %v12575_v60, 2  ;;  %v4076_v60 = vrot.slane %v14251_v25, 2 }
 0x240   : > { %10937 = vmatmul.mubr.msk.f32.gmra.mrb[48].mxu1 %vm3219_vm4, %v14461_v14 }
 0x241   : > { %10939 = vmatprep.mubr.msk.f32.mxu1 %vm3219_vm4, %v14497_v59 }
 0x242   : > { %11519 = vmatmul.mubr.msk.f32.gmra.mrb[36].mxu0 %vm496_vm2, %v16533_v40  ;;  %v16537_v40 = vld [vmem:[#allocation16_spill] sm:$0xff] }
 0x243   : > { %11521 = vmatprep.mubr.msk.f32.mxu0 %vm496_vm2, %v16534_v9  ;;  %v16538_v9 = vld [vmem:[#allocation17_spill] sm:$0xff] }
 0x244   : > { %10940 = vmatmul.mubr.msk.f32.gmra.mrb[50].mxu1 %vm3219_vm4, %v14499_v36 }
 0x245   : > { %10942 = vmatprep.mubr.msk.f32.mxu1 %vm3219_vm4, %v14526_v17 }
 0x246   : > { %11522 = vmatmul.mubr.msk.f32.gmra.mrb[38].mxu0 %vm496_vm2, %v16535_v29  ;;  %v16539_v29 = vld [vmem:[#allocation18_spill] sm:$0xff] }
 0x247   : > { %11524 = vmatprep.mubr.msk.f32.mxu0 %vm496_vm2, %v16536_v30  ;;  %v16540_v30 = vld [vmem:[#allocation19_spill] sm:$0xff] }
 0x248   : > { %10943 = vmatmul.mubr.msk.f32.gmra.mrb[52].mxu1 %vm3219_vm4, %v14528_v21 }
 0x249   : > { %10945 = vmatprep.mubr.msk.f32.mxu1 %vm3219_vm4, %v14555_v0 }
 0x24a   : > { %11525 = vmatmul.mubr.msk.f32.gmra.mrb[40].mxu0 %vm496_vm2, %v16537_v40  ;;  %v16541_v40 = vld [vmem:[#allocation20_spill] sm:$0xff] }
 0x24b   : > { %11527 = vmatprep.mubr.msk.f32.mxu0 %vm496_vm2, %v16538_v9  ;;  %v16542_v9 = vld [vmem:[#allocation21_spill] sm:$0xff] }
 0x24c   : > { %10946 = vmatmul.mubr.msk.f32.gmra.mrb[54].mxu1 %vm3219_vm4, %v14557_v15 }
 0x24d   : > { %10948 = vmatprep.mubr.msk.f32.mxu1 %vm3219_vm4, %v14584_v55 }
 0x24e   : > { %11528 = vmatmul.mubr.msk.f32.gmra.mrb[42].mxu0 %vm496_vm2, %v16539_v29  ;;  %v12574_v29 = vld [vmem:[#allocation2] sm:$0xff] }
 0x24f   : > { %11530 = vmatprep.mubr.msk.f32.mxu0 %vm496_vm2, %v16540_v30  ;;  %v4071_v26 = vrot.slane %v12574_v29, 2  ;;  %v16543_v30 = vld [vmem:[#allocation22_spill] sm:$0xff]  ;;  %v16546_v29 = vld [vmem:[#allocation29_spill] sm:$0xff] }
 0x250   : > { %10949 = vmatmul.mubr.msk.f32.gmra.mrb[56].mxu1 %vm3219_vm4, %v14586_v4 }
 0x251   : > { %10951 = vmatprep.mubr.msk.f32.mxu1 %vm3219_vm4, %v14613_v49  ;;  %v4073_v32 = vsel %vm1082_vm3, %v4071_v26, %v4072_v19  ;;  %v4079_v26 = vrot.slane %v14244_v58, 2  ;;  %v16549_v58 = vld [vmem:[#allocation35_spill] sm:$0xff] }
 0x252   : > { %11531 = vmatmul.mubr.msk.f32.gmra.mrb[44].mxu0 %vm496_vm2, %v16541_v40  ;;  %v16544_v40 = vld [vmem:[#allocation25_spill] sm:$0xff] }
 0x253   : > { %11533 = vmatprep.mubr.msk.f32.mxu0 %vm496_vm2, %v16542_v9  ;;  %v12576_v9 = vld [vmem:[#allocation2 + $0x10] sm:$0x3] }
 0x254   : > { %10952 = vmatmul.mubr.msk.f32.gmra.mrb[58].mxu1 %vm3219_vm4, %v14615_v11  ;;  %v4074_v37 = vrot.slane %v12576_v9, 2  ;;  %v16547_v9 = vld [vmem:[#allocation31_spill] sm:$0xff] }
 0x255   : > { %10954 = vmatprep.mubr.msk.f32.mxu1 %vm3219_vm4, %v14639_v57 }
 0x256   : > { %11534 = vmatmul.mubr.msk.f32.gmra.mrb[46].mxu0 %vm496_vm2, %v16543_v30  ;;  %v4075_v30 = vsel %vm1082_vm3, %v4072_v19, %v4074_v37  ;;  %v4081_v19 = vrot.slane %v14280_v27, 2  ;;  %v4084_v37 = vrot.slane %v14271_v35, 2 }
 0x257   : > { %11536 = vmatprep.mubr.msk.f32.mxu0 %vm496_vm2, %v16544_v40  ;;  %v4077_v40 = vrot.slane %v14253_v61, 2  ;;  %v16548_v61 = vld [vmem:[#allocation33_spill] sm:$0xff] }
 0x258   : > { %10955 = vmatmul.mubr.msk.f32.gmra.mrb[60].mxu1 %vm3219_vm4, %v14641_v1 }
 0x259   : > { %10957 = vmatprep.mubr.msk.f32.mxu1 %vm3219_vm4, %v14663_v24  ;;  %v14865_v25 = vsel %vm1082_vm3, %v4076_v60, %v4077_v40  ;;  %v4087_v60 = vrot.slane %v14313_v5, 2  ;;  %v4091_v5 = vrot.slane %v14342_v38, 2 }
 0x25a   : > { %11537 = vmatmul.mubr.msk.f32.gmra.mrb[48].mxu0 %vm496_vm2, %v16545_v6  ;;  %v14861_v6 = vld [vmem:[%s16025_s2 + $0x20] sm:$0xff] }
 0x25b   : > { %11539 = vmatprep.mubr.msk.f32.mxu0 %vm496_vm2, %v16546_v29 }
 0x25c   : > { %10958 = vmatmul.mubr.msk.f32.gmra.mrb[62].mxu1 %vm3219_vm4, %v14665_v34 }
 0x25d   : > { %10962 = vmatprep.mubr.msk.f32.mxu1 %vm3219_vm4, %v4073_v32  ;;  %v4082_v32 = vrot.slane %v14282_v28, 2  ;;  %v16551_v28 = vld [vmem:[#allocation37_spill] sm:$0xff] }
 0x25e   : > { %11540 = vmatmul.mubr.msk.f32.gmra.mrb[50].mxu0 %vm496_vm2, %v16547_v9 }
 0x25f   : > { %11542 = vmatprep.mubr.msk.f32.mxu0 %vm496_vm2, %v16548_v61  ;;  %v14884_v27 = vsel %vm1082_vm3, %v4081_v19, %v4082_v32  ;;  %v14895_v35 = vsel %vm1082_vm3, %v4082_v32, %v4084_v37  ;;  %v16556_v32 = vld [vmem:[#allocation44_spill] sm:$0xff]  ;;  %v4094_v37 = vrot.slane %v14333_v45, 2 }
 0x260   : > { %10963 = vmatmul.mubr.msk.f32.vlgmr.msra.gmra.mrb[32].mxu1 %vm3219_vm4, %v4075_v30  ;;  %v14878_v30 = vsel %vm1082_vm3, %v4077_v40, %v4079_v26  ;;  %16550 = vst [vmem:[#allocation77_spill] sm:$0xff] %v14884_v27  ;;  %v16552_v40 = vld [vmem:[#allocation39_spill] sm:$0xff]  ;;  %16553 = vst [vmem:[#allocation7_spill] sm:$0xff] %v14895_v35  ;;  %v4089_v26 = vrot.slane %v14302_v44, 2 }
 0x261   : > { %11011 = vmatpush3.msra.mxu1 %v14695_v3  ;;  %10965 = vmatprep.mubr.msk.f32.mxu1 %vm3219_vm4, %v14865_v25  ;;  %v4086_v3 = vrot.slane %v14311_v31, 2  ;;  %v16555_v31 = vld [vmem:[#allocation41_spill] sm:$0xff] }
 0x262   : > { %11060 = vmatprep.subr.mxu1 %v14861_v6  ;;  %11543 = vmatmul.mubr.msk.f32.gmra.mrb[52].mxu0 %vm496_vm2, %v16549_v58  ;;  %v14912_v44 = vsel %vm1082_vm3, %v4087_v60, %v4089_v26  ;;  %v4099_v26 = vrot.slane %v14364_v53, 2 }
 0x263   : > { %11545 = vmatprep.mubr.msk.f32.mxu0 %vm496_vm2, %v16551_v28  ;;  %v14901_v19 = vsel %vm1082_vm3, %v4086_v3, %v4087_v60  ;;  %16557 = vst [vmem:[#allocation74_spill] sm:$0xff] %v14912_v44  ;;  %v16560_v60 = vld [vmem:[#allocation47_spill] sm:$0xff] }
 0x264   : > { %10966 = vmatmul.mubr.msk.f32.gmra.mrb[34].mxu1 %vm3219_vm4, %v14878_v30  ;;  %16554 = vst [vmem:[#allocation78_spill] sm:$0xff] %v14901_v19 }
 0x265   : > { %10968 = vmatprep.mubr.msk.f32.mxu1 %vm3219_vm4, %v14884_v27  ;;  %v4092_v27 = vrot.slane %v14344_v63, 2 }
 0x266   : > { %11546 = vmatmul.mubr.msk.f32.gmra.mrb[54].mxu0 %vm496_vm2, %v16552_v40 }
 0x267   : > { %11548 = vmatprep.mubr.msk.f32.mxu0 %vm496_vm2, %v16555_v31  ;;  %v14918_v3 = vsel %vm1082_vm3, %v4091_v5, %v4092_v27  ;;  %v16559_v31 = vld [vmem:[#allocation46_spill] sm:$0xff]  ;;  %v14929_v45 = vsel %vm1082_vm3, %v4092_v27, %v4094_v37  ;;  %v4104_v37 = vrot.slane %v14393_v51, 2 }
 0x268   : > { %10969 = vmatmul.mubr.msk.f32.gmra.mrb[36].mxu1 %vm3219_vm4, %v14895_v35  ;;  %16558 = vst [vmem:[#allocation79_spill] sm:$0xff] %v14918_v3  ;;  %v4096_v35 = vrot.slane %v14372_v54, 2  ;;  %16561 = vst [vmem:[#allocation80_spill] sm:$0xff] %v14929_v45  ;;  %v16564_v27 = vld [vmem:[#allocation50_spill] sm:$0xff] }
 0x269   : > { %10971 = vmatprep.mubr.msk.f32.mxu1 %vm3219_vm4, %v14901_v19  ;;  %v4097_v19 = vrot.slane %v14374_v2, 2 }
 0x26a   : > { %11549 = vmatmul.mubr.msk.f32.gmra.mrb[56].mxu0 %vm496_vm2, %v16556_v32 }
 0x26b   : > { %11551 = vmatprep.mubr.msk.f32.mxu0 %vm496_vm2, %v16559_v31  ;;  %v14935_v5 = vsel %vm1082_vm3, %v4096_v35, %v4097_v19  ;;  %v16563_v31 = vld [vmem:[#allocation48_spill] sm:$0xff]  ;;  %v14946_v53 = vsel %vm1082_vm3, %v4097_v19, %v4099_v26  ;;  %v16568_v19 = vld [vmem:[#allocation3_spill] sm:$0xff]  ;;  %v4109_v26 = vrot.slane %v14422_v62, 2 }
 0x26c   : > { %10972 = vmatmul.mubr.msk.f32.gmra.mrb[38].mxu1 %vm3219_vm4, %v14912_v44  ;;  %16562 = vst [vmem:[#allocation81_spill] sm:$0xff] %v14935_v5  ;;  %v4101_v44 = vrot.slane %v14401_v22, 2  ;;  %16565 = vst [vmem:[#allocation82_spill] sm:$0xff] %v14946_v53 }
 0x26d   : > { %10974 = vmatprep.mubr.msk.f32.mxu1 %vm3219_vm4, %v14918_v3  ;;  %v4102_v3 = vrot.slane %v14403_v52, 2 }
 0x26e   : > { %11552 = vmatmul.mubr.msk.f32.gmra.mrb[58].mxu0 %vm496_vm2, %v16560_v60 }
 0x26f   : > { %11554 = vmatprep.mubr.msk.f32.mxu0 %vm496_vm2, %v16563_v31  ;;  %v14952_v35 = vsel %vm1082_vm3, %v4101_v44, %v4102_v3  ;;  %v16567_v31 = vld [vmem:[#allocation45_spill] sm:$0xff]  ;;  %v14963_v51 = vsel %vm1082_vm3, %v4102_v3, %v4104_v37  ;;  %v16571_v3 = vld [vmem:[#allocation24_spill] sm:$0xff]  ;;  %v4114_v37 = vrot.slane %v14451_v42, 2 }
 0x270   : > { %10975 = vmatmul.mubr.msk.f32.gmra.mrb[40].mxu1 %vm3219_vm4, %v14929_v45  ;;  %16566 = vst [vmem:[#allocation83_spill] sm:$0xff] %v14952_v35  ;;  %v4106_v45 = vrot.slane %v14430_v46, 2  ;;  %v16575_v42 = vld [vmem:[#allocation28_spill] sm:$0xff] }
 0x271   : > { %10977 = vmatprep.mubr.msk.f32.mxu1 %vm3219_vm4, %v14935_v5  ;;  %v4107_v5 = vrot.slane %v14432_v23, 2 }
 0x272   : > { %11555 = vmatmul.mubr.msk.f32.gmra.mrb[60].mxu0 %vm496_vm2, %v16564_v27 }
 0x273   : > { %11557 = vmatprep.mubr.msk.f32.mxu0 %vm496_vm2, %v16567_v31  ;;  %v14969_v44 = vsel %vm1082_vm3, %v4106_v45, %v4107_v5  ;;  %v16570_v31 = vld [vmem:[#allocation23_spill] sm:$0xff]  ;;  %v14980_v62 = vsel %vm1082_vm3, %v4107_v5, %v4109_v26  ;;  %v14986_v45 = vld [vmem:[%s16026_s3 + $0x1c] sm:$0xf]  ;;  %v4117_v5 = vrot.slane %v14499_v36, 2  ;;  %v4119_v26 = vrot.slane %v14487_v12, 2 }
 0x274   : > { %10978 = vmatmul.mubr.msk.f32.gmra.mrb[42].mxu1 %vm3219_vm4, %v14946_v53  ;;  %16569 = vst [vmem:[#allocation6_spill] sm:$0xff] %v14969_v44  ;;  %v4111_v53 = vrot.slane %v14459_v10, 2  ;;  %16572 = vst [vmem:[#allocation8_spill] sm:$0xff] %v14980_v62 }
 0x275   : > { %10980 = vmatprep.mubr.msk.f32.mxu1 %vm3219_vm4, %v14952_v35  ;;  %v4112_v35 = vrot.slane %v14461_v14, 2  ;;  %v15023_v12 = vsel %vm1082_vm3, %v4117_v5, %v4119_v26  ;;  %v4129_v26 = vrot.slane %v14547_v43, 2 }
 0x276   : > { %11558 = vmatmul.mubr.msk.f32.gmra.mrb[62].mxu0 %vm496_vm2, %v16568_v19  ;;  %16580 = vst [vmem:[#allocation35_spill] sm:$0xff] %v15023_v12 }
 0x277   : > { %11562 = vmatprep.mubr.msk.f32.mxu0 %vm496_vm2, %v16570_v31  ;;  %v14991_v31 = vsel %vm1082_vm3, %v4111_v53, %v4112_v35  ;;  %v15006_v53 = vsel %vm1082_vm3, %v4112_v35, %v4114_v37  ;;  %v16579_v35 = vld [vmem:[#allocation32_spill] sm:$0xff]  ;;  %v4124_v37 = vrot.slane %v14518_v18, 2 }
 0x278   : > { %10981 = vmatmul.mubr.msk.f32.gmra.mrb[44].mxu1 %vm3219_vm4, %v14963_v51  ;;  %16573 = vst [vmem:[#allocation29_spill] sm:$0xff] %v14991_v31  ;;  %16576 = vst [vmem:[#allocation31_spill] sm:$0xff] %v15006_v53 }
 0x279   : > { %10983 = vmatprep.mubr.msk.f32.mxu1 %vm3219_vm4, %v14969_v44  ;;  %v16574_v44 = vld [vmem:[#allocation26_spill] sm:$0xff] }
 0x27a   : > { %11563 = vmatmul.mubr.msk.f32.vlgmr.msra.gmra.mrb[32].mxu0 %vm496_vm2, %v16571_v3  ;;  %v4116_v3 = vrot.slane %v14497_v59, 2 }
 0x27b   : > { %11565 = vmatprep.mubr.msk.f32.mxu0 %vm496_vm2, %v16574_v44  ;;  %11611 = vmatpush3.msk.msra.mxu0 %vm561_vm0, %v14776_v39  ;;  %v4121_v39 = vrot.slane %v14526_v17, 2 }
 0x27c   : > { %10984 = vmatmul.mubr.msk.f32.gmra.mrb[46].mxu1 %vm3219_vm4, %v14980_v62  ;;  %11660 = vmatprep.subr.msk.mxu0 %vm561_vm0, %v14986_v45  ;;  %v15012_v44 = vsel %vm1082_vm3, %v4116_v3, %v4117_v5  ;;  %v4122_v62 = vrot.slane %v14528_v21, 2  ;;  %v16583_v5 = vld [vmem:[#allocation36_spill] sm:$0xff] }
 0x27d   : > { %10986 = vmatprep.mubr.msk.f32.mxu1 %vm3219_vm4, %v14991_v31  ;;  %16577 = vst [vmem:[#allocation33_spill] sm:$0xff] %v15012_v44  ;;  %v16578_v31 = vld [vmem:[#allocation30_spill] sm:$0xff] }
 0x27e   : > { %11566 = vmatmul.mubr.msk.f32.gmra.mrb[34].mxu0 %vm496_vm2, %v16575_v42  ;;  %v15029_v3 = vsel %vm1082_vm3, %v4121_v39, %v4122_v62  ;;  %v15040_v18 = vsel %vm1082_vm3, %v4122_v62, %v4124_v37  ;;  %v16587_v62 = vld [vmem:[#allocation40_spill] sm:$0xff]  ;;  %v4134_v37 = vrot.slane %v14576_v33, 2 }
 0x27f   : > { %11568 = vmatprep.mubr.msk.f32.mxu0 %vm496_vm2, %v16578_v31  ;;  %16581 = vst [vmem:[#allocation37_spill] sm:$0xff] %v15029_v3  ;;  %v16582_v31 = vld [vmem:[#allocation34_spill] sm:$0xff]  ;;  %16584 = vst [vmem:[#allocation39_spill] sm:$0xff] %v15040_v18 }
 0x280   : > { %10987 = vmatmul.mubr.msk.f32.gmra.mrb[48].mxu1 %vm3219_vm4, %v15006_v53  ;;  %v4126_v53 = vrot.slane %v14555_v0, 2 }
 0x281   : > { %10989 = vmatprep.mubr.msk.f32.mxu1 %vm3219_vm4, %v15012_v44  ;;  %v4127_v44 = vrot.slane %v14557_v15, 2 }
 0x282   : > { %11569 = vmatmul.mubr.msk.f32.gmra.mrb[36].mxu0 %vm496_vm2, %v16579_v35 }
 0x283   : > { %11571 = vmatprep.mubr.msk.f32.mxu0 %vm496_vm2, %v16582_v31  ;;  %v15046_v39 = vsel %vm1082_vm3, %v4126_v53, %v4127_v44  ;;  %v16586_v31 = vld [vmem:[#allocation38_spill] sm:$0xff]  ;;  %v15057_v43 = vsel %vm1082_vm3, %v4127_v44, %v4129_v26  ;;  %v4139_v44 = vrot.slane %v14605_v7, 2  ;;  %v4141_v26 = vrot.slane %v14639_v57, 2 }
 0x284   : > { %10990 = vmatmul.mubr.msk.f32.gmra.mrb[50].mxu1 %vm3219_vm4, %v15023_v12  ;;  %16585 = vst [vmem:[#allocation44_spill] sm:$0xff] %v15046_v39  ;;  %v4131_v12 = vrot.slane %v14584_v55, 2 }
 0x285   : > { %10992 = vmatprep.mubr.msk.f32.mxu1 %vm3219_vm4, %v15029_v3  ;;  %v4132_v3 = vrot.slane %v14586_v4, 2 }
 0x286   : > { %11572 = vmatmul.mubr.msk.f32.gmra.mrb[38].mxu0 %vm496_vm2, %v16583_v5 }
 0x287   : > { %11574 = vmatprep.mubr.msk.f32.mxu0 %vm496_vm2, %v16586_v31  ;;  %v15063_v53 = vsel %vm1082_vm3, %v4131_v12, %v4132_v3  ;;  %v16589_v31 = vld [vmem:[#allocation42_spill] sm:$0xff]  ;;  %v15074_v33 = vsel %vm1082_vm3, %v4132_v3, %v4134_v37  ;;  %v4144_v3 = vrot.slane %v14632_v16, 2  ;;  %v4146_v37 = vrot.slane %v14663_v24, 2 }
 0x288   : > { %10993 = vmatmul.mubr.msk.f32.gmra.mrb[52].mxu1 %vm3219_vm4, %v15040_v18  ;;  %16588 = vst [vmem:[#allocation47_spill] sm:$0xff] %v15063_v53  ;;  %v4136_v18 = vrot.slane %v14613_v49, 2 }
 0x289   : > { %10995 = vmatprep.mubr.msk.f32.mxu1 %vm3219_vm4, %v15046_v39  ;;  %v4137_v39 = vrot.slane %v14615_v11, 2 }
 0x28a   : > { %11575 = vmatmul.mubr.msk.f32.gmra.mrb[40].mxu0 %vm496_vm2, %v16587_v62 }
 0x28b   : > { %11577 = vmatprep.mubr.msk.f32.mxu0 %vm496_vm2, %v16589_v31  ;;  %v15080_v12 = vsel %vm1082_vm3, %v4136_v18, %v4137_v39  ;;  %v15091_v7 = vsel %vm1082_vm3, %v4137_v39, %v4139_v44  ;;  %v16592_v39 = vld [vmem:[#allocation51_spill] sm:$0xff]  ;;  %v4149_v44 = vrot.slane %v14657_v20, 2  ;;  %v16596_v20 = vld [vmem:[#allocation54_spill] sm:$0xff] }
 0x28c   : > { %10996 = vmatmul.mubr.msk.f32.gmra.mrb[54].mxu1 %vm3219_vm4, %v15057_v43  ;;  %16590 = vst [vmem:[#allocation50_spill] sm:$0xff] %v15080_v12 }
 0x28d   : > { %10998 = vmatprep.mubr.msk.f32.mxu1 %vm3219_vm4, %v15063_v53  ;;  %v4142_v53 = vrot.slane %v14641_v1, 2 }
 0x28e   : > { %11578 = vmatmul.mubr.msk.f32.gmra.mrb[42].mxu0 %vm496_vm2, %v16393_v56 }
 0x28f   : > { %11580 = vmatprep.mubr.msk.f32.mxu0 %vm496_vm2, %v13190_v48  ;;  %v15097_v18 = vsel %vm1082_vm3, %v4141_v26, %v4142_v53  ;;  %v15108_v16 = vsel %vm1082_vm3, %v4142_v53, %v4144_v3  ;;  %v12577_v3 = vld [vmem:[#allocation2 + $0x18] sm:$0xff] }
 0x290   : > { %10999 = vmatmul.mubr.msk.f32.gmra.mrb[56].mxu1 %vm3219_vm4, %v15074_v33  ;;  %16591 = vst [vmem:[#allocation3_spill] sm:$0xff] %v15097_v18 }
 0x291   : > { %11001 = vmatprep.mubr.msk.f32.mxu1 %vm3219_vm4, %v15080_v12  ;;  %v4147_v12 = vrot.slane %v14665_v34, 2 }
 0x292   : > { %11581 = vmatmul.mubr.msk.f32.gmra.mrb[44].mxu0 %vm496_vm2, %v13207_v41 }
 0x293   : > { %11583 = vmatprep.mubr.msk.f32.mxu0 %vm496_vm2, %v13214_v47  ;;  %v15114_v26 = vsel %vm1082_vm3, %v4146_v37, %v4147_v12  ;;  %v16594_v47 = vld [vmem:[#allocation52_spill] sm:$0xff]  ;;  %v15123_v53 = vsel %vm1082_vm3, %v4147_v12, %v4149_v44  ;;  %v16597_v37 = vld [vmem:[#allocation55_spill] sm:$0xff] }
 0x294   : > { %11002 = vmatmul.mubr.msk.f32.gmra.mrb[58].mxu1 %vm3219_vm4, %v15091_v7  ;;  %16593 = vst [vmem:[#allocation23_spill] sm:$0xff] %v15114_v26  ;;  %v16598_v12 = vld [vmem:[#allocation56_spill] sm:$0xff]  ;;  %v15141_v44 = vld [vmem:[#allocation2 + $0x30] sm:$0xff] }
 0x295   : > { %11004 = vmatprep.mubr.msk.f32.mxu1 %vm3219_vm4, %v15097_v18  ;;  %v16595_v18 = vld [vmem:[#allocation53_spill] sm:$0xff]  ;;  %16599 = vst [vmem:[#allocation24_spill] sm:$0xff] %v15141_v44 }
 0x296   : > { %11584 = vmatmul.mubr.msk.f32.gmra.mrb[46].mxu0 %vm496_vm2, %v16592_v39 }
 0x297   : > { %11586 = vmatprep.mubr.msk.f32.mxu0 %vm496_vm2, %v16594_v47 }
 0x298   : > { %11005 = vmatmul.mubr.msk.f32.gmra.mrb[60].mxu1 %vm3219_vm4, %v15108_v16 }
 0x299   : > { %11007 = vmatprep.mubr.msk.f32.mxu1 %vm3219_vm4, %v15114_v26  ;;  %v15135_v26 = vld [vmem:[%s16025_s2 + $0x28] sm:$0xff] }
 0x29a   : > { %11587 = vmatmul.mubr.msk.f32.gmra.mrb[48].mxu0 %vm496_vm2, %v16595_v18  ;;  %v12578_v18 = vld [vmem:[#allocation2 + $0x20] sm:$0xff] }
 0x29b   : > { %11589 = vmatprep.mubr.msk.f32.mxu0 %vm496_vm2, %v16596_v20 }
 0x29c   : > { %11008 = vmatmul.mubr.msk.f32.gmra.mrb[62].mxu1 %vm3219_vm4, %v15123_v53 }
 0x29d   : > { %11012 = vmatprep.mubr.msk.f32.mxu1 %vm3219_vm4, %v12577_v3  ;;  %v16600_v3 = vld [vmem:[#allocation57_spill] sm:$0xff] }
 0x29e   : > { %11590 = vmatmul.mubr.msk.f32.gmra.mrb[50].mxu0 %vm496_vm2, %v16597_v37  ;;  %v15148_v37 = vld [vmem:[#allocation2 + $0x38] sm:$0xff] }
 0x29f   : > { %11592 = vmatprep.mubr.msk.f32.mxu0 %vm496_vm2, %v16598_v12  ;;  %v15154_v12 = vld [vmem:[#allocation2 + $0x48] sm:$0xff] }
 0x2a0   : > { %11013 = vmatmul.mubr.msk.f32.vlgmr.msra.gmra.mrb[32].mxu1 %vm3219_vm4, %v12578_v18  ;;  %v16601_v18 = vld [vmem:[#allocation58_spill] sm:$0xff]  ;;  %16602 = vst [vmem:[#allocation28_spill] sm:$0xff] %v15154_v12 }
 0x2a1   : > { %11061 = vmatpush3.msra.mxu1 %v14861_v6  ;;  %11015 = vmatprep.mubr.msk.f32.mxu1 %vm3219_vm4, %v15141_v44  ;;  %v16603_v6 = vld [vmem:[#allocation59_spill] sm:$0xff] }
 0x2a2   : > { %11110 = vmatprep.subr.mxu1 %v15135_v26  ;;  %11593 = vmatmul.mubr.msk.f32.gmra.mrb[52].mxu0 %vm496_vm2, %v16600_v3  ;;  %v15160_v44 = vld [vmem:[#allocation2 + $0x50] sm:$0xff]  ;;  %v16605_v3 = vld [vmem:[#allocation60_spill] sm:$0xff] }
 0x2a3   : > { %11595 = vmatprep.mubr.msk.f32.mxu0 %vm496_vm2, %v16601_v18  ;;  %16604 = vst [vmem:[#allocation32_spill] sm:$0xff] %v15160_v44  ;;  %v16606_v18 = vld [vmem:[#allocation61_spill] sm:$0xff] }
 0x2a4   : > { %11016 = vmatmul.mubr.msk.f32.gmra.mrb[34].mxu1 %vm3219_vm4, %v15148_v37 }
 0x2a5   : > { %11018 = vmatprep.mubr.msk.f32.mxu1 %vm3219_vm4, %v15154_v12  ;;  %v16607_v12 = vld [vmem:[#allocation62_spill] sm:$0xff] }
 0x2a6   : > { %11596 = vmatmul.mubr.msk.f32.gmra.mrb[54].mxu0 %vm496_vm2, %v16603_v6 }
 0x2a7   : > { %11598 = vmatprep.mubr.msk.f32.mxu0 %vm496_vm2, %v16605_v3 }
 0x2a8   : > { %11019 = vmatmul.mubr.msk.f32.gmra.mrb[36].mxu1 %vm3219_vm4, %v15160_v44  ;;  %v16608_v44 = vld [vmem:[#allocation63_spill] sm:$0xff] }
 0x2a9   : > { %11021 = vmatprep.mubr.msk.f32.mxu1 %vm3219_vm4, %v14342_v38  ;;  %v16609_v38 = vld [vmem:[#allocation64_spill] sm:$0xff] }
 0x2aa   : > { %11599 = vmatmul.mubr.msk.f32.gmra.mrb[56].mxu0 %vm496_vm2, %v16606_v18 }
 0x2ab   : > { %11601 = vmatprep.mubr.msk.f32.mxu0 %vm496_vm2, %v16607_v12 }
 0x2ac   : > { %11022 = vmatmul.mubr.msk.f32.gmra.mrb[38].mxu1 %vm3219_vm4, %v14344_v63  ;;  %v16610_v63 = vld [vmem:[#allocation65_spill] sm:$0xff] }
 0x2ad   : > { %11024 = vmatprep.mubr.msk.f32.mxu1 %vm3219_vm4, %v14372_v54  ;;  %v16611_v54 = vld [vmem:[#allocation66_spill] sm:$0xff] }
 0x2ae   : > { %11602 = vmatmul.mubr.msk.f32.gmra.mrb[58].mxu0 %vm496_vm2, %v16608_v44 }
 0x2af   : > { %11604 = vmatprep.mubr.msk.f32.mxu0 %vm496_vm2, %v16609_v38 }
 0x2b0   : > { %11025 = vmatmul.mubr.msk.f32.gmra.mrb[40].mxu1 %vm3219_vm4, %v14374_v2  ;;  %v16612_v2 = vld [vmem:[#allocation67_spill] sm:$0xff] }
 0x2b1   : > { %11027 = vmatprep.mubr.msk.f32.mxu1 %vm3219_vm4, %v14401_v22  ;;  %v12583_v22 = vld [vmem:[%s12719_s18 + $0x30] sm:$0xff] }
 0x2b2   : > { %11605 = vmatmul.mubr.msk.f32.gmra.mrb[60].mxu0 %vm496_vm2, %v16610_v63 }
 0x2b3   : > { %11607 = vmatprep.mubr.msk.f32.mxu0 %vm496_vm2, %v16611_v54 }
 0x2b4   : > { %11028 = vmatmul.mubr.msk.f32.gmra.mrb[42].mxu1 %vm3219_vm4, %v14403_v52  ;;  %v12584_v52 = vld [vmem:[%s12719_s18 + $0x38] sm:$0xff] }
 0x2b5   : > { %11030 = vmatprep.mubr.msk.f32.mxu1 %vm3219_vm4, %v14430_v46  ;;  %v15205_v46 = vld [vmem:[%s16026_s3 + $0x20] sm:$0xf] }
 0x2b6   : > { %11608 = vmatmul.mubr.msk.f32.gmra.mrb[62].mxu0 %vm496_vm2, %v16612_v2 }
 0x2b7   : > { %11612 = vmatprep.mubr.msk.f32.mxu0 %vm496_vm2, %v12583_v22  ;;  %v15269_v22 = vld [vmem:[#allocation2 + $0x180] sm:$0xff] }
 0x2b8   : > { %11031 = vmatmul.mubr.msk.f32.gmra.mrb[44].mxu1 %vm3219_vm4, %v14432_v23  ;;  %v12585_v23 = vld [vmem:[%s12719_s18 + $0x48] sm:$0xff] }
 0x2b9   : > { %11033 = vmatprep.mubr.msk.f32.mxu1 %vm3219_vm4, %v14459_v10  ;;  %v12586_v10 = vld [vmem:[%s12719_s18 + $0x50] sm:$0xff] }
 0x2ba   : > { %11613 = vmatmul.mubr.msk.f32.vlgmr.msra.gmra.mrb[32].mxu0 %vm496_vm2, %v12584_v52  ;;  %v12599_v52 = vld [vmem:[%s12719_s18 + $0xf0] sm:$0xff] }
 0x2bb   : > { %11615 = vmatprep.mubr.msk.f32.mxu0 %vm496_vm2, %v12585_v23  ;;  %11661 = vmatpush3.msk.msra.mxu0 %vm561_vm0, %v14986_v45  ;;  %v12589_v45 = vld [vmem:[%s12719_s18 + $0x78] sm:$0xff] }
 0x2bc   : > { %11034 = vmatmul.mubr.msk.f32.gmra.mrb[46].mxu1 %vm3219_vm4, %v14461_v14  ;;  %11710 = vmatprep.subr.msk.mxu0 %vm561_vm0, %v15205_v46  ;;  %v12587_v14 = vld [vmem:[%s12719_s18 + $0x60] sm:$0xff]  ;;  %v12600_v23 = vld [vmem:[%s12719_s18 + $0xf8] sm:$0xff] }
 0x2bd   : > { %11036 = vmatprep.mubr.msk.f32.mxu1 %vm3219_vm4, %v14497_v59  ;;  %v12588_v59 = vld [vmem:[%s12719_s18 + $0x68] sm:$0xff] }
 0x2be   : > { %11616 = vmatmul.mubr.msk.f32.gmra.mrb[34].mxu0 %vm496_vm2, %v12586_v10  ;;  %v15277_v10 = vld [vmem:[#allocation2 + $0x188] sm:$0xff] }
 0x2bf   : > { %11618 = vmatprep.mubr.msk.f32.mxu0 %vm496_vm2, %v12587_v14  ;;  %v12601_v14 = vld [vmem:[%s12719_s18 + $0x108] sm:$0xff] }
 0x2c0   : > { %11037 = vmatmul.mubr.msk.f32.gmra.mrb[48].mxu1 %vm3219_vm4, %v14499_v36  ;;  %v12590_v36 = vld [vmem:[%s12719_s18 + $0x80] sm:$0xff] }
 0x2c1   : > { %11039 = vmatprep.mubr.msk.f32.mxu1 %vm3219_vm4, %v14526_v17  ;;  %v12591_v17 = vld [vmem:[%s12719_s18 + $0x90] sm:$0xff] }
 0x2c2   : > { %11619 = vmatmul.mubr.msk.f32.gmra.mrb[36].mxu0 %vm496_vm2, %v12588_v59  ;;  %v16613_v59 = vld [vmem:[#allocation68_spill] sm:$0xff] }
 0x2c3   : > { %11621 = vmatprep.mubr.msk.f32.mxu0 %vm496_vm2, %v12589_v45  ;;  %v12602_v45 = vld [vmem:[%s12719_s18 + $0x110] sm:$0xff] }
 0x2c4   : > { %11040 = vmatmul.mubr.msk.f32.gmra.mrb[50].mxu1 %vm3219_vm4, %v14528_v21  ;;  %v12592_v21 = vld [vmem:[%s12719_s18 + $0x98] sm:$0xff] }
 0x2c5   : > { %11042 = vmatprep.mubr.msk.f32.mxu1 %vm3219_vm4, %v14555_v0  ;;  %v12593_v0 = vld [vmem:[%s12719_s18 + $0xa8] sm:$0xff] }
 0x2c6   : > { %11622 = vmatmul.mubr.msk.f32.gmra.mrb[38].mxu0 %vm496_vm2, %v12590_v36  ;;  %v15290_v36 = vld [vmem:[%s16025_s2 + $0x30] sm:$0xff] }
 0x2c7   : > { %11624 = vmatprep.mubr.msk.f32.mxu0 %vm496_vm2, %v12591_v17  ;;  %v16614_v17 = vld [vmem:[#allocation69_spill] sm:$0xff] }
 0x2c8   : > { %11043 = vmatmul.mubr.msk.f32.gmra.mrb[52].mxu1 %vm3219_vm4, %v14557_v15  ;;  %v12594_v15 = vld [vmem:[%s12719_s18 + $0xb0] sm:$0xff] }
 0x2c9   : > { %11045 = vmatprep.mubr.msk.f32.mxu1 %vm3219_vm4, %v14584_v55  ;;  %v12595_v55 = vld [vmem:[%s12719_s18 + $0xc0] sm:$0xff] }
 0x2ca   : > { %11625 = vmatmul.mubr.msk.f32.gmra.mrb[40].mxu0 %vm496_vm2, %v12592_v21  ;;  %v12603_v21 = vld [vmem:[%s12719_s18 + $0x120] sm:$0xff] }
 0x2cb   : > { %11627 = vmatprep.mubr.msk.f32.mxu0 %vm496_vm2, %v12593_v0  ;;  %v16615_v0 = vld [vmem:[#allocation84_spill] sm:$0xff] }
 0x2cc   : > { %11046 = vmatmul.mubr.msk.f32.gmra.mrb[54].mxu1 %vm3219_vm4, %v14586_v4  ;;  %v12596_v4 = vld [vmem:[%s12719_s18 + $0xc8] sm:$0xff] }
 0x2cd   : > { %11048 = vmatprep.mubr.msk.f32.mxu1 %vm3219_vm4, %v14613_v49  ;;  %v12597_v49 = vld [vmem:[%s12719_s18 + $0xd8] sm:$0xff] }
 0x2ce   : > { %11628 = vmatmul.mubr.msk.f32.gmra.mrb[42].mxu0 %vm496_vm2, %v12594_v15  ;;  %v12604_v15 = vld [vmem:[%s12719_s18 + $0x128] sm:$0xff] }
 0x2cf   : > { %11630 = vmatprep.mubr.msk.f32.mxu0 %vm496_vm2, %v12595_v55  ;;  %v16616_v55 = vld [vmem:[#allocation85_spill] sm:$0xff] }
 0x2d0   : > { %11049 = vmatmul.mubr.msk.f32.gmra.mrb[56].mxu1 %vm3219_vm4, %v14615_v11  ;;  %v12598_v11 = vld [vmem:[%s12719_s18 + $0xe0] sm:$0xff] }
 0x2d1   : > { %11051 = vmatprep.mubr.msk.f32.mxu1 %vm3219_vm4, %v14639_v57 }
 0x2d2   : > { %11631 = vmatmul.mubr.msk.f32.gmra.mrb[44].mxu0 %vm496_vm2, %v12596_v4  ;;  %v12605_v4 = vld [vmem:[%s12719_s18 + $0x138] sm:$0xff] }
 0x2d3   : > { %11633 = vmatprep.mubr.msk.f32.mxu0 %vm496_vm2, %v12597_v49  ;;  %v16617_v49 = vld [vmem:[#allocation86_spill] sm:$0xff] }
 0x2d4   : > { %11052 = vmatmul.mubr.msk.f32.gmra.mrb[58].mxu1 %vm3219_vm4, %v14641_v1 }
 0x2d5   : > { %11054 = vmatprep.mubr.msk.f32.mxu1 %vm3219_vm4, %v14663_v24 }
 0x2d6   : > { %11634 = vmatmul.mubr.msk.f32.gmra.mrb[46].mxu0 %vm496_vm2, %v12598_v11  ;;  %v12606_v11 = vld [vmem:[%s12719_s18 + $0x140] sm:$0xff] }
 0x2d7   : > { %11636 = vmatprep.mubr.msk.f32.mxu0 %vm496_vm2, %v12599_v52  ;;  %v16619_v52 = vld [vmem:[#allocation88_spill] sm:$0xff] }
 0x2d8   : > { %11055 = vmatmul.mubr.msk.f32.gmra.mrb[60].mxu1 %vm3219_vm4, %v14665_v34 }
 0x2d9   : > { %11057 = vmatprep.mubr.msk.f32.mxu1 %vm3219_vm4, %v15269_v22 }
 0x2da   : > { %11637 = vmatmul.mubr.msk.f32.gmra.mrb[48].mxu0 %vm496_vm2, %v12600_v23  ;;  %v16620_v23 = vld [vmem:[#allocation89_spill] sm:$0xff] }
 0x2db   : > { %11639 = vmatprep.mubr.msk.f32.mxu0 %vm496_vm2, %v12601_v14  ;;  %v16621_v14 = vld [vmem:[#allocation90_spill] sm:$0xff] }
 0x2dc   : > { %11058 = vmatmul.mubr.msk.f32.gmra.mrb[62].mxu1 %vm3219_vm4, %v15277_v10 }
 0x2dd   : > { %11062 = vmatprep.mubr.msk.f32.mxu1 %vm3219_vm4, %v16613_v59  ;;  %v16622_v59 = vld [vmem:[#allocation75_spill] sm:$0xff] }
 0x2de   : > { %11640 = vmatmul.mubr.msk.f32.gmra.mrb[50].mxu0 %vm496_vm2, %v12602_v45  ;;  %v16623_v45 = vld [vmem:[#allocation91_spill] sm:$0xff] }
 0x2df   : > { %11642 = vmatprep.mubr.msk.f32.mxu0 %vm496_vm2, %v12603_v21  ;;  %v16627_v21 = vld [vmem:[#allocation93_spill] sm:$0xff] }
 0x2e0   : > { %11063 = vmatmul.mubr.msk.f32.vlgmr.msra.gmra.mrb[32].mxu1 %vm3219_vm4, %v16614_v17  ;;  %v16625_v17 = vld [vmem:[#allocation92_spill] sm:$0xff] }
 0x2e1   : > { %11111 = vmatpush3.msra.mxu1 %v15135_v26  ;;  %11065 = vmatprep.mubr.msk.f32.mxu1 %vm3219_vm4, %v16615_v0  ;;  %v16618_v26 = vld [vmem:[#allocation87_spill] sm:$0xff] }
 0x2e2   : > { %11160 = vmatprep.subr.mxu1 %v15290_v36  ;;  %11643 = vmatmul.mubr.msk.f32.gmra.mrb[52].mxu0 %vm496_vm2, %v12604_v15  ;;  %v16628_v15 = vld [vmem:[#allocation94_spill] sm:$0xff] }
 0x2e3   : > { %11645 = vmatprep.mubr.msk.f32.mxu0 %vm496_vm2, %v12605_v4  ;;  %v12608_v4 = vld [vmem:[%s12719_s18 + $0x1a0] sm:$0xff] }
 0x2e4   : > { %11066 = vmatmul.mubr.msk.f32.gmra.mrb[34].mxu1 %vm3219_vm4, %v16616_v55 }
 0x2e5   : > { %11068 = vmatprep.mubr.msk.f32.mxu1 %vm3219_vm4, %v16617_v49 }
 0x2e6   : > { %11646 = vmatmul.mubr.msk.f32.gmra.mrb[54].mxu0 %vm496_vm2, %v12606_v11  ;;  %v16629_v11 = vld [vmem:[#allocation95_spill] sm:$0xff] }
 0x2e7   : > { %11648 = vmatprep.mubr.msk.f32.mxu0 %vm496_vm2, %v14726_v50  ;;  %v16624_v50 = vld [vmem:[#allocation76_spill] sm:$0xff] }
 0x2e8   : > { %11069 = vmatmul.mubr.msk.f32.gmra.mrb[36].mxu1 %vm3219_vm4, %v16618_v26 }
 0x2e9   : > { %11071 = vmatprep.mubr.msk.f32.mxu1 %vm3219_vm4, %v16619_v52 }
 0x2ea   : > { %11649 = vmatmul.mubr.msk.f32.gmra.mrb[56].mxu0 %vm496_vm2, %v14733_v8  ;;  %v16626_v8 = vld [vmem:[#allocation5_spill] sm:$0xff] }
 0x2eb   : > { %11651 = vmatprep.mubr.msk.f32.mxu0 %vm496_vm2, %v14740_v13  ;;  %v12607_v13 = vld [vmem:[%s12719_s18 + $0x198] sm:$0xff] }
 0x2ec   : > { %11072 = vmatmul.mubr.msk.f32.gmra.mrb[38].mxu1 %vm3219_vm4, %v16620_v23 }
 0x2ed   : > { %11074 = vmatprep.mubr.msk.f32.mxu1 %vm3219_vm4, %v16621_v14 }
 0x2ee   : > { %11652 = vmatmul.mubr.msk.f32.gmra.mrb[58].mxu0 %vm496_vm2, %v16622_v59  ;;  %v16630_v59 = vld [vmem:[#allocation9_spill] sm:$0xff] }
 0x2ef   : > { %11654 = vmatprep.mubr.msk.f32.mxu0 %vm496_vm2, %v16624_v50  ;;  %v16631_v50 = vld [vmem:[#allocation96_spill] sm:$0xff] }
 0x2f0   : > { %11075 = vmatmul.mubr.msk.f32.gmra.mrb[40].mxu1 %vm3219_vm4, %v16623_v45 }
 0x2f1   : > { %11077 = vmatprep.mubr.msk.f32.mxu1 %vm3219_vm4, %v16625_v17 }
 0x2f2   : > { %11655 = vmatmul.mubr.msk.f32.gmra.mrb[60].mxu0 %vm496_vm2, %v16626_v8  ;;  %v16632_v8 = vld [vmem:[#allocation10_spill] sm:$0xff] }
 0x2f3   : > { %11657 = vmatprep.mubr.msk.f32.mxu0 %vm496_vm2, %v12607_v13  ;;  %v16634_v13 = vld [vmem:[#allocation11_spill] sm:$0xff] }
 0x2f4   : > { %11078 = vmatmul.mubr.msk.f32.gmra.mrb[42].mxu1 %vm3219_vm4, %v16627_v21  ;;  %v16633_v21 = vld [vmem:[#allocation97_spill] sm:$0xff] }
 0x2f5   : > { %11080 = vmatprep.mubr.msk.f32.mxu1 %vm3219_vm4, %v16628_v15  ;;  %v16635_v15 = vld [vmem:[#allocation98_spill] sm:$0xff] }
 0x2f6   : > { %11658 = vmatmul.mubr.msk.f32.gmra.mrb[62].mxu0 %vm496_vm2, %v12608_v4  ;;  %v16636_v4 = vld [vmem:[#allocation12_spill] sm:$0xff] }
 0x2f7   : > { %11662 = vmatprep.mubr.msk.f32.mxu0 %vm496_vm2, %v16630_v59  ;;  %v16637_v59 = vld [vmem:[#allocation99_spill] sm:$0xff] }
 0x2f8   : > { %11081 = vmatmul.mubr.msk.f32.gmra.mrb[44].mxu1 %vm3219_vm4, %v16629_v11  ;;  %v16659_v11 = vld [vmem:[#allocation72_spill] sm:$0xff] }
 0x2f9   : > { %11083 = vmatprep.mubr.msk.f32.mxu1 %vm3219_vm4, %v16631_v50  ;;  %v16638_v50 = vld [vmem:[#allocation13_spill] sm:$0xff] }
 0x2fa   : > { %11663 = vmatmul.mubr.msk.f32.vlgmr.msra.gmra.mrb[32].mxu0 %vm496_vm2, %v16632_v8  ;;  %v16639_v8 = vld [vmem:[#allocation100_spill] sm:$0xff] }
 0x2fb   : > { %11665 = vmatprep.mubr.msk.f32.mxu0 %vm496_vm2, %v16634_v13  ;;  %11711 = vmatpush3.msk.msra.mxu0 %vm561_vm0, %v15205_v46  ;;  %v16641_v13 = vld [vmem:[#allocation101_spill] sm:$0xff]  ;;  %v16643_v46 = vld [vmem:[#allocation102_spill] sm:$0xff] }
 0x2fc   : > { %11084 = vmatmul.mubr.msk.f32.gmra.mrb[46].mxu1 %vm3219_vm4, %v16633_v21  ;;  %v16640_v21 = vld [vmem:[#allocation14_spill] sm:$0xff] }
 0x2fd   : > { %11086 = vmatprep.mubr.msk.f32.mxu1 %vm3219_vm4, %v16635_v15  ;;  %v16642_v15 = vld [vmem:[#allocation15_spill] sm:$0xff] }
 0x2fe   : > { %11666 = vmatmul.mubr.msk.f32.gmra.mrb[34].mxu0 %vm496_vm2, %v16636_v4  ;;  %v16644_v4 = vld [vmem:[#allocation16_spill] sm:$0xff] }
 0x2ff   : > { %11668 = vmatprep.mubr.msk.f32.mxu0 %vm496_vm2, %v16638_v50  ;;  %v16646_v50 = vld [vmem:[#allocation17_spill] sm:$0xff] }
 0x300   : > { %11087 = vmatmul.mubr.msk.f32.gmra.mrb[48].mxu1 %vm3219_vm4, %v16637_v59  ;;  %v16645_v59 = vld [vmem:[#allocation103_spill] sm:$0xff] }
 0x301   : > { %11089 = vmatprep.mubr.msk.f32.mxu1 %vm3219_vm4, %v16639_v8  ;;  %v16647_v8 = vld [vmem:[#allocation104_spill] sm:$0xff] }
 0x302   : > { %11669 = vmatmul.mubr.msk.f32.gmra.mrb[36].mxu0 %vm496_vm2, %v16640_v21  ;;  %v16648_v21 = vld [vmem:[#allocation18_spill] sm:$0xff] }
 0x303   : > { %11671 = vmatprep.mubr.msk.f32.mxu0 %vm496_vm2, %v16642_v15  ;;  %v16650_v15 = vld [vmem:[#allocation19_spill] sm:$0xff] }
 0x304   : > { %11090 = vmatmul.mubr.msk.f32.gmra.mrb[50].mxu1 %vm3219_vm4, %v16641_v13  ;;  %v16649_v13 = vld [vmem:[#allocation105_spill] sm:$0xff] }
 0x305   : > { %11092 = vmatprep.mubr.msk.f32.mxu1 %vm3219_vm4, %v16643_v46  ;;  %v16651_v46 = vld [vmem:[#allocation106_spill] sm:$0xff] }
 0x306   : > { %11672 = vmatmul.mubr.msk.f32.gmra.mrb[38].mxu0 %vm496_vm2, %v16644_v4  ;;  %v16652_v4 = vld [vmem:[#allocation20_spill] sm:$0xff] }
 0x307   : > { %11674 = vmatprep.mubr.msk.f32.mxu0 %vm496_vm2, %v16646_v50  ;;  %v16654_v50 = vld [vmem:[#allocation21_spill] sm:$0xff] }
 0x308   : > { %11093 = vmatmul.mubr.msk.f32.gmra.mrb[52].mxu1 %vm3219_vm4, %v16645_v59  ;;  %v16653_v59 = vld [vmem:[#allocation107_spill] sm:$0xff] }
 0x309   : > { %11095 = vmatprep.mubr.msk.f32.mxu1 %vm3219_vm4, %v16647_v8  ;;  %v16655_v8 = vld [vmem:[#allocation108_spill] sm:$0xff] }
 0x30a   : > { %11675 = vmatmul.mubr.msk.f32.gmra.mrb[40].mxu0 %vm496_vm2, %v16648_v21  ;;  %v16656_v21 = vld [vmem:[#allocation22_spill] sm:$0xff] }
 0x30b   : > { %11677 = vmatprep.mubr.msk.f32.mxu0 %vm496_vm2, %v16650_v15  ;;  %v4740_v15 = vrot.slane %v15269_v22, 1 }
 0x30c   : > { %11096 = vmatmul.mubr.msk.f32.gmra.mrb[54].mxu1 %vm3219_vm4, %v16649_v13  ;;  %v4741_v13 = vrot.slane %v15277_v10, 1 }
 0x30d   : > { %11098 = vmatprep.mubr.msk.f32.mxu1 %vm3219_vm4, %v16651_v46  ;;  %v16657_v46 = vld [vmem:[#allocation109_spill] sm:$0xff] }
 0x30e   : > { %11678 = vmatmul.mubr.msk.f32.gmra.mrb[42].mxu0 %vm496_vm2, %v16652_v4  ;;  %v16658_v4 = vld [vmem:[#allocation25_spill] sm:$0xff]  ;;  %v15416_v17 = vsel %vm413_vm1, %v4740_v15, %v4741_v13 }
 0x30f   : > { %11680 = vmatprep.mubr.msk.f32.mxu0 %vm496_vm2, %v16654_v50  ;;  %v16660_v50 = vld [vmem:[#allocation27_spill] sm:$0xff]  ;;  %v16671_v15 = vld [vmem:[#allocation81_spill] sm:$0xff] }
 0x310   : > { %11099 = vmatmul.mubr.msk.f32.gmra.mrb[56].mxu1 %vm3219_vm4, %v16653_v59  ;;  %v15406_v59 = vld [vmem:[#allocation2 + $0x190] sm:$0x3] }
 0x311   : > { %11101 = vmatprep.mubr.msk.f32.mxu1 %vm3219_vm4, %v16655_v8  ;;  %v16661_v8 = vld [vmem:[#allocation73_spill] sm:$0xff] }
 0x312   : > { %11681 = vmatmul.mubr.msk.f32.gmra.mrb[44].mxu0 %vm496_vm2, %v16656_v21  ;;  %v4743_v21 = vrot.slane %v15406_v59, 1 }
 0x313   : > { %11683 = vmatprep.mubr.msk.f32.mxu0 %vm496_vm2, %v16658_v4 }
 0x314   : > { %11102 = vmatmul.mubr.msk.f32.gmra.mrb[58].mxu1 %vm3219_vm4, %v16657_v46  ;;  %v15425_v4 = vsel %vm413_vm1, %v4741_v13, %v4743_v21  ;;  %v16670_v13 = vld [vmem:[#allocation48_spill] sm:$0xff]  ;;  %v16674_v21 = vld [vmem:[#allocation83_spill] sm:$0xff] }
 0x315   : > { %11104 = vmatprep.mubr.msk.f32.mxu1 %vm3219_vm4, %v16659_v11 }
 0x316   : > { %11684 = vmatmul.mubr.msk.f32.gmra.mrb[46].mxu0 %vm496_vm2, %v16660_v50  ;;  %v16673_v50 = vld [vmem:[#allocation45_spill] sm:$0xff] }
 0x317   : > { %11686 = vmatprep.mubr.msk.f32.mxu0 %vm496_vm2, %v16546_v29  ;;  %v15438_v29 = vld [vmem:[%s16025_s2 + $0x38] sm:$0xff] }
 0x318   : > { %11105 = vmatmul.mubr.msk.f32.gmra.mrb[60].mxu1 %vm3219_vm4, %v16661_v8 }
 0x319   : > { %11107 = vmatprep.mubr.msk.f32.mxu1 %vm3219_vm4, %v15416_v17 }
 0x31a   : > { %11687 = vmatmul.mubr.msk.f32.gmra.mrb[48].mxu0 %vm496_vm2, %v16547_v9  ;;  %v16662_v9 = vld [vmem:[#allocation77_spill] sm:$0xff] }
 0x31b   : > { %11689 = vmatprep.mubr.msk.f32.mxu0 %vm496_vm2, %v16548_v61  ;;  %v16664_v61 = vld [vmem:[#allocation41_spill] sm:$0xff] }
 0x31c   : > { %11108 = vmatmul.mubr.msk.f32.gmra.mrb[62].mxu1 %vm3219_vm4, %v15425_v4 }
 0x31d   : > { %11112 = vmatprep.mubr.msk.f32.mxu1 %vm3219_vm4, %v14865_v25  ;;  %v16663_v25 = vld [vmem:[#allocation7_spill] sm:$0xff] }
 0x31e   : > { %11690 = vmatmul.mubr.msk.f32.gmra.mrb[50].mxu0 %vm496_vm2, %v16549_v58  ;;  %v16665_v58 = vld [vmem:[#allocation78_spill] sm:$0xff] }
 0x31f   : > { %11692 = vmatprep.mubr.msk.f32.mxu0 %vm496_vm2, %v16551_v28  ;;  %v16667_v28 = vld [vmem:[#allocation46_spill] sm:$0xff] }
 0x320   : > { %11113 = vmatmul.mubr.msk.f32.vlgmr.msra.gmra.mrb[32].mxu1 %vm3219_vm4, %v14878_v30  ;;  %v16666_v30 = vld [vmem:[#allocation74_spill] sm:$0xff] }
 0x321   : > { %11161 = vmatpush3.msra.mxu1 %v15290_v36  ;;  %11115 = vmatprep.mubr.msk.f32.mxu1 %vm3219_vm4, %v16662_v9  ;;  %v16668_v36 = vld [vmem:[#allocation79_spill] sm:$0xff] }
 0x322   : > { %11210 = vmatprep.subr.mxu1 %v15438_v29  ;;  %11693 = vmatmul.mubr.msk.f32.gmra.mrb[52].mxu0 %vm496_vm2, %v16552_v40  ;;  %v16669_v40 = vld [vmem:[#allocation80_spill] sm:$0xff] }
 0x323   : > { %11695 = vmatprep.mubr.msk.f32.mxu0 %vm496_vm2, %v16664_v61  ;;  %v16676_v61 = vld [vmem:[#allocation6_spill] sm:$0xff] }
 0x324   : > { %11116 = vmatmul.mubr.msk.f32.gmra.mrb[34].mxu1 %vm3219_vm4, %v16663_v25 }
 0x325   : > { %11118 = vmatprep.mubr.msk.f32.mxu1 %vm3219_vm4, %v16665_v58 }
 0x326   : > { %11696 = vmatmul.mubr.msk.f32.gmra.mrb[54].mxu0 %vm496_vm2, %v16556_v32  ;;  %v16672_v32 = vld [vmem:[#allocation82_spill] sm:$0xff] }
 0x327   : > { %11698 = vmatprep.mubr.msk.f32.mxu0 %vm496_vm2, %v16667_v28  ;;  %v16678_v28 = vld [vmem:[#allocation8_spill] sm:$0xff] }
 0x328   : > { %11119 = vmatmul.mubr.msk.f32.gmra.mrb[36].mxu1 %vm3219_vm4, %v16666_v30 }
 0x329   : > { %11121 = vmatprep.mubr.msk.f32.mxu1 %vm3219_vm4, %v16668_v36 }
 0x32a   : > { %11699 = vmatmul.mubr.msk.f32.gmra.mrb[56].mxu0 %vm496_vm2, %v16560_v60  ;;  %v16675_v60 = vld [vmem:[#allocation4_spill] sm:$0xff] }
 0x32b   : > { %11701 = vmatprep.mubr.msk.f32.mxu0 %vm496_vm2, %v16670_v13  ;;  %v16679_v13 = vld [vmem:[#allocation26_spill] sm:$0xff] }
 0x32c   : > { %11122 = vmatmul.mubr.msk.f32.gmra.mrb[38].mxu1 %vm3219_vm4, %v16669_v40 }
 0x32d   : > { %11124 = vmatprep.mubr.msk.f32.mxu1 %vm3219_vm4, %v16671_v15 }
 0x32e   : > { %11702 = vmatmul.mubr.msk.f32.gmra.mrb[58].mxu0 %vm496_vm2, %v16564_v27  ;;  %v16677_v27 = vld [vmem:[#allocation70_spill] sm:$0xff] }
 0x32f   : > { %11704 = vmatprep.mubr.msk.f32.mxu0 %vm496_vm2, %v16673_v50  ;;  %v16680_v50 = vld [vmem:[#allocation29_spill] sm:$0xff] }
 0x330   : > { %11125 = vmatmul.mubr.msk.f32.gmra.mrb[40].mxu1 %vm3219_vm4, %v16672_v32 }
 0x331   : > { %11127 = vmatprep.mubr.msk.f32.mxu1 %vm3219_vm4, %v16674_v21 }
 0x332   : > { %11705 = vmatmul.mubr.msk.f32.gmra.mrb[60].mxu0 %vm496_vm2, %v16568_v19  ;;  %v16681_v19 = vld [vmem:[#allocation31_spill] sm:$0xff] }
 0x333   : > { %11707 = vmatprep.mubr.msk.f32.mxu0 %vm496_vm2, %v16675_v60  ;;  %v16682_v60 = vld [vmem:[#allocation30_spill] sm:$0xff] }
 0x334   : > { %11128 = vmatmul.mubr.msk.f32.gmra.mrb[42].mxu1 %vm3219_vm4, %v14963_v51 }
 0x335   : > { %11130 = vmatprep.mubr.msk.f32.mxu1 %vm3219_vm4, %v16676_v61  ;;  %v16683_v61 = vld [vmem:[#allocation33_spill] sm:$0xff] }
 0x336   : > { %11708 = vmatmul.mubr.msk.f32.gmra.mrb[62].mxu0 %vm496_vm2, %v16677_v27  ;;  %v16684_v27 = vld [vmem:[#allocation35_spill] sm:$0xff] }
 0x337   : > { %11712 = vmatprep.mubr.msk.f32.mxu0 %vm496_vm2, %v16679_v13  ;;  %v16685_v13 = vld [vmem:[#allocation34_spill] sm:$0xff] }
 0x338   : > { %11131 = vmatmul.mubr.msk.f32.gmra.mrb[44].mxu1 %vm3219_vm4, %v16678_v28 }
 0x339   : > { %11133 = vmatprep.mubr.msk.f32.mxu1 %vm3219_vm4, %v16680_v50  ;;  %v16686_v50 = vld [vmem:[#allocation37_spill] sm:$0xff] }
 0x33a   : > { %11713 = vmatmul.mubr.msk.f32.vlgmr.msra.gmra.mrb[32].mxu0 %vm496_vm2, %v16575_v42  ;;  %v16687_v42 = vld [vmem:[#allocation39_spill] sm:$0xff] }
 0x33b   : > { %11715 = vmatprep.mubr.msk.f32.mxu0 %vm496_vm2, %v16682_v60  ;;  %v16688_v60 = vld [vmem:[#allocation38_spill] sm:$0xff] }
 0x33c   : > { %11134 = vmatmul.mubr.msk.f32.gmra.mrb[46].mxu1 %vm3219_vm4, %v16681_v19 }
 0x33d   : > { %11136 = vmatprep.mubr.msk.f32.mxu1 %vm3219_vm4, %v16683_v61  ;;  %v16689_v61 = vld [vmem:[#allocation44_spill] sm:$0xff] }
 0x33e   : > { %11716 = vmatmul.mubr.msk.f32.gmra.mrb[34].mxu0 %vm496_vm2, %v16579_v35  ;;  %v16690_v35 = vld [vmem:[#allocation47_spill] sm:$0xff] }
 0x33f   : > { %11718 = vmatprep.mubr.msk.f32.mxu0 %vm496_vm2, %v16685_v13  ;;  %v16695_v13 = vld [vmem:[#allocation53_spill] sm:$0xff] }
 0x340   : > { %11137 = vmatmul.mubr.msk.f32.gmra.mrb[48].mxu1 %vm3219_vm4, %v16684_v27 }
 0x341   : > { %11139 = vmatprep.mubr.msk.f32.mxu1 %vm3219_vm4, %v16686_v50 }
 0x342   : > { %11719 = vmatmul.mubr.msk.f32.gmra.mrb[36].mxu0 %vm496_vm2, %v16583_v5  ;;  %v16691_v5 = vld [vmem:[#allocation50_spill] sm:$0xff] }
 0x343   : > { %11721 = vmatprep.mubr.msk.f32.mxu0 %vm496_vm2, %v16688_v60  ;;  %v5011_v60 = vrot.slane %v15406_v59, 2  ;;  %v16697_v59 = vld [vmem:[#allocation56_spill] sm:$0xff] }
 0x344   : > { %11140 = vmatmul.mubr.msk.f32.gmra.mrb[50].mxu1 %vm3219_vm4, %v16687_v42 }
 0x345   : > { %11142 = vmatprep.mubr.msk.f32.mxu1 %vm3219_vm4, %v16689_v61 }
 0x346   : > { %11722 = vmatmul.mubr.msk.f32.gmra.mrb[38].mxu0 %vm496_vm2, %v16587_v62  ;;  %v16693_v62 = vld [vmem:[#allocation3_spill] sm:$0xff] }
 0x347   : > { %11724 = vmatprep.mubr.msk.f32.mxu0 %vm496_vm2, %v16589_v31  ;;  %v16692_v31 = vld [vmem:[#allocation49_spill] sm:$0xff] }
 0x348   : > { %11143 = vmatmul.mubr.msk.f32.gmra.mrb[52].mxu1 %vm3219_vm4, %v15057_v43 }
 0x349   : > { %11145 = vmatprep.mubr.msk.f32.mxu1 %vm3219_vm4, %v16690_v35 }
 0x34a   : > { %11725 = vmatmul.mubr.msk.f32.gmra.mrb[40].mxu0 %vm496_vm2, %v16393_v56  ;;  %v5008_v56 = vrot.slane %v15269_v22, 2 }
 0x34b   : > { %11727 = vmatprep.mubr.msk.f32.mxu0 %vm496_vm2, %v13190_v48  ;;  %v5009_v48 = vrot.slane %v15277_v10, 2 }
 0x34c   : > { %11146 = vmatmul.mubr.msk.f32.gmra.mrb[54].mxu1 %vm3219_vm4, %v15074_v33 }
 0x34d   : > { %11148 = vmatprep.mubr.msk.f32.mxu1 %vm3219_vm4, %v16691_v5 }
 0x34e   : > { %11728 = vmatmul.mubr.msk.f32.gmra.mrb[42].mxu0 %vm496_vm2, %v13207_v41  ;;  %v16694_v41 = vld [vmem:[#allocation23_spill] sm:$0xff] }
 0x34f   : > { %11730 = vmatprep.mubr.msk.f32.mxu0 %vm496_vm2, %v16692_v31  ;;  %v15569_v31 = vsel %vm1082_vm3, %v5009_v48, %v5011_v60  ;;  %v16701_v60 = vld [vmem:[#allocation28_spill] sm:$0xff] }
 0x350   : > { %11149 = vmatmul.mubr.msk.f32.gmra.mrb[56].mxu1 %vm3219_vm4, %v15091_v7 }
 0x351   : > { %11151 = vmatprep.mubr.msk.f32.mxu1 %vm3219_vm4, %v16693_v62 }
 0x352   : > { %11731 = vmatmul.mubr.msk.f32.gmra.mrb[44].mxu0 %vm496_vm2, %v16592_v39  ;;  %v15560_v39 = vsel %vm1082_vm3, %v5008_v56, %v5009_v48  ;;  %v16698_v56 = vld [vmem:[#allocation24_spill] sm:$0xff]  ;;  %v16700_v48 = vld [vmem:[#allocation58_spill] sm:$0xff] }
 0x353   : > { %11733 = vmatprep.mubr.msk.f32.mxu0 %vm496_vm2, %v16594_v47  ;;  %v16696_v47 = vld [vmem:[#allocation55_spill] sm:$0xff] }
 0x354   : > { %11152 = vmatmul.mubr.msk.f32.gmra.mrb[58].mxu1 %vm3219_vm4, %v15108_v16 }
 0x355   : > { %11154 = vmatprep.mubr.msk.f32.mxu1 %vm3219_vm4, %v16694_v41 }
 0x356   : > { %11734 = vmatmul.mubr.msk.f32.gmra.mrb[46].mxu0 %vm496_vm2, %v16695_v13  ;;  %v16699_v13 = vld [vmem:[#allocation57_spill] sm:$0xff] }
 0x357   : > { %11736 = vmatprep.mubr.msk.f32.mxu0 %vm496_vm2, %v16596_v20  ;;  %v15582_v20 = vld [vmem:[%s16025_s2 + $0x40] sm:$0xff] }
 0x358   : > { %11155 = vmatmul.mubr.msk.f32.gmra.mrb[60].mxu1 %vm3219_vm4, %v15123_v53 }
 0x359   : > { %11157 = vmatprep.mubr.msk.f32.mxu1 %vm3219_vm4, %v15560_v39 }
 0x35a   : > { %11737 = vmatmul.mubr.msk.f32.gmra.mrb[48].mxu0 %vm496_vm2, %v16696_v47  ;;  %v16702_v47 = vld [vmem:[#allocation32_spill] sm:$0xff] }
 0x35b   : > { %11739 = vmatprep.mubr.msk.f32.mxu0 %vm496_vm2, %v16697_v59  ;;  %v12611_v59 = vld [vmem:[#allocation2 + $0x78] sm:$0xff] }
 0x35c   : > { %11158 = vmatmul.mubr.msk.f32.gmra.mrb[62].mxu1 %vm3219_vm4, %v15569_v31 }
 0x35d   : > { %11162 = vmatprep.mubr.msk.f32.mxu1 %vm3219_vm4, %v16698_v56  ;;  %v12617_v56 = vld [vmem:[#allocation2 + $0xc0] sm:$0xff] }
 0x35e   : > { %11740 = vmatmul.mubr.msk.f32.gmra.mrb[50].mxu0 %vm496_vm2, %v16699_v13  ;;  %v12618_v13 = vld [vmem:[#allocation2 + $0xc8] sm:$0xff] }
 0x35f   : > { %11742 = vmatprep.mubr.msk.f32.mxu0 %vm496_vm2, %v16700_v48  ;;  %v12620_v48 = vld [vmem:[#allocation2 + $0xe0] sm:$0xff] }
 0x360   : > { %11163 = vmatmul.mubr.msk.f32.vlgmr.msra.gmra.mrb[32].mxu1 %vm3219_vm4, %v15148_v37  ;;  %v12609_v37 = vld [vmem:[#allocation2 + $0x60] sm:$0xff] }
 0x361   : > { %11211 = vmatpush3.msra.mxu1 %v15438_v29  ;;  %11165 = vmatprep.mubr.msk.f32.mxu1 %vm3219_vm4, %v16701_v60  ;;  %v12610_v29 = vld [vmem:[#allocation2 + $0x68] sm:$0xff]  ;;  %v12622_v60 = vld [vmem:[#allocation2 + $0xf8] sm:$0xff] }
 0x362   : > { %11260 = vmatprep.subr.mxu1 %v15582_v20  ;;  %11743 = vmatmul.mubr.msk.f32.gmra.mrb[52].mxu0 %vm496_vm2, %v16603_v6  ;;  %v12612_v6 = vld [vmem:[#allocation2 + $0x80] sm:$0xff] }
 0x363   : > { %11745 = vmatprep.mubr.msk.f32.mxu0 %vm496_vm2, %v16605_v3  ;;  %v12613_v3 = vld [vmem:[#allocation2 + $0x90] sm:$0xff] }
 0x364   : > { %11166 = vmatmul.mubr.msk.f32.gmra.mrb[34].mxu1 %vm3219_vm4, %v16702_v47  ;;  %v12623_v47 = vld [vmem:[#allocation2 + $0x108] sm:$0xff] }
 0x365   : > { %11168 = vmatprep.mubr.msk.f32.mxu1 %vm3219_vm4, %v12609_v37  ;;  %v12624_v37 = vld [vmem:[#allocation2 + $0x110] sm:$0xff] }
 0x366   : > { %11746 = vmatmul.mubr.msk.f32.gmra.mrb[54].mxu0 %vm496_vm2, %v16606_v18  ;;  %v12614_v18 = vld [vmem:[#allocation2 + $0x98] sm:$0xff] }
 0x367   : > { %11748 = vmatprep.mubr.msk.f32.mxu0 %vm496_vm2, %v16607_v12  ;;  %v12615_v12 = vld [vmem:[#allocation2 + $0xa8] sm:$0xff] }
 0x368   : > { %11169 = vmatmul.mubr.msk.f32.gmra.mrb[36].mxu1 %vm3219_vm4, %v12610_v29  ;;  %v12625_v29 = vld [vmem:[#allocation2 + $0x120] sm:$0xff] }
 0x369   : > { %11171 = vmatprep.mubr.msk.f32.mxu1 %vm3219_vm4, %v12611_v59  ;;  %v12626_v59 = vld [vmem:[#allocation2 + $0x128] sm:$0xff] }
 0x36a   : > { %11749 = vmatmul.mubr.msk.f32.gmra.mrb[56].mxu0 %vm496_vm2, %v16608_v44  ;;  %v12616_v44 = vld [vmem:[#allocation2 + $0xb0] sm:$0xff] }
 0x36b   : > { %11751 = vmatprep.mubr.msk.f32.mxu0 %vm496_vm2, %v16609_v38  ;;  %v16703_v38 = vld [vmem:[#allocation43_spill] sm:$0xff] }
 0x36c   : > { %11172 = vmatmul.mubr.msk.f32.gmra.mrb[38].mxu1 %vm3219_vm4, %v12612_v6  ;;  %v12627_v6 = vld [vmem:[#allocation2 + $0x138] sm:$0xff] }
 0x36d   : > { %11174 = vmatprep.mubr.msk.f32.mxu1 %vm3219_vm4, %v12613_v3  ;;  %v12628_v3 = vld [vmem:[#allocation2 + $0x140] sm:$0xff] }
 0x36e   : > { %11752 = vmatmul.mubr.msk.f32.gmra.mrb[58].mxu0 %vm496_vm2, %v16610_v63  ;;  %v16704_v63 = vld [vmem:[#allocation71_spill] sm:$0xff] }
 0x36f   : > { %11754 = vmatprep.mubr.msk.f32.mxu0 %vm496_vm2, %v16611_v54  ;;  %v12619_v54 = vld [vmem:[#allocation2 + $0xd8] sm:$0xff] }
 0x370   : > { %11175 = vmatmul.mubr.msk.f32.gmra.mrb[40].mxu1 %vm3219_vm4, %v12614_v18  ;;  %v15646_v18 = vld [vmem:[#allocation2 + $0x198] sm:$0xff] }
 0x371   : > { %11177 = vmatprep.mubr.msk.f32.mxu1 %vm3219_vm4, %v12615_v12  ;;  %v16719_v12 = vld [vmem:[#allocation106_spill] sm:$0xff] }
 0x372   : > { %11755 = vmatmul.mubr.msk.f32.gmra.mrb[60].mxu0 %vm496_vm2, %v16612_v2  ;;  %v12621_v2 = vld [vmem:[#allocation2 + $0xf0] sm:$0xff] }
 0x373   : > { %11757 = vmatprep.mubr.msk.f32.mxu0 %vm496_vm2, %v16703_v38  ;;  %v16721_v38 = vld [vmem:[#allocation108_spill] sm:$0xff] }
 0x374   : > { %11178 = vmatmul.mubr.msk.f32.gmra.mrb[42].mxu1 %vm3219_vm4, %v12616_v44  ;;  %v16720_v44 = vld [vmem:[#allocation107_spill] sm:$0xff] }
 0x375   : > { %11180 = vmatprep.mubr.msk.f32.mxu1 %vm3219_vm4, %v12617_v56  ;;  %v5542_v56 = vrot.slane %v15646_v18, 1 }
 0x376   : > { %11758 = vmatmul.mubr.msk.f32.gmra.mrb[62].mxu0 %vm496_vm2, %v16704_v63 }
 0x378   : > { %11181 = vmatmul.mubr.msk.f32.gmra.mrb[44].mxu1 %vm3219_vm4, %v12618_v13  ;;  %v3361_v13 = vld [vmem:[#allocation2 + $0x1a8] sm:$0x3] }
 0x379   : > { %11183 = vmatprep.mubr.msk.f32.mxu1 %vm3219_vm4, %v12619_v54  ;;  %v5545_v54 = vrot.slane %v3361_v13, 1 }
 0x37c   : > { %11184 = vmatmul.mubr.msk.f32.gmra.mrb[46].mxu1 %vm3219_vm4, %v12620_v48 }
 0x37d   : > { %11186 = vmatprep.mubr.msk.f32.mxu1 %vm3219_vm4, %v12621_v2 }
 0x380   : > { %11187 = vmatmul.mubr.msk.f32.gmra.mrb[48].mxu1 %vm3219_vm4, %v12622_v60 }
 0x381   : > { %11189 = vmatprep.mubr.msk.f32.mxu1 %vm3219_vm4, %v12623_v47 }
 0x384   : > { %11190 = vmatmul.mubr.msk.f32.gmra.mrb[50].mxu1 %vm3219_vm4, %v12624_v37 }
 0x385   : > { %11192 = vmatprep.mubr.msk.f32.mxu1 %vm3219_vm4, %v12625_v29 }
 0x388   : > { %11193 = vmatmul.mubr.msk.f32.gmra.mrb[52].mxu1 %vm3219_vm4, %v12626_v59 }
 0x389   : > { %11195 = vmatprep.mubr.msk.f32.mxu1 %vm3219_vm4, %v12627_v6 }
 0x38c   : > { %11196 = vmatmul.mubr.msk.f32.gmra.mrb[54].mxu1 %vm3219_vm4, %v12628_v3 }
 0x38d   : > { %11198 = vmatprep.mubr.msk.f32.mxu1 %vm3219_vm4, %v14639_v57  ;;  %v15652_v57 = vld [vmem:[#allocation2 + $0x1a0] sm:$0xff] }
 0x38e   : > { %v5543_v63 = vrot.slane %v15652_v57, 1 }
 0x390   : > { %11199 = vmatmul.mubr.msk.f32.gmra.mrb[56].mxu1 %vm3219_vm4, %v14641_v1  ;;  %v16705_v1 = vld [vmem:[#allocation92_spill] sm:$0xff]  ;;  %v5544_v48 = vsel %vm413_vm1, %v5542_v56, %v5543_v63 }
 0x391   : > { %11201 = vmatprep.mubr.msk.f32.mxu1 %vm3219_vm4, %v14663_v24  ;;  %v16706_v24 = vld [vmem:[#allocation93_spill] sm:$0xff] }
 0x394   : > { %11202 = vmatmul.mubr.msk.f32.gmra.mrb[58].mxu1 %vm3219_vm4, %v14665_v34  ;;  %v16707_v34 = vld [vmem:[#allocation94_spill] sm:$0xff] }
 0x395   : > { %11204 = vmatprep.mubr.msk.f32.mxu1 %vm3219_vm4, %v15269_v22  ;;  %v16708_v22 = vld [vmem:[#allocation95_spill] sm:$0xff] }
 0x398   : > { %11205 = vmatmul.mubr.msk.f32.gmra.mrb[60].mxu1 %vm3219_vm4, %v15277_v10  ;;  %v16709_v10 = vld [vmem:[#allocation96_spill] sm:$0xff] }
 0x399   : > { %11207 = vmatprep.mubr.msk.f32.mxu1 %vm3219_vm4, %v15646_v18 }
 0x39c   : > { %11208 = vmatmul.mubr.msk.f32.gmra.mrb[62].mxu1 %vm3219_vm4, %v15652_v57 }
 0x39d   : > { %11212 = vmatprep.mubr.msk.f32.mxu1 %vm3219_vm4, %v16615_v0  ;;  %v16710_v0 = vld [vmem:[#allocation97_spill] sm:$0xff] }
 0x3a0   : > { %11213 = vmatmul.mubr.msk.f32.vlgmr.msra.gmra.mrb[32].mxu1 %vm3219_vm4, %v16616_v55  ;;  %v16711_v55 = vld [vmem:[#allocation98_spill] sm:$0xff] }
 0x3a1   : > { %11261 = vmatpush3.msra.mxu1 %v15582_v20  ;;  %11215 = vmatprep.mubr.msk.f32.mxu1 %vm3219_vm4, %v16617_v49  ;;  %v16712_v49 = vld [vmem:[#allocation99_spill] sm:$0xff]  ;;  %v16718_v20 = vld [vmem:[#allocation105_spill] sm:$0xff] }
 0x3a4   : > { %11216 = vmatmul.mubr.msk.f32.gmra.mrb[34].mxu1 %vm3219_vm4, %v16618_v26  ;;  %v16713_v26 = vld [vmem:[#allocation100_spill] sm:$0xff] }
 0x3a5   : > { %11218 = vmatprep.mubr.msk.f32.mxu1 %vm3219_vm4, %v16619_v52  ;;  %v16714_v52 = vld [vmem:[#allocation101_spill] sm:$0xff] }
 0x3a8   : > { %11219 = vmatmul.mubr.msk.f32.gmra.mrb[36].mxu1 %vm3219_vm4, %v16620_v23  ;;  %v16715_v23 = vld [vmem:[#allocation102_spill] sm:$0xff] }
 0x3a9   : > { %11221 = vmatprep.mubr.msk.f32.mxu1 %vm3219_vm4, %v16621_v14  ;;  %v16716_v14 = vld [vmem:[#allocation103_spill] sm:$0xff] }
 0x3ac   : > { %11222 = vmatmul.mubr.msk.f32.gmra.mrb[38].mxu1 %vm3219_vm4, %v16623_v45  ;;  %v16717_v45 = vld [vmem:[#allocation104_spill] sm:$0xff] }
 0x3ad   : > { %11224 = vmatprep.mubr.msk.f32.mxu1 %vm3219_vm4, %v16705_v1  ;;  %v15855_v1 = vld [vmem:[%s16030_s7] ss:$0 sm:$0xff] }
 0x3b0   : > { %11225 = vmatmul.mubr.msk.f32.gmra.mrb[40].mxu1 %vm3219_vm4, %v16706_v24 }
 0x3b1   : > { %11227 = vmatprep.mubr.msk.f32.mxu1 %vm3219_vm4, %v16707_v34 }
 0x3b4   : > { %11228 = vmatmul.mubr.msk.f32.gmra.mrb[42].mxu1 %vm3219_vm4, %v16708_v22 }
 0x3b5   : > { %11230 = vmatprep.mubr.msk.f32.mxu1 %vm3219_vm4, %v16709_v10 }
 0x3b8   : > { %11231 = vmatmul.mubr.msk.f32.gmra.mrb[44].mxu1 %vm3219_vm4, %v16710_v0 }
 0x3b9   : > { %11233 = vmatprep.mubr.msk.f32.mxu1 %vm3219_vm4, %v16711_v55 }
 0x3bc   : > { %11234 = vmatmul.mubr.msk.f32.gmra.mrb[46].mxu1 %vm3219_vm4, %v16712_v49 }
 0x3bd   : > { %11236 = vmatprep.mubr.msk.f32.mxu1 %vm3219_vm4, %v16713_v26 }
 0x3c0   : > { %11237 = vmatmul.mubr.msk.f32.gmra.mrb[48].mxu1 %vm3219_vm4, %v16714_v52 }
 0x3c1   : > { %11239 = vmatprep.mubr.msk.f32.mxu1 %vm3219_vm4, %v16715_v23 }
 0x3c4   : > { %11240 = vmatmul.mubr.msk.f32.gmra.mrb[50].mxu1 %vm3219_vm4, %v16716_v14 }
 0x3c5   : > { %11242 = vmatprep.mubr.msk.f32.mxu1 %vm3219_vm4, %v16717_v45 }
 0x3c8   : > { %11243 = vmatmul.mubr.msk.f32.gmra.mrb[52].mxu1 %vm3219_vm4, %v16718_v20 }
 0x3c9   : > { %11245 = vmatprep.mubr.msk.f32.mxu1 %vm3219_vm4, %v16719_v12 }
 0x3cc   : > { %11246 = vmatmul.mubr.msk.f32.gmra.mrb[54].mxu1 %vm3219_vm4, %v16720_v44 }
 0x3cd   : > { %11248 = vmatprep.mubr.msk.f32.mxu1 %vm3219_vm4, %v16721_v38 }
 0x3d0   : > { %11249 = vmatmul.mubr.msk.f32.gmra.mrb[56].mxu1 %vm3219_vm4, %v16657_v46  ;;  %v16724_v46 = vld [vmem:[#allocation33_spill] sm:$0xff] }
 0x3d1   : > { %11251 = vmatprep.mubr.msk.f32.mxu1 %vm3219_vm4, %v16659_v11  ;;  %v5546_v11 = vsel %vm413_vm1, %v5543_v63, %v5545_v54 }
 0x3d4   : > { %11252 = vmatmul.mubr.msk.f32.gmra.mrb[58].mxu1 %vm3219_vm4, %v16661_v8  ;;  %v16723_v8 = vld [vmem:[#allocation29_spill] sm:$0xff] }
 0x3d5   : > { %11254 = vmatprep.mubr.msk.f32.mxu1 %vm3219_vm4, %v15416_v17  ;;  %v16722_v17 = vld [vmem:[#allocation6_spill] sm:$0xff] }
 0x3d8   : > { %11255 = vmatmul.mubr.msk.f32.gmra.mrb[60].mxu1 %vm3219_vm4, %v15425_v4 }
 0x3d9   : > { %11257 = vmatprep.mubr.msk.f32.mxu1 %vm3219_vm4, %v5544_v48 }
 0x3dc   : > { %11258 = vmatmul.mubr.msk.f32.gmra.mrb[62].mxu1 %vm3219_vm4, %v5546_v11 }
 0x3dd   : > { %11262 = vmatprep.mubr.msk.f32.mxu1 %vm3219_vm4, %v16662_v9 }
 0x3e0   : > { %11263 = vmatmul.mubr.msk.f32.vlgmr.msra.gmra.mrb[32].mxu1 %vm3219_vm4, %v16663_v25 }
 0x3e1   : > { %11265 = vmatprep.mubr.msk.f32.mxu1 %vm3219_vm4, %v16665_v58 }
 0x3e4   : > { %11266 = vmatmul.mubr.msk.f32.gmra.mrb[34].mxu1 %vm3219_vm4, %v16666_v30 }
 0x3e5   : > { %11268 = vmatprep.mubr.msk.f32.mxu1 %vm3219_vm4, %v16668_v36 }
 0x3e8   : > { %11269 = vmatmul.mubr.msk.f32.gmra.mrb[36].mxu1 %vm3219_vm4, %v16669_v40 }
 0x3e9   : > { %11271 = vmatprep.mubr.msk.f32.mxu1 %vm3219_vm4, %v16671_v15 }
 0x3ec   : > { %11272 = vmatmul.mubr.msk.f32.gmra.mrb[38].mxu1 %vm3219_vm4, %v16672_v32 }
 0x3ed   : > { %11274 = vmatprep.mubr.msk.f32.mxu1 %vm3219_vm4, %v16674_v21 }
 0x3f0   : > { %11275 = vmatmul.mubr.msk.f32.gmra.mrb[40].mxu1 %vm3219_vm4, %v14963_v51 }
 0x3f1   : > { %11277 = vmatprep.mubr.msk.f32.mxu1 %vm3219_vm4, %v16722_v17 }
 0x3f4   : > { %11278 = vmatmul.mubr.msk.f32.gmra.mrb[42].mxu1 %vm3219_vm4, %v16678_v28 }
 0x3f5   : > { %11280 = vmatprep.mubr.msk.f32.mxu1 %vm3219_vm4, %v16723_v8 }
 0x3f8   : > { %11281 = vmatmul.mubr.msk.f32.gmra.mrb[44].mxu1 %vm3219_vm4, %v16681_v19 }
 0x3f9   : > { %11283 = vmatprep.mubr.msk.f32.mxu1 %vm3219_vm4, %v16724_v46 }
 0x3fc   : > { %11284 = vmatmul.mubr.msk.f32.gmra.mrb[46].mxu1 %vm3219_vm4, %v16684_v27 }
 0x3fd   : > { %11286 = vmatprep.mubr.msk.f32.mxu1 %vm3219_vm4, %v16686_v50 }
 0x400   : > { %11287 = vmatmul.mubr.msk.f32.gmra.mrb[48].mxu1 %vm3219_vm4, %v16687_v42 }
 0x401   : > { %11289 = vmatprep.mubr.msk.f32.mxu1 %vm3219_vm4, %v16689_v61 }
 0x404   : > { %11290 = vmatmul.mubr.msk.f32.gmra.mrb[50].mxu1 %vm3219_vm4, %v15057_v43  ;;  %v5810_v43 = vrot.slane %v15646_v18, 2 }
 0x405   : > { %11292 = vmatprep.mubr.msk.f32.mxu1 %vm3219_vm4, %v16690_v35 }
 0x408   : > { %11293 = vmatmul.mubr.msk.f32.gmra.mrb[52].mxu1 %vm3219_vm4, %v15074_v33  ;;  %v5811_v33 = vrot.slane %v15652_v57, 2  ;;  %v15850_v57 = vld [vmem:[%s16029_s6] ss:$0 sm:$0xff] }
 0x409   : > { %11295 = vmatprep.mubr.msk.f32.mxu1 %vm3219_vm4, %v16691_v5 }
 0x40c   : > { %11296 = vmatmul.mubr.msk.f32.gmra.mrb[54].mxu1 %vm3219_vm4, %v15091_v7  ;;  %v5813_v7 = vrot.slane %v3361_v13, 2 }
 0x40d   : > { %11298 = vmatprep.mubr.msk.f32.mxu1 %vm3219_vm4, %v16693_v62  ;;  %v11714_v51 = vpop.f32.mrb[32].mxu0 }
 0x40e   : > { %v8256_v4 = vpop.f32.mrb[33].mxu0  ;;  %v5814_v36 = vsel %vm1082_vm3, %v5811_v33, %v5813_v7 }
 0x410   : > { %11299 = vmatmul.mubr.msk.f32.gmra.mrb[56].mxu1 %vm3219_vm4, %v15108_v16  ;;  %v5812_v16 = vsel %vm1082_vm3, %v5810_v43, %v5811_v33 }
 0x411   : > { %11301 = vmatprep.mubr.msk.f32.mxu1 %vm3219_vm4, %v16694_v41  ;;  %v11717_v9 = vpop.f32.mrb[34].mxu0 }
 0x412   : > { %v15779_v25 = vpop.f32.mrb[35].mxu0 }
 0x414   : > { %11302 = vmatmul.mubr.msk.f32.gmra.mrb[58].mxu1 %vm3219_vm4, %v15123_v53 }
 0x415   : > { %11304 = vmatprep.mubr.msk.f32.mxu1 %vm3219_vm4, %v15560_v39  ;;  %v15785_v58 = vpop.f32.mrb[36].mxu0 }
 0x416   : > { %v15788_v30 = vpop.f32.mrb[37].mxu0 }
 0x418   : > { %11305 = vmatmul.mubr.msk.f32.gmra.mrb[60].mxu1 %vm3219_vm4, %v15569_v31 }
 0x419   : > { %11307 = vmatprep.mubr.msk.f32.mxu1 %vm3219_vm4, %v5812_v16  ;;  %v15794_v40 = vpop.f32.mrb[38].mxu0 }
 0x41a   : > { %v15796_v53 = vpop.f32.mrb[39].mxu0 }
 0x41c   : > { %11308 = vmatmul.mubr.msk.f32.gmra.mrb[62].mxu1 %vm3219_vm4, %v5814_v36 }
 0x41d   : > { %v15799_v15 = vpop.f32.mrb[40].mxu0 }
 0x41e   : > { %v15801_v32 = vpop.f32.mrb[41].mxu0 }
 0x421   : > { %v15803_v21 = vpop.f32.mrb[42].mxu0 }
 0x422   : > { %v15805_v61 = vpop.f32.mrb[43].mxu0 }
 0x425   : > { %v15807_v28 = vpop.f32.mrb[44].mxu0 }
 0x426   : > { %v15809_v50 = vpop.f32.mrb[45].mxu0 }
 0x429   : > { %v15811_v19 = vpop.f32.mrb[46].mxu0 }
 0x42a   : > { %v15813_v27 = vpop.f32.mrb[47].mxu0 }
 0x42d   : > { %v15815_v42 = vpop.f32.mrb[48].mxu0 }
 0x42e   : > { %v15817_v35 = vpop.f32.mrb[49].mxu0 }
 0x431   : > { %v15819_v5 = vpop.f32.mrb[50].mxu0 }
 0x432   : > { %v15821_v62 = vpop.f32.mrb[51].mxu0 }
 0x435   : > { %v15823_v41 = vpop.f32.mrb[52].mxu0 }
 0x436   : > { %v15825_v39 = vpop.f32.mrb[53].mxu0 }
 0x439   : > { %v15827_v31 = vpop.f32.mrb[54].mxu0 }
 0x43a   : > { %v15829_v2 = vpop.f32.mrb[55].mxu0 }
 0x43d   : > { %v15831_v60 = vpop.f32.mrb[56].mxu0 }
 0x43e   : > { %v15833_v47 = vpop.f32.mrb[57].mxu0 }
 0x441   : > { %v15835_v37 = vpop.f32.mrb[58].mxu0 }
 0x442   : > { %v15837_v29 = vpop.f32.mrb[59].mxu0 }
 0x445   : > { %v15839_v59 = vpop.f32.mrb[60].mxu0 }
 0x446   : > { %v15841_v6 = vpop.f32.mrb[61].mxu0 }
 0x449   : > { %v15843_v3 = vpop.f32.mrb[62].mxu0 }
 0x44a   : > { %v15845_v18 = vpop.f32.mrb[63].mxu0 }
 0x4b3   : > { %v11264_v24 = vpop.f32.mrb[32].mxu1 }
 0x4b4   : > { %v6085_v34 = vmul.f32 %v11264_v24, %v15850_v57  ;;  %v5887_v22 = vpop.f32.mrb[33].mxu1 }
 0x4b5   : > { %v6084_v10 = vmul.f32 %v15850_v57, %v5887_v22 }
 0x4b6   : > { %v6123_v0 = vadd.f32 %v15855_v1, %v6085_v34 }
 0x4b7   : > { %v6122_v55 = vadd.f32 %v15855_v1, %v6084_v10  ;;  %v11267_v49 = vpop.f32.mrb[34].mxu1 }
 0x4b8   : > { %v8448_v26 = vadd.f32 %v11714_v51, %v6123_v0  ;;  %v6087_v52 = vmul.f32 %v11267_v49, %v15850_v57  ;;  %v5897_v23 = vpop.f32.mrb[35].mxu1 }
 0x4b9   : > { %v8447_v14 = vadd.f32 %v8256_v4, %v6122_v55  ;;  %v6086_v45 = vmul.f32 %v15850_v57, %v5897_v23 }
 0x4ba   : > { %v8480_v20 = vmax.f32 %v8448_v26, 0.0  ;;  %v6125_v12 = vadd.f32 %v15855_v1, %v6087_v52 }
 0x4bb   : > { %v8479_v44 = vmax.f32 %v8447_v14, 0.0  ;;  %v6124_v38 = vadd.f32 %v15855_v1, %v6086_v45  ;;  %v11270_v56 = vpop.f32.mrb[36].mxu1 }
 0x4bc   : > { %8512 = vst.msk [vmem:[%s15866_s17 + $0x8] sm:$0xff] %vm3219_vm4, %v8480_v20  ;;  %v8450_v63 = vadd.f32 %v11717_v9, %v6125_v12  ;;  %v6089_v13 = vmul.f32 %v11270_v56, %v15850_v57  ;;  %v5907_v54 = vpop.f32.mrb[37].mxu1 }
 0x4bd   : > { %8511 = vst.msk [vmem:[%s15866_s17] sm:$0xff] %vm3219_vm4, %v8479_v44  ;;  %v8449_v48 = vadd.f32 %v15779_v25, %v6124_v38  ;;  %v6088_v11 = vmul.f32 %v15850_v57, %v5907_v54 }
 0x4be   : > { %v8482_v17 = vmax.f32 %v8450_v63, 0.0  ;;  %v6127_v8 = vadd.f32 %v15855_v1, %v6089_v13 }
 0x4bf   : > { %v8481_v46 = vmax.f32 %v8449_v48, 0.0  ;;  %v6126_v51 = vadd.f32 %v15855_v1, %v6088_v11  ;;  %v11273_v4 = vpop.f32.mrb[38].mxu1 }
 0x4c0   : > { %8514 = vst.msk [vmem:[%s15866_s17 + $0x18] sm:$0xff] %vm3219_vm4, %v8482_v17  ;;  %v8452_v43 = vadd.f32 %v15785_v58, %v6127_v8  ;;  %v6091_v33 = vmul.f32 %v11273_v4, %v15850_v57  ;;  %v5917_v9 = vpop.f32.mrb[39].mxu1 }
 0x4c1   : > { %8513 = vst.msk [vmem:[%s15866_s17 + $0x10] sm:$0xff] %vm3219_vm4, %v8481_v46  ;;  %v8451_v25 = vadd.f32 %v15788_v30, %v6126_v51  ;;  %v6090_v7 = vmul.f32 %v15850_v57, %v5917_v9 }
 0x4c2   : > { %v8484_v16 = vmax.f32 %v8452_v43, 0.0  ;;  %v6129_v36 = vadd.f32 %v15855_v1, %v6091_v33 }
 0x4c3   : > { %v8483_v24 = vmax.f32 %v8451_v25, 0.0  ;;  %v6128_v34 = vadd.f32 %v15855_v1, %v6090_v7  ;;  %v11276_v22 = vpop.f32.mrb[40].mxu1 }
 0x4c4   : > { %8516 = vst.msk [vmem:[%s15866_s17 + $0x28] sm:$0xff] %vm3219_vm4, %v8484_v16  ;;  %v8454_v58 = vadd.f32 %v15794_v40, %v6129_v36  ;;  %v6093_v10 = vmul.f32 %v11276_v22, %v15850_v57  ;;  %v5927_v0 = vpop.f32.mrb[41].mxu1 }
 0x4c5   : > { %8515 = vst.msk [vmem:[%s15866_s17 + $0x20] sm:$0xff] %vm3219_vm4, %v8483_v24  ;;  %v8453_v30 = vadd.f32 %v15796_v53, %v6128_v34  ;;  %v6092_v55 = vmul.f32 %v15850_v57, %v5927_v0 }
 0x4c6   : > { %v8486_v49 = vmax.f32 %v8454_v58, 0.0  ;;  %v6131_v26 = vadd.f32 %v15855_v1, %v6093_v10 }
 0x4c7   : > { %v8485_v52 = vmax.f32 %v8453_v30, 0.0  ;;  %v6130_v23 = vadd.f32 %v15855_v1, %v6092_v55  ;;  %v11279_v14 = vpop.f32.mrb[42].mxu1 }
 0x4c8   : > { %8518 = vst.msk [vmem:[%s15866_s17 + $0x38] sm:$0xff] %vm3219_vm4, %v8486_v49  ;;  %v8456_v40 = vadd.f32 %v15799_v15, %v6131_v26  ;;  %v6095_v45 = vmul.f32 %v11279_v14, %v15850_v57  ;;  %v5937_v20 = vpop.f32.mrb[43].mxu1 }
 0x4c9   : > { %8517 = vst.msk [vmem:[%s15866_s17 + $0x30] sm:$0xff] %vm3219_vm4, %v8485_v52  ;;  %v8455_v53 = vadd.f32 %v15801_v32, %v6130_v23  ;;  %v6094_v12 = vmul.f32 %v15850_v57, %v5937_v20 }
 0x4ca   : > { %v8488_v44 = vmax.f32 %v8456_v40, 0.0  ;;  %v6133_v38 = vadd.f32 %v15855_v1, %v6095_v45 }
 0x4cb   : > { %v8487_v56 = vmax.f32 %v8455_v53, 0.0  ;;  %v6132_v63 = vadd.f32 %v15855_v1, %v6094_v12  ;;  %v11282_v13 = vpop.f32.mrb[44].mxu1 }
 0x4cc   : > { %8520 = vst.msk [vmem:[%s15866_s17 + $0x48] sm:$0xff] %vm3219_vm4, %v8488_v44  ;;  %v8458_v15 = vadd.f32 %v15803_v21, %v6133_v38  ;;  %v6097_v54 = vmul.f32 %v11282_v13, %v15850_v57  ;;  %v5947_v48 = vpop.f32.mrb[45].mxu1 }
 0x4cd   : > { %8519 = vst.msk [vmem:[%s15866_s17 + $0x40] sm:$0xff] %vm3219_vm4, %v8487_v56  ;;  %v8457_v32 = vadd.f32 %v15805_v61, %v6132_v63  ;;  %v6096_v11 = vmul.f32 %v15850_v57, %v5947_v48 }
 0x4ce   : > { %v8490_v17 = vmax.f32 %v8458_v15, 0.0  ;;  %v6135_v8 = vadd.f32 %v15855_v1, %v6097_v54 }
 0x4cf   : > { %v8489_v46 = vmax.f32 %v8457_v32, 0.0  ;;  %v6134_v51 = vadd.f32 %v15855_v1, %v6096_v11  ;;  %v11285_v4 = vpop.f32.mrb[46].mxu1 }
 0x4d0   : > { %8522 = vst.msk [vmem:[%s15866_s17 + $0x58] sm:$0xff] %vm3219_vm4, %v8490_v17  ;;  %v8460_v21 = vadd.f32 %v15807_v28, %v6135_v8  ;;  %v6099_v43 = vmul.f32 %v11285_v4, %v15850_v57  ;;  %v5957_v33 = vpop.f32.mrb[47].mxu1 }
 0x4d1   : > { %8521 = vst.msk [vmem:[%s15866_s17 + $0x50] sm:$0xff] %vm3219_vm4, %v8489_v46  ;;  %v8459_v61 = vadd.f32 %v15809_v50, %v6134_v51  ;;  %v6098_v9 = vmul.f32 %v15850_v57, %v5957_v33 }
 0x4d2   : > { %v8492_v25 = vmax.f32 %v8460_v21, 0.0  ;;  %v6137_v7 = vadd.f32 %v15855_v1, %v6099_v43 }
 0x4d3   : > { %v8491_v16 = vmax.f32 %v8459_v61, 0.0  ;;  %v6136_v36 = vadd.f32 %v15855_v1, %v6098_v9  ;;  %v11288_v24 = vpop.f32.mrb[48].mxu1 }
 0x4d4   : > { %8524 = vst.msk [vmem:[%s15866_s17 + $0x68] sm:$0xff] %vm3219_vm4, %v8492_v25  ;;  %v8462_v28 = vadd.f32 %v15811_v19, %v6137_v7  ;;  %v6101_v34 = vmul.f32 %v11288_v24, %v15850_v57  ;;  %v5967_v22 = vpop.f32.mrb[49].mxu1 }
 0x4d5   : > { %8523 = vst.msk [vmem:[%s15866_s17 + $0x60] sm:$0xff] %vm3219_vm4, %v8491_v16  ;;  %v8461_v50 = vadd.f32 %v15813_v27, %v6136_v36  ;;  %v6100_v58 = vmul.f32 %v15850_v57, %v5967_v22 }
 0x4d6   : > { %v8494_v10 = vmax.f32 %v8462_v28, 0.0  ;;  %v6139_v0 = vadd.f32 %v15855_v1, %v6101_v34 }
 0x4d7   : > { %v8493_v30 = vmax.f32 %v8461_v50, 0.0  ;;  %v6138_v55 = vadd.f32 %v15855_v1, %v6100_v58  ;;  %v11291_v49 = vpop.f32.mrb[50].mxu1 }
 0x4d8   : > { %8526 = vst.msk [vmem:[%s15866_s17 + $0x78] sm:$0xff] %vm3219_vm4, %v8494_v10  ;;  %v8464_v19 = vadd.f32 %v15815_v42, %v6139_v0  ;;  %v6103_v26 = vmul.f32 %v11291_v49, %v15850_v57  ;;  %v5977_v52 = vpop.f32.mrb[51].mxu1 }
 0x4d9   : > { %8525 = vst.msk [vmem:[%s15866_s17 + $0x70] sm:$0xff] %vm3219_vm4, %v8493_v30  ;;  %v8463_v27 = vadd.f32 %v15817_v35, %v6138_v55  ;;  %v6102_v23 = vmul.f32 %v15850_v57, %v5977_v52 }
 0x4da   : > { %v8496_v14 = vmax.f32 %v8464_v19, 0.0  ;;  %v6141_v40 = vadd.f32 %v15855_v1, %v6103_v26 }
 0x4db   : > { %v8495_v45 = vmax.f32 %v8463_v27, 0.0  ;;  %v6140_v20 = vadd.f32 %v15855_v1, %v6102_v23  ;;  %v11294_v53 = vpop.f32.mrb[52].mxu1 }
 0x4dc   : > { %8528 = vst.msk [vmem:[%s15866_s17 + $0x88] sm:$0xff] %vm3219_vm4, %v8496_v14  ;;  %v8466_v42 = vadd.f32 %v15819_v5, %v6141_v40  ;;  %v6105_v12 = vmul.f32 %v11294_v53, %v15850_v57  ;;  %v5987_v44 = vpop.f32.mrb[53].mxu1 }
 0x4dd   : > { %8527 = vst.msk [vmem:[%s15866_s17 + $0x80] sm:$0xff] %vm3219_vm4, %v8495_v45  ;;  %v8465_v35 = vadd.f32 %v15821_v62, %v6140_v20  ;;  %v6104_v38 = vmul.f32 %v15850_v57, %v5987_v44 }
 0x4de   : > { %v8498_v56 = vmax.f32 %v8466_v42, 0.0  ;;  %v6143_v63 = vadd.f32 %v15855_v1, %v6105_v12 }
 0x4df   : > { %v8497_v13 = vmax.f32 %v8465_v35, 0.0  ;;  %v6142_v15 = vadd.f32 %v15855_v1, %v6104_v38  ;;  %v11297_v54 = vpop.f32.mrb[54].mxu1 }
 0x4e0   : > { %8530 = vst.msk [vmem:[%s15866_s17 + $0x98] sm:$0xff] %vm3219_vm4, %v8498_v56  ;;  %v8468_v5 = vadd.f32 %v15823_v41, %v6143_v63  ;;  %v6107_v48 = vmul.f32 %v11297_v54, %v15850_v57  ;;  %v5997_v32 = vpop.f32.mrb[55].mxu1 }
 0x4e1   : > { %8529 = vst.msk [vmem:[%s15866_s17 + $0x90] sm:$0xff] %vm3219_vm4, %v8497_v13  ;;  %v8467_v62 = vadd.f32 %v15825_v39, %v6142_v15  ;;  %v6106_v11 = vmul.f32 %v15850_v57, %v5997_v32 }
 0x4e2   : > { %v8500_v17 = vmax.f32 %v8468_v5, 0.0  ;;  %v6145_v8 = vadd.f32 %v15855_v1, %v6107_v48 }
 0x4e3   : > { %v8499_v46 = vmax.f32 %v8467_v62, 0.0  ;;  %v6144_v51 = vadd.f32 %v15855_v1, %v6106_v11  ;;  %v11300_v4 = vpop.f32.mrb[56].mxu1 }
 0x4e4   : > { %8532 = vst.msk [vmem:[%s15866_s17 + $0xa8] sm:$0xff] %vm3219_vm4, %v8500_v17  ;;  %v8470_v41 = vadd.f32 %v15827_v31, %v6145_v8  ;;  %v6109_v21 = vmul.f32 %v11300_v4, %v15850_v57  ;;  %v6007_v43 = vpop.f32.mrb[57].mxu1 }
 0x4e5   : > { %8531 = vst.msk [vmem:[%s15866_s17 + $0xa0] sm:$0xff] %vm3219_vm4, %v8499_v46  ;;  %v8469_v39 = vadd.f32 %v15829_v2, %v6144_v51  ;;  %v6108_v33 = vmul.f32 %v15850_v57, %v6007_v43 }
 0x4e6   : > { %v8502_v61 = vmax.f32 %v8470_v41, 0.0  ;;  %v6147_v9 = vadd.f32 %v15855_v1, %v6109_v21 }
 0x4e7   : > { %v8501_v25 = vmax.f32 %v8469_v39, 0.0  ;;  %v6146_v7 = vadd.f32 %v15855_v1, %v6108_v33  ;;  %v11303_v16 = vpop.f32.mrb[58].mxu1 }
 0x4e8   : > { %8534 = vst.msk [vmem:[%s15866_s17 + $0xb8] sm:$0xff] %vm3219_vm4, %v8502_v61  ;;  %v8472_v31 = vadd.f32 %v15831_v60, %v6147_v9  ;;  %v6111_v36 = vmul.f32 %v11303_v16, %v15850_v57  ;;  %v6017_v24 = vpop.f32.mrb[59].mxu1 }
 0x4e9   : > { %8533 = vst.msk [vmem:[%s15866_s17 + $0xb0] sm:$0xff] %vm3219_vm4, %v8501_v25  ;;  %v8471_v2 = vadd.f32 %v15833_v47, %v6146_v7  ;;  %v6110_v28 = vmul.f32 %v15850_v57, %v6017_v24 }
 0x4ea   : > { %v8504_v34 = vmax.f32 %v8472_v31, 0.0  ;;  %v6149_v22 = vadd.f32 %v15855_v1, %v6111_v36 }
 0x4eb   : > { %v8503_v50 = vmax.f32 %v8471_v2, 0.0  ;;  %v6148_v58 = vadd.f32 %v15855_v1, %v6110_v28  ;;  %v11306_v10 = vpop.f32.mrb[60].mxu1 }
 0x4ec   : > { %8536 = vst.msk [vmem:[%s15866_s17 + $0xc8] sm:$0xff] %vm3219_vm4, %v8504_v34  ;;  %v8474_v60 = vadd.f32 %v15835_v37, %v6149_v22  ;;  %v6113_v0 = vmul.f32 %v11306_v10, %v15850_v57  ;;  %v6027_v30 = vpop.f32.mrb[61].mxu1 }
 0x4ed   : > { %8535 = vst.msk [vmem:[%s15866_s17 + $0xc0] sm:$0xff] %vm3219_vm4, %v8503_v50  ;;  %v8473_v47 = vadd.f32 %v15837_v29, %v6148_v58  ;;  %v6112_v55 = vmul.f32 %v15850_v57, %v6027_v30 }
 0x4ee   : > { %v8506_v49 = vmax.f32 %v8474_v60, 0.0  ;;  %v6151_v19 = vadd.f32 %v15855_v1, %v6113_v0 }
 0x4ef   : > { %v8505_v26 = vmax.f32 %v8473_v47, 0.0  ;;  %v6150_v52 = vadd.f32 %v15855_v1, %v6112_v55  ;;  %v11309_v27 = vpop.f32.mrb[62].mxu1 }
 0x4f0   : > { %8538 = vst.msk [vmem:[%s15866_s17 + $0xd8] sm:$0xff] %vm3219_vm4, %v8506_v49  ;;  %v8476_v37 = vadd.f32 %v15839_v59, %v6151_v19  ;;  %v6115_v23 = vmul.f32 %v11309_v27, %v15850_v57  ;;  %v6037_v29 = vpop.f32.mrb[63].mxu1 }
 0x4f1   : > { %8537 = vst.msk [vmem:[%s15866_s17 + $0xd0] sm:$0xff] %vm3219_vm4, %v8505_v26  ;;  %v8475_v14 = vadd.f32 %v15841_v6, %v6150_v52  ;;  %v6114_v40 = vmul.f32 %v15850_v57, %v6037_v29 }
 0x4f2   : > { %v8508_v45 = vmax.f32 %v8476_v37, 0.0  ;;  %v6153_v20 = vadd.f32 %v15855_v1, %v6115_v23 }
 0x4f3   : > { %v8507_v53 = vmax.f32 %v8475_v14, 0.0  ;;  %v6152_v42 = vadd.f32 %v15855_v1, %v6114_v40 }
 0x4f4   : > { %8540 = vst.msk [vmem:[%s15866_s17 + $0xe8] sm:$0xff] %vm3219_vm4, %v8508_v45  ;;  %v8478_v59 = vadd.f32 %v15843_v3, %v6153_v20 }
 0x4f5   : > { %8539 = vst.msk [vmem:[%s15866_s17 + $0xe0] sm:$0xff] %vm3219_vm4, %v8507_v53  ;;  %v8477_v12 = vadd.f32 %v15845_v18, %v6152_v42 }
 0x4f6   : > { %v8510_v44 = vmax.f32 %v8478_v59, 0.0 }
 0x4f7   : > { %v8509_v35 = vmax.f32 %v8477_v12, 0.0 }
 0x4f8   : > { %8542 = vst.msk [vmem:[%s15866_s17 + $0xf8] sm:$0xff] %vm3219_vm4, %v8510_v44 }
 0x4f9   : > { %8541 = vst.msk [vmem:[%s15866_s17 + $0xf0] sm:$0xff] %vm3219_vm4, %v8509_v35 }
 0x4fa PF: > { %s18_s27 = sadd.s32 1, %s12635_s27  }
 0x4fb   : > { %p15_p4 = scmp.ge.s32.totalorder %s18_s27, 4  }
 0x4fd   :  { %17 = sbr.rel (!%p15_p4) target bundleno = 1 (0x1), region = 107 }

</bundles_post_ra>
